<compile_context>
chip_gen: v6e
topology: v6e:2x2x1
jax: 0.10.0
libtpu: 0.0.40
codegen_flags: <defaults>
</compile_context>

<pallas_src>
import functools

import jax
import jax.numpy as jnp
import numpy as np
from jax.experimental import pallas as pl
from jax.experimental.pallas import tpu as pltpu

NEG_SLOPE = 0.2
BN_EPS = 1e-5
LANE = 128
VMEM_LIMIT = 32 * 1024 * 1024   # safe scoped-VMEM budget on v5e/v6e/v7x


def _round_up(x, m):
    return (x + m - 1) // m * m


def _pick_group(batch, mw, target_rows=1024):
    """Batch-group size for the non-BN conv: ~target_rows GEMM rows per step,
    but keep >=2 grid steps when B>=2 so the v7x megacore has parallel work."""
    gb = max(1, min(batch, target_rows // mw))
    if batch >= 2:
        gb = max(1, min(gb, batch // 2))
    while batch % gb:
        gb -= 1
    return gb


# --------------------------- conv kernels ---------------------------------- #
def _conv_mac(pcat_ref, w_ref, b, *, owp, mw, n):
    """4x4/stride-2 conv for batch element `b` as 4 shifted GEMMs over the
    space-to-depth slab.  Row shifts {0,1,OWp,OWp+1} are static slices of the
    VMEM-resident slab; accumulation is f32 on the MXU."""
    acc = jnp.zeros((mw, n), jnp.float32)
    for si, sh in enumerate((0, 1, owp, owp + 1)):
        acc += jnp.dot(pcat_ref[b, pl.ds(sh, mw), :], w_ref[si],
                       preferred_element_type=jnp.float32)
    return acc


def _conv_act_kernel(pcat_ref, w_ref, o_ref, *, owp, mw):
    """Conv(k=4,s=2,p=1) + LeakyReLU(0.2), bf16 store.  One batch group / step."""
    gb, _, n = o_ref.shape
    for b in range(gb):
        acc = _conv_mac(pcat_ref, w_ref, b, owp=owp, mw=mw, n=n)
        acc = jnp.where(acc >= 0, acc, NEG_SLOPE * acc)
        o_ref[b] = acc.astype(o_ref.dtype)


def _conv_bn_act_kernel(pcat_ref, w_ref, g_ref, be_ref, o_ref, y_scr, *,
                        owp, mw, ow, oh):
    """Conv + training-mode BatchNorm (biased batch stats) + LeakyReLU fully
    fused in one grid step.  Stats are taken only over the valid output rows
    of the 'wide-row' GEMM (garbage rows are masked out and later discarded)."""
    bb, _, n = o_ref.shape
    r = jax.lax.broadcasted_iota(jnp.int32, (mw, 1), 0)
    vmask = (((r % owp) < ow) & (r < oh * owp)).astype(jnp.float32)   # (mw,1)
    s1 = jnp.zeros((1, n), jnp.float32)
    s2 = jnp.zeros((1, n), jnp.float32)
    for b in range(bb):                      # TODO(synk): large-batch variant
        acc = _conv_mac(pcat_ref, w_ref, b, owp=owp, mw=mw, n=n)
        y_scr[b] = acc
        av = acc * vmask
        s1 = s1 + jnp.sum(av, axis=0, keepdims=True)
        s2 = s2 + jnp.sum(av * acc, axis=0, keepdims=True)
    count = float(bb * oh * ow)
    mean = s1 / count
    var = jnp.maximum(s2 / count - mean * mean, 0.0)      # biased (training BN)
    scale = g_ref[...] * jax.lax.rsqrt(var + BN_EPS)      # (1, n)
    shift = be_ref[...] - mean * scale                    # (1, n)
    for b in range(bb):
        z = y_scr[b] * scale + shift
        o_ref[b] = jnp.where(z >= 0, z, NEG_SLOPE * z).astype(o_ref.dtype)


# ----------------------------- fc kernel ----------------------------------- #
def _fc_kernel(a_ref, w_ref, b_ref, o_ref):
    o_ref[...] = (jnp.dot(a_ref[...], w_ref[...],
                          preferred_element_type=jnp.float32) + b_ref[...])


# ------------------------------ JAX glue ------------------------------------ #
def _space_to_depth(x_nhwc):
    """(B,H,W,C) -> bf16 (B, Rp, 4C) slab where row i*OWp+j holds the 2x2 pixel
    block (2i..2i+1, 2j..2j+1) of the zero-padded input, channel-ordered
    (parity_i, parity_j, C).  Rows are zero-padded so every shifted window of
    the 'wide-row' GEMM stays in range.  Same total size as the padded input."""
    b, h, w, c = x_nhwc.shape
    oh, ow = h // 2, w // 2
    ohp, owp = oh + 1, ow + 1
    xp = jnp.pad(x_nhwc, ((0, 0), (1, 1), (1, 1), (0, 0)))
    pcat = xp.reshape(b, ohp, 2, owp, 2, c)
    pcat = jnp.transpose(pcat, (0, 1, 3, 2, 4, 5)).reshape(b, ohp * owp, 4 * c)
    mw = _round_up((oh - 1) * owp + ow, 8)          # GEMM rows computed per batch
    rp = _round_up(mw + owp + 1, 8)                 # slab rows incl. shift margin
    pcat = jnp.pad(pcat, ((0, 0), (0, rp - ohp * owp), (0, 0)))
    # TODO(synk): the spatial pad + stride-2 space-to-depth reorder stays in XLA
    # (one same-size transpose per layer); it has no cheaper Pallas equivalent.
    return pcat.astype(jnp.bfloat16), oh, ow, owp, mw, rp


def conv_layer(x_nhwc, wcat, gamma=None, beta=None, *, bn):
    """Conv2d(k=4,s=2,p=1,bias=False) [-> BatchNorm2d] -> LeakyReLU(0.2)."""
    bsz = x_nhwc.shape[0]
    kc, n = wcat.shape[1], wcat.shape[2]
    pcat, oh, ow, owp, mw, rp = _space_to_depth(x_nhwc)
    if bn:
        # TODO(synk): single fused step assumes the whole (B,mw,n) activation
        # fits VMEM (true at SVHN scale); huge batches would need a grouped
        # two-pass (stats, then apply) fallback.
        out = pl.pallas_call(
            functools.partial(_conv_bn_act_kernel, owp=owp, mw=mw, ow=ow, oh=oh),
            out_shape=jax.ShapeDtypeStruct((bsz, mw, n), jnp.bfloat16),
            grid_spec=pltpu.PrefetchScalarGridSpec(
                num_scalar_prefetch=0,
                grid=(1,),
                in_specs=[pl.BlockSpec((bsz, rp, kc), lambda i: (0, 0, 0)),
                          pl.BlockSpec((4, kc, n), lambda i: (0, 0, 0)),
                          pl.BlockSpec((1, n), lambda i: (0, 0)),
                          pl.BlockSpec((1, n), lambda i: (0, 0))],
                out_specs=pl.BlockSpec((bsz, mw, n), lambda i: (0, 0, 0)),
                scratch_shapes=[pltpu.VMEM((bsz, mw, n), jnp.float32)]),
            compiler_params=pltpu.CompilerParams(
                dimension_semantics=("arbitrary",),
                vmem_limit_bytes=VMEM_LIMIT),
        )(pcat, wcat, gamma, beta)
    else:
        gb = _pick_group(bsz, mw)
        out = pl.pallas_call(
            functools.partial(_conv_act_kernel, owp=owp, mw=mw),
            out_shape=jax.ShapeDtypeStruct((bsz, mw, n), jnp.bfloat16),
            grid_spec=pltpu.PrefetchScalarGridSpec(
                num_scalar_prefetch=0,
                grid=(bsz // gb,),
                in_specs=[pl.BlockSpec((gb, rp, kc), lambda i: (i, 0, 0)),
                          pl.BlockSpec((4, kc, n), lambda i: (0, 0, 0))],
                out_specs=pl.BlockSpec((gb, mw, n), lambda i: (i, 0, 0))),
            compiler_params=pltpu.CompilerParams(
                dimension_semantics=("parallel",),
                vmem_limit_bytes=VMEM_LIMIT),
        )(pcat, wcat)
    # Drop the 'wide-row' garbage rows -> NHWC activation for the next layer.
    y = out[:, :oh * owp, :].reshape(bsz, oh, owp, n)[:, :, :ow, :]
    return y


def _pick_fc_tm(m):
    if m < 16:
        return m
    for t in (256, 128, 64, 32, 16, 8):
        if m % t == 0 and m // t >= 2:
            return t
    return m


def fc_layer(a, w, bias):
    m, k = a.shape
    n = w.shape[1]
    tm = _pick_fc_tm(m)
    return pl.pallas_call(
        _fc_kernel,
        out_shape=jax.ShapeDtypeStruct((m, n), jnp.float32),
        grid_spec=pltpu.PrefetchScalarGridSpec(
            num_scalar_prefetch=0,
            grid=(m // tm,),
            in_specs=[pl.BlockSpec((tm, k), lambda i: (i, 0)),
                      pl.BlockSpec((k, n), lambda i: (0, 0)),
                      pl.BlockSpec((1, n), lambda i: (0, 0))],
            out_specs=pl.BlockSpec((tm, n), lambda i: (i, 0))),
        compiler_params=pltpu.CompilerParams(
            dimension_semantics=("parallel",),
            vmem_limit_bytes=VMEM_LIMIT),
    )(a, w, bias)


def encoder_svhn_forward(x_nchw, p, *, z_size):
    x = jnp.transpose(x_nchw, (0, 2, 3, 1)).astype(jnp.bfloat16)   # NHWC + bf16 once
    cin_pad = p["w1"].shape[1] // 4
    if cin_pad > x.shape[-1]:                                      # 3 -> 8 channels
        x = jnp.pad(x, ((0, 0), (0, 0), (0, 0), (0, cin_pad - x.shape[-1])))
    h = conv_layer(x, p["w1"], bn=False)                           # (B,16,16, 32)
    h = conv_layer(h, p["w2"], p["g2"], p["b2"], bn=True)          # (B, 8, 8, 64)
    h = conv_layer(h, p["w3"], p["g3"], p["b3"], bn=True)          # (B, 4, 4,128)
    flat = h.reshape(h.shape[0], -1)        # NHWC flatten; fc weight pre-permuted
    out = fc_layer(flat, p["w_fc"], p["b_fc"])                     # (B, 128) f32
    return out[:, :z_size]


# ------------------- one-time parameter preparation ------------------------ #
def _prep_conv_w(w, cin_pad=None):
    """torch (Cout,Cin,4,4) -> (4 shifts, 4*Cin, Cout) bf16.  Shift order is
    (di,dj) in {0,1}^2 matching row shifts (0,1,OWp,OWp+1); row order inside a
    shift is (parity_i, parity_j, Cin), matching the space-to-depth channels."""
    cout, cin, _, _ = w.shape
    if cin_pad is not None and cin_pad > cin:
        w = jnp.pad(w, ((0, 0), (0, cin_pad - cin), (0, 0), (0, 0)))
        cin = cin_pad
    wt = jnp.transpose(w, (2, 3, 1, 0))                 # (kh, kw, Cin, Cout)
    wt = wt.reshape(2, 2, 2, 2, cin, cout)              # (di, pi, dj, pj, Cin, Cout)
    wt = jnp.transpose(wt, (0, 2, 1, 3, 4, 5))          # (di, dj, pi, pj, Cin, Cout)
    return wt.reshape(4, 4 * cin, cout).astype(jnp.bfloat16)


def prepare_params(p, z_size):
    """Reshape / permute / pad / bf16-cast the torch-layout weights once."""
    cdim = p["w3"].shape[0]                              # 128 conv3 channels
    side = int(round((p["w_fc"].shape[1] // cdim) ** 0.5))   # 4
    z_pad = _round_up(z_size, LANE)
    # fc rows permuted NCHW-flatten -> NHWC-flatten; columns padded to 128 lanes.
    wf = p["w_fc"].reshape(z_size, cdim, side, side)
    wf = jnp.transpose(wf, (0, 2, 3, 1)).reshape(z_size, -1).T
    wf = jnp.pad(wf, ((0, 0), (0, z_pad - z_size))).astype(jnp.bfloat16)
    bf = jnp.pad(p["b_fc"], (0, z_pad - z_size)).reshape(1, z_pad).astype(jnp.float32)
    n2, n3 = p["w2"].shape[0], p["w3"].shape[0]
    return {
        "w1": _prep_conv_w(p["w1"], cin_pad=8),          # K = 4*8 = 32
        "w2": _prep_conv_w(p["w2"]),                     # K = 4*32 = 128
        "w3": _prep_conv_w(p["w3"]),                     # K = 4*64 = 256
        "g2": p["g2"].reshape(1, n2).astype(jnp.float32),
        "b2": p["b2"].reshape(1, n2).astype(jnp.float32),
        "g3": p["g3"].reshape(1, n3).astype(jnp.float32),
        "b3": p["b3"].reshape(1, n3).astype(jnp.float32),
        "w_fc": wf, "b_fc": bf,
    }


def init_params(key, z_size=100, conv_dim=32):
    ks = jax.random.split(key, 8)

    def conv_w(k, cout, cin):
        return jax.random.normal(k, (cout, cin, 4, 4), jnp.float32) * 0.05

    feat = conv_dim * 4 * 4 * 4
    return {
        "w1": conv_w(ks[0], conv_dim, 3),
        "w2": conv_w(ks[1], conv_dim * 2, conv_dim),
        "w3": conv_w(ks[2], conv_dim * 4, conv_dim * 2),
        "g2": 1.0 + 0.1 * jax.random.normal(ks[3], (conv_dim * 2,), jnp.float32),
        "b2": 0.1 * jax.random.normal(ks[4], (conv_dim * 2,), jnp.float32),
        "g3": 1.0 + 0.1 * jax.random.normal(ks[5], (conv_dim * 4,), jnp.float32),
        "b3": 0.1 * jax.random.normal(ks[6], (conv_dim * 4,), jnp.float32),
        "w_fc": jax.random.normal(ks[7], (z_size, feat), jnp.float32) * 0.02,
        "b_fc": jax.random.normal(jax.random.fold_in(key, 99),
                                  (z_size,), jnp.float32) * 0.02,
    }


# --------------------------- pure-JAX reference ----------------------------- #
def reference_forward(x, p):
    hi = jax.lax.Precision.HIGHEST

    def convop(h, w):
        return jax.lax.conv_general_dilated(
            h, w, window_strides=(2, 2), padding=((1, 1), (1, 1)),
            dimension_numbers=("NCHW", "OIHW", "NCHW"), precision=hi)

    def lrelu(v):
        return jnp.where(v >= 0, v, NEG_SLOPE * v)

    def bn(v, g, b):
        mu = jnp.mean(v, axis=(0, 2, 3), keepdims=True)
        var = jnp.mean((v - mu) ** 2, axis=(0, 2, 3), keepdims=True)
        return ((v - mu) * jax.lax.rsqrt(var + BN_EPS)
                * g.reshape(1, -1, 1, 1) + b.reshape(1, -1, 1, 1))

    h = lrelu(convop(x, p["w1"]))
    h = lrelu(bn(convop(h, p["w2"]), p["g2"], p["b2"]))
    h = lrelu(bn(convop(h, p["w3"]), p["g3"], p["b3"]))
    flat = h.reshape(h.shape[0], -1)
    return jnp.dot(flat, p["w_fc"].T, precision=hi) + p["b_fc"]


if __name__ == "__main__":
    z_size = 100
    key = jax.random.PRNGKey(0)
    kx, kp = jax.random.split(key)
    x = jax.random.normal(kx, (2, 3, 32, 32), jnp.float32)   # SVHN-shaped input
    params = init_params(kp, z_size=z_size)
    prepped = prepare_params(params, z_size)

    fwd = jax.jit(functools.partial(encoder_svhn_forward, z_size=z_size))
    out = jax.block_until_ready(fwd(x, prepped))
    ref = jax.block_until_ready(reference_forward(x, params))

    assert out.shape == (2, z_size), out.shape
    # bf16 matmul inputs across three stacked conv layers + fc accumulate to
    # ~1e-2 absolute error vs the f32 reference; tolerance sized accordingly.
    np.testing.assert_allclose(np.asarray(out), np.asarray(ref),
                               rtol=2.5e-2, atol=2.5e-2)
    print("KERNEL_OK")
</pallas_src>

<mosaic_0001>
module attributes {stable_mosaic.version = 11 : i64} {
  func.func @_conv_act_kernel(%arg0: i32, %arg1: memref<1x296x32xbf16, #tpu.memory_space<vmem>>, %arg2: memref<4x32x32xbf16, #tpu.memory_space<vmem>>, %arg3: memref<1x272x32xbf16, #tpu.memory_space<vmem>>) attributes {dimension_semantics = [#tpu.dimension_semantics<parallel>], iteration_bounds = array<i64: 2>, scalar_prefetch = 0 : i64, scratch_operands = 0 : i64, tpu.core_type = #tpu.core_type<tc>, window_params = [{transform_indices = @transform_0, window_bounds = array<i64: 1, 296, 32>}, {pipeline_mode = #tpu.pipeline_mode<synchronous>, transform_indices = @transform_1, window_bounds = array<i64: 4, 32, 32>}, {transform_indices = @transform_2, window_bounds = array<i64: 1, 272, 32>}]} {
    %cst = arith.constant 0.000000e+00 : f32
    %0 = vector.broadcast %cst : f32 to vector<272x32xf32>
    %c0 = arith.constant 0 : index
    %c0_0 = arith.constant 0 : index
    %c0_1 = arith.constant 0 : index
    %1 = vector.load %arg1[%c0, %c0_0, %c0_1] : memref<1x296x32xbf16, #tpu.memory_space<vmem>>, vector<1x272x32xbf16>
    %2 = vector.shape_cast %1 : vector<1x272x32xbf16> to vector<272x32xbf16>
    %c0_2 = arith.constant 0 : index
    %c0_3 = arith.constant 0 : index
    %c0_4 = arith.constant 0 : index
    %3 = vector.load %arg2[%c0_2, %c0_3, %c0_4] : memref<4x32x32xbf16, #tpu.memory_space<vmem>>, vector<1x32x32xbf16>
    %4 = vector.shape_cast %3 : vector<1x32x32xbf16> to vector<32x32xbf16>
    %cst_5 = arith.constant dense<0.000000e+00> : vector<272x32xf32>
    %5 = tpu.matmul %2, %4, %cst_5 {dimension_numbers = #tpu.dot_dimension_numbers<[1], [0], [0], [1], [0, 0, 1, 1], [], []>} : vector<272x32xbf16>, vector<32x32xbf16>, vector<272x32xf32> -> vector<272x32xf32>
    %6 = arith.addf %0, %5 : vector<272x32xf32>
    %c0_6 = arith.constant 0 : index
    %c1 = arith.constant 1 : index
    %c0_7 = arith.constant 0 : index
    %7 = vector.load %arg1[%c0_6, %c1, %c0_7] : memref<1x296x32xbf16, #tpu.memory_space<vmem>>, vector<1x272x32xbf16>
    %8 = vector.shape_cast %7 : vector<1x272x32xbf16> to vector<272x32xbf16>
    %c1_8 = arith.constant 1 : index
    %c0_9 = arith.constant 0 : index
    %c0_10 = arith.constant 0 : index
    %9 = vector.load %arg2[%c1_8, %c0_9, %c0_10] : memref<4x32x32xbf16, #tpu.memory_space<vmem>>, vector<1x32x32xbf16>
    %10 = vector.shape_cast %9 : vector<1x32x32xbf16> to vector<32x32xbf16>
    %cst_11 = arith.constant dense<0.000000e+00> : vector<272x32xf32>
    %11 = tpu.matmul %8, %10, %cst_11 {dimension_numbers = #tpu.dot_dimension_numbers<[1], [0], [0], [1], [0, 0, 1, 1], [], []>} : vector<272x32xbf16>, vector<32x32xbf16>, vector<272x32xf32> -> vector<272x32xf32>
    %12 = arith.addf %6, %11 : vector<272x32xf32>
    %c0_12 = arith.constant 0 : index
    %c17 = arith.constant 17 : index
    %c0_13 = arith.constant 0 : index
    %13 = vector.load %arg1[%c0_12, %c17, %c0_13] : memref<1x296x32xbf16, #tpu.memory_space<vmem>>, vector<1x272x32xbf16>
    %14 = vector.shape_cast %13 : vector<1x272x32xbf16> to vector<272x32xbf16>
    %c2 = arith.constant 2 : index
    %c0_14 = arith.constant 0 : index
    %c0_15 = arith.constant 0 : index
    %15 = vector.load %arg2[%c2, %c0_14, %c0_15] : memref<4x32x32xbf16, #tpu.memory_space<vmem>>, vector<1x32x32xbf16>
    %16 = vector.shape_cast %15 : vector<1x32x32xbf16> to vector<32x32xbf16>
    %cst_16 = arith.constant dense<0.000000e+00> : vector<272x32xf32>
    %17 = tpu.matmul %14, %16, %cst_16 {dimension_numbers = #tpu.dot_dimension_numbers<[1], [0], [0], [1], [0, 0, 1, 1], [], []>} : vector<272x32xbf16>, vector<32x32xbf16>, vector<272x32xf32> -> vector<272x32xf32>
    %18 = arith.addf %12, %17 : vector<272x32xf32>
    %c0_17 = arith.constant 0 : index
    %c18 = arith.constant 18 : index
    %c0_18 = arith.constant 0 : index
    %19 = vector.load %arg1[%c0_17, %c18, %c0_18] : memref<1x296x32xbf16, #tpu.memory_space<vmem>>, vector<1x272x32xbf16>
    %20 = vector.shape_cast %19 : vector<1x272x32xbf16> to vector<272x32xbf16>
    %c3 = arith.constant 3 : index
    %c0_19 = arith.constant 0 : index
    %c0_20 = arith.constant 0 : index
    %21 = vector.load %arg2[%c3, %c0_19, %c0_20] : memref<4x32x32xbf16, #tpu.memory_space<vmem>>, vector<1x32x32xbf16>
    %22 = vector.shape_cast %21 : vector<1x32x32xbf16> to vector<32x32xbf16>
    %cst_21 = arith.constant dense<0.000000e+00> : vector<272x32xf32>
    %23 = tpu.matmul %20, %22, %cst_21 {dimension_numbers = #tpu.dot_dimension_numbers<[1], [0], [0], [1], [0, 0, 1, 1], [], []>} : vector<272x32xbf16>, vector<32x32xbf16>, vector<272x32xf32> -> vector<272x32xf32>
    %24 = arith.addf %18, %23 : vector<272x32xf32>
    %cst_22 = arith.constant 0.000000e+00 : f32
    %25 = vector.broadcast %cst_22 : f32 to vector<272x32xf32>
    %26 = arith.cmpf oge, %24, %25 : vector<272x32xf32>
    %cst_23 = arith.constant 2.000000e-01 : f32
    %27 = vector.broadcast %cst_23 : f32 to vector<272x32xf32>
    %28 = arith.mulf %27, %24 : vector<272x32xf32>
    %29 = arith.select %26, %24, %28 : vector<272x32xi1>, vector<272x32xf32>
    %30 = arith.truncf %29 : vector<272x32xf32> to vector<272x32xbf16>
    %c0_24 = arith.constant 0 : index
    %c0_25 = arith.constant 0 : index
    %c0_26 = arith.constant 0 : index
    %31 = vector.load %arg3[%c0_24, %c0_25, %c0_26] : memref<1x272x32xbf16, #tpu.memory_space<vmem>>, vector<1x272x32xbf16>
    %32 = vector.shape_cast %31 : vector<1x272x32xbf16> to vector<272x32xbf16>
    %33 = vector.shape_cast %30 : vector<272x32xbf16> to vector<1x272x32xbf16>
    tpu.vector_store %arg3[%c0_24, %c0_25, %c0_26], %33 {strides = array<i32>} : memref<1x272x32xbf16, #tpu.memory_space<vmem>>, vector<1x272x32xbf16>,
    return
  }
  func.func @transform_0(%arg0: i32) -> (i32, i32, i32) {
    %c0_i32 = arith.constant 0 : i32
    %c0_i32_0 = arith.constant 0 : i32
    %c0_i32_1 = arith.constant 0 : i32
    return %arg0, %c0_i32, %c0_i32_0 : i32, i32, i32
  }
  func.func @transform_1(%arg0: i32) -> (i32, i32, i32) {
    %c0_i32 = arith.constant 0 : i32
    %c0_i32_0 = arith.constant 0 : i32
    %c0_i32_1 = arith.constant 0 : i32
    %c0_i32_2 = arith.constant 0 : i32
    return %c0_i32, %c0_i32_0, %c0_i32_1 : i32, i32, i32
  }
  func.func @transform_2(%arg0: i32) -> (i32, i32, i32) {
    %c0_i32 = arith.constant 0 : i32
    %c0_i32_0 = arith.constant 0 : i32
    %c0_i32_1 = arith.constant 0 : i32
    return %arg0, %c0_i32, %c0_i32_0 : i32, i32, i32
  }
}

module attributes {stable_mosaic.version = 11 : i64} {
  func.func @_conv_bn_act_kernel(%arg0: i32, %arg1: memref<2x88x128xbf16, #tpu.memory_space<vmem>>, %arg2: memref<4x128x64xbf16, #tpu.memory_space<vmem>>, %arg3: memref<1x64xf32, #tpu.memory_space<vmem>>, %arg4: memref<1x64xf32, #tpu.memory_space<vmem>>, %arg5: memref<2x72x64xbf16, #tpu.memory_space<vmem>>, %arg6: memref<2x72x64xf32, #tpu.memory_space<vmem>>) attributes {dimension_semantics = [#tpu.dimension_semantics<arbitrary>], iteration_bounds = array<i64: 1>, scalar_prefetch = 0 : i64, scratch_operands = 1 : i64, tpu.core_type = #tpu.core_type<tc>, window_params = [{pipeline_mode = #tpu.pipeline_mode<synchronous>, transform_indices = @transform_0, window_bounds = array<i64: 2, 88, 128>}, {pipeline_mode = #tpu.pipeline_mode<synchronous>, transform_indices = @transform_1, window_bounds = array<i64: 4, 128, 64>}, {pipeline_mode = #tpu.pipeline_mode<synchronous>, transform_indices = @transform_2, window_bounds = array<i64: 1, 64>}, {pipeline_mode = #tpu.pipeline_mode<synchronous>, transform_indices = @transform_3, window_bounds = array<i64: 1, 64>}, {pipeline_mode = #tpu.pipeline_mode<synchronous>, transform_indices = @transform_4, window_bounds = array<i64: 2, 72, 64>}]} {
    %0 = tpu.iota {dimensions = array<i32: 0>} : vector<72x1xi32>
    %c9_i32 = arith.constant 9 : i32
    %c0_i32 = arith.constant 0 : i32
    %1 = arith.cmpi eq, %c9_i32, %c0_i32 : i32
    %c1_i32 = arith.constant 1 : i32
    %2 = arith.select %1, %c1_i32, %c9_i32 : i32
    %3 = vector.broadcast %2 : i32 to vector<72x1xi32>
    %4 = arith.remsi %0, %3 : vector<72x1xi32>
    %c0_i32_0 = arith.constant 0 : i32
    %5 = vector.broadcast %c0_i32_0 : i32 to vector<72x1xi32>
    %6 = arith.cmpi ne, %4, %5 : vector<72x1xi32>
    %c0_i32_1 = arith.constant 0 : i32
    %7 = vector.broadcast %c0_i32_1 : i32 to vector<72x1xi32>
    %8 = arith.cmpi slt, %4, %7 : vector<72x1xi32>
    %c0_i32_2 = arith.constant 0 : i32
    %9 = arith.cmpi slt, %2, %c0_i32_2 : i32
    %10 = vector.broadcast %9 : i1 to vector<72x1xi1>
    %11 = vector.broadcast %10 : vector<72x1xi1> to vector<72x1xi1>
    %12 = arith.xori %8, %11 : vector<72x1xi1>
    %13 = arith.andi %12, %6 : vector<72x1xi1>
    %14 = vector.broadcast %2 : i32 to vector<72x1xi32>
    %15 = arith.addi %4, %14 : vector<72x1xi32>
    %16 = arith.select %13, %15, %4 : vector<72x1xi1>, vector<72x1xi32>
    %c8_i32 = arith.constant 8 : i32
    %17 = vector.broadcast %c8_i32 : i32 to vector<72x1xi32>
    %18 = arith.cmpi slt, %16, %17 : vector<72x1xi32>
    %c72_i32 = arith.constant 72 : i32
    %19 = vector.broadcast %c72_i32 : i32 to vector<72x1xi32>
    %20 = arith.cmpi slt, %0, %19 : vector<72x1xi32>
    %21 = arith.andi %18, %20 : vector<72x1xi1>
    %22 = arith.extui %21 : vector<72x1xi1> to vector<72x1xi32>
    %23 = arith.sitofp %22 : vector<72x1xi32> to vector<72x1xf32>
    %cst = arith.constant 0.000000e+00 : f32
    %24 = vector.broadcast %cst : f32 to vector<1x64xf32>
    %cst_3 = arith.constant 0.000000e+00 : f32
    %25 = vector.broadcast %cst_3 : f32 to vector<1x64xf32>
    %cst_4 = arith.constant 0.000000e+00 : f32
    %26 = vector.broadcast %cst_4 : f32 to vector<72x64xf32>
    %c0 = arith.constant 0 : index
    %c0_5 = arith.constant 0 : index
    %c0_6 = arith.constant 0 : index
    %27 = vector.load %arg1[%c0, %c0_5, %c0_6] : memref<2x88x128xbf16, #tpu.memory_space<vmem>>, vector<1x72x128xbf16>
    %28 = vector.shape_cast %27 : vector<1x72x128xbf16> to vector<72x128xbf16>
    %c0_7 = arith.constant 0 : index
    %c0_8 = arith.constant 0 : index
    %c0_9 = arith.constant 0 : index
    %29 = vector.load %arg2[%c0_7, %c0_8, %c0_9] : memref<4x128x64xbf16, #tpu.memory_space<vmem>>, vector<1x128x64xbf16>
    %30 = vector.shape_cast %29 : vector<1x128x64xbf16> to vector<128x64xbf16>
    %cst_10 = arith.constant dense<0.000000e+00> : vector<72x64xf32>
    %31 = tpu.matmul %28, %30, %cst_10 {dimension_numbers = #tpu.dot_dimension_numbers<[1], [0], [0], [1], [0, 0, 1, 1], [], []>} : vector<72x128xbf16>, vector<128x64xbf16>, vector<72x64xf32> -> vector<72x64xf32>
    %32 = arith.addf %26, %31 : vector<72x64xf32>
    %c0_11 = arith.constant 0 : index
    %c1 = arith.constant 1 : index
    %c0_12 = arith.constant 0 : index
    %33 = vector.load %arg1[%c0_11, %c1, %c0_12] : memref<2x88x128xbf16, #tpu.memory_space<vmem>>, vector<1x72x128xbf16>
    %34 = vector.shape_cast %33 : vector<1x72x128xbf16> to vector<72x128xbf16>
    %c1_13 = arith.constant 1 : index
    %c0_14 = arith.constant 0 : index
    %c0_15 = arith.constant 0 : index
    %35 = vector.load %arg2[%c1_13, %c0_14, %c0_15] : memref<4x128x64xbf16, #tpu.memory_space<vmem>>, vector<1x128x64xbf16>
    %36 = vector.shape_cast %35 : vector<1x128x64xbf16> to vector<128x64xbf16>
    %cst_16 = arith.constant dense<0.000000e+00> : vector<72x64xf32>
    %37 = tpu.matmul %34, %36, %cst_16 {dimension_numbers = #tpu.dot_dimension_numbers<[1], [0], [0], [1], [0, 0, 1, 1], [], []>} : vector<72x128xbf16>, vector<128x64xbf16>, vector<72x64xf32> -> vector<72x64xf32>
    %38 = arith.addf %32, %37 : vector<72x64xf32>
    %c0_17 = arith.constant 0 : index
    %c9 = arith.constant 9 : index
    %c0_18 = arith.constant 0 : index
    %39 = vector.load %arg1[%c0_17, %c9, %c0_18] : memref<2x88x128xbf16, #tpu.memory_space<vmem>>, vector<1x72x128xbf16>
    %40 = vector.shape_cast %39 : vector<1x72x128xbf16> to vector<72x128xbf16>
    %c2 = arith.constant 2 : index
    %c0_19 = arith.constant 0 : index
    %c0_20 = arith.constant 0 : index
    %41 = vector.load %arg2[%c2, %c0_19, %c0_20] : memref<4x128x64xbf16, #tpu.memory_space<vmem>>, vector<1x128x64xbf16>
    %42 = vector.shape_cast %41 : vector<1x128x64xbf16> to vector<128x64xbf16>
    %cst_21 = arith.constant dense<0.000000e+00> : vector<72x64xf32>
    %43 = tpu.matmul %40, %42, %cst_21 {dimension_numbers = #tpu.dot_dimension_numbers<[1], [0], [0], [1], [0, 0, 1, 1], [], []>} : vector<72x128xbf16>, vector<128x64xbf16>, vector<72x64xf32> -> vector<72x64xf32>
    %44 = arith.addf %38, %43 : vector<72x64xf32>
    %c0_22 = arith.constant 0 : index
    %c10 = arith.constant 10 : index
    %c0_23 = arith.constant 0 : index
    %45 = vector.load %arg1[%c0_22, %c10, %c0_23] : memref<2x88x128xbf16, #tpu.memory_space<vmem>>, vector<1x72x128xbf16>
    %46 = vector.shape_cast %45 : vector<1x72x128xbf16> to vector<72x128xbf16>
    %c3 = arith.constant 3 : index
    %c0_24 = arith.constant 0 : index
    %c0_25 = arith.constant 0 : index
    %47 = vector.load %arg2[%c3, %c0_24, %c0_25] : memref<4x128x64xbf16, #tpu.memory_space<vmem>>, vector<1x128x64xbf16>
    %48 = vector.shape_cast %47 : vector<1x128x64xbf16> to vector<128x64xbf16>
    %cst_26 = arith.constant dense<0.000000e+00> : vector<72x64xf32>
    %49 = tpu.matmul %46, %48, %cst_26 {dimension_numbers = #tpu.dot_dimension_numbers<[1], [0], [0], [1], [0, 0, 1, 1], [], []>} : vector<72x128xbf16>, vector<128x64xbf16>, vector<72x64xf32> -> vector<72x64xf32>
    %50 = arith.addf %44, %49 : vector<72x64xf32>
    %c0_27 = arith.constant 0 : index
    %c0_28 = arith.constant 0 : index
    %c0_29 = arith.constant 0 : index
    %51 = vector.load %arg6[%c0_27, %c0_28, %c0_29] : memref<2x72x64xf32, #tpu.memory_space<vmem>>, vector<1x72x64xf32>
    %52 = vector.shape_cast %51 : vector<1x72x64xf32> to vector<72x64xf32>
    %53 = vector.shape_cast %50 : vector<72x64xf32> to vector<1x72x64xf32>
    tpu.vector_store %arg6[%c0_27, %c0_28, %c0_29], %53 {strides = array<i32>} : memref<2x72x64xf32, #tpu.memory_space<vmem>>, vector<1x72x64xf32>,
    %54 = vector.broadcast %23 : vector<72x1xf32> to vector<72x64xf32>
    %55 = arith.mulf %50, %54 : vector<72x64xf32>
    %cst_30 = arith.constant dense<0.000000e+00> : vector<64xf32>
    %56 = vector.multi_reduction <add>, %55, %cst_30 [0] : vector<72x64xf32> to vector<64xf32>
    %57 = vector.shape_cast %56 : vector<64xf32> to vector<1x64xf32>
    %58 = arith.addf %24, %57 : vector<1x64xf32>
    %59 = arith.mulf %55, %50 : vector<72x64xf32>
    %cst_31 = arith.constant dense<0.000000e+00> : vector<64xf32>
    %60 = vector.multi_reduction <add>, %59, %cst_31 [0] : vector<72x64xf32> to vector<64xf32>
    %61 = vector.shape_cast %60 : vector<64xf32> to vector<1x64xf32>
    %62 = arith.addf %25, %61 : vector<1x64xf32>
    %cst_32 = arith.constant 0.000000e+00 : f32
    %63 = vector.broadcast %cst_32 : f32 to vector<72x64xf32>
    %c1_33 = arith.constant 1 : index
    %c0_34 = arith.constant 0 : index
    %c0_35 = arith.constant 0 : index
    %64 = vector.load %arg1[%c1_33, %c0_34, %c0_35] : memref<2x88x128xbf16, #tpu.memory_space<vmem>>, vector<1x72x128xbf16>
    %65 = vector.shape_cast %64 : vector<1x72x128xbf16> to vector<72x128xbf16>
    %c0_36 = arith.constant 0 : index
    %c0_37 = arith.constant 0 : index
    %c0_38 = arith.constant 0 : index
    %66 = vector.load %arg2[%c0_36, %c0_37, %c0_38] : memref<4x128x64xbf16, #tpu.memory_space<vmem>>, vector<1x128x64xbf16>
    %67 = vector.shape_cast %66 : vector<1x128x64xbf16> to vector<128x64xbf16>
    %cst_39 = arith.constant dense<0.000000e+00> : vector<72x64xf32>
    %68 = tpu.matmul %65, %67, %cst_39 {dimension_numbers = #tpu.dot_dimension_numbers<[1], [0], [0], [1], [0, 0, 1, 1], [], []>} : vector<72x128xbf16>, vector<128x64xbf16>, vector<72x64xf32> -> vector<72x64xf32>
    %69 = arith.addf %63, %68 : vector<72x64xf32>
    %c1_40 = arith.constant 1 : index
    %c1_41 = arith.constant 1 : index
    %c0_42 = arith.constant 0 : index
    %70 = vector.load %arg1[%c1_40, %c1_41, %c0_42] : memref<2x88x128xbf16, #tpu.memory_space<vmem>>, vector<1x72x128xbf16>
    %71 = vector.shape_cast %70 : vector<1x72x128xbf16> to vector<72x128xbf16>
    %c1_43 = arith.constant 1 : index
    %c0_44 = arith.constant 0 : index
    %c0_45 = arith.constant 0 : index
    %72 = vector.load %arg2[%c1_43, %c0_44, %c0_45] : memref<4x128x64xbf16, #tpu.memory_space<vmem>>, vector<1x128x64xbf16>
    %73 = vector.shape_cast %72 : vector<1x128x64xbf16> to vector<128x64xbf16>
    %cst_46 = arith.constant dense<0.000000e+00> : vector<72x64xf32>
    %74 = tpu.matmul %71, %73, %cst_46 {dimension_numbers = #tpu.dot_dimension_numbers<[1], [0], [0], [1], [0, 0, 1, 1], [], []>} : vector<72x128xbf16>, vector<128x64xbf16>, vector<72x64xf32> -> vector<72x64xf32>
    %75 = arith.addf %69, %74 : vector<72x64xf32>
    %c1_47 = arith.constant 1 : index
    %c9_48 = arith.constant 9 : index
    %c0_49 = arith.constant 0 : index
    %76 = vector.load %arg1[%c1_47, %c9_48, %c0_49] : memref<2x88x128xbf16, #tpu.memory_space<vmem>>, vector<1x72x128xbf16>
    %77 = vector.shape_cast %76 : vector<1x72x128xbf16> to vector<72x128xbf16>
    %c2_50 = arith.constant 2 : index
    %c0_51 = arith.constant 0 : index
    %c0_52 = arith.constant 0 : index
    %78 = vector.load %arg2[%c2_50, %c0_51, %c0_52] : memref<4x128x64xbf16, #tpu.memory_space<vmem>>, vector<1x128x64xbf16>
    %79 = vector.shape_cast %78 : vector<1x128x64xbf16> to vector<128x64xbf16>
    %cst_53 = arith.constant dense<0.000000e+00> : vector<72x64xf32>
    %80 = tpu.matmul %77, %79, %cst_53 {dimension_numbers = #tpu.dot_dimension_numbers<[1], [0], [0], [1], [0, 0, 1, 1], [], []>} : vector<72x128xbf16>, vector<128x64xbf16>, vector<72x64xf32> -> vector<72x64xf32>
    %81 = arith.addf %75, %80 : vector<72x64xf32>
    %c1_54 = arith.constant 1 : index
    %c10_55 = arith.constant 10 : index
    %c0_56 = arith.constant 0 : index
    %82 = vector.load %arg1[%c1_54, %c10_55, %c0_56] : memref<2x88x128xbf16, #tpu.memory_space<vmem>>, vector<1x72x128xbf16>
    %83 = vector.shape_cast %82 : vector<1x72x128xbf16> to vector<72x128xbf16>
    %c3_57 = arith.constant 3 : index
    %c0_58 = arith.constant 0 : index
    %c0_59 = arith.constant 0 : index
    %84 = vector.load %arg2[%c3_57, %c0_58, %c0_59] : memref<4x128x64xbf16, #tpu.memory_space<vmem>>, vector<1x128x64xbf16>
    %85 = vector.shape_cast %84 : vector<1x128x64xbf16> to vector<128x64xbf16>
    %cst_60 = arith.constant dense<0.000000e+00> : vector<72x64xf32>
    %86 = tpu.matmul %83, %85, %cst_60 {dimension_numbers = #tpu.dot_dimension_numbers<[1], [0], [0], [1], [0, 0, 1, 1], [], []>} : vector<72x128xbf16>, vector<128x64xbf16>, vector<72x64xf32> -> vector<72x64xf32>
    %87 = arith.addf %81, %86 : vector<72x64xf32>
    %c1_61 = arith.constant 1 : index
    %c0_62 = arith.constant 0 : index
    %c0_63 = arith.constant 0 : index
    %88 = vector.load %arg6[%c1_61, %c0_62, %c0_63] : memref<2x72x64xf32, #tpu.memory_space<vmem>>, vector<1x72x64xf32>
    %89 = vector.shape_cast %88 : vector<1x72x64xf32> to vector<72x64xf32>
    %90 = vector.shape_cast %87 : vector<72x64xf32> to vector<1x72x64xf32>
    tpu.vector_store %arg6[%c1_61, %c0_62, %c0_63], %90 {strides = array<i32>} : memref<2x72x64xf32, #tpu.memory_space<vmem>>, vector<1x72x64xf32>,
    %91 = vector.broadcast %23 : vector<72x1xf32> to vector<72x64xf32>
    %92 = arith.mulf %87, %91 : vector<72x64xf32>
    %cst_64 = arith.constant dense<0.000000e+00> : vector<64xf32>
    %93 = vector.multi_reduction <add>, %92, %cst_64 [0] : vector<72x64xf32> to vector<64xf32>
    %94 = vector.shape_cast %93 : vector<64xf32> to vector<1x64xf32>
    %95 = arith.addf %58, %94 : vector<1x64xf32>
    %96 = arith.mulf %92, %87 : vector<72x64xf32>
    %cst_65 = arith.constant dense<0.000000e+00> : vector<64xf32>
    %97 = vector.multi_reduction <add>, %96, %cst_65 [0] : vector<72x64xf32> to vector<64xf32>
    %98 = vector.shape_cast %97 : vector<64xf32> to vector<1x64xf32>
    %99 = arith.addf %62, %98 : vector<1x64xf32>
    %cst_66 = arith.constant 1.280000e+02 : f32
    %100 = vector.broadcast %cst_66 : f32 to vector<1x64xf32>
    %101 = arith.divf %95, %100 : vector<1x64xf32>
    %cst_67 = arith.constant 1.280000e+02 : f32
    %102 = vector.broadcast %cst_67 : f32 to vector<1x64xf32>
    %103 = arith.divf %99, %102 : vector<1x64xf32>
    %104 = arith.mulf %101, %101 : vector<1x64xf32>
    %105 = arith.subf %103, %104 : vector<1x64xf32>
    %cst_68 = arith.constant 0.000000e+00 : f32
    %106 = vector.broadcast %cst_68 : f32 to vector<1x64xf32>
    %107 = arith.maximumf %105, %106 : vector<1x64xf32>
    %c0_69 = arith.constant 0 : index
    %c0_70 = arith.constant 0 : index
    %108 = vector.load %arg3[%c0_69, %c0_70] : memref<1x64xf32, #tpu.memory_space<vmem>>, vector<1x64xf32>
    %cst_71 = arith.constant 9.99999974E-6 : f32
    %109 = vector.broadcast %cst_71 : f32 to vector<1x64xf32>
    %110 = arith.addf %107, %109 : vector<1x64xf32>
    %111 = math.rsqrt %110 : vector<1x64xf32>
    %112 = arith.mulf %108, %111 : vector<1x64xf32>
    %c0_72 = arith.constant 0 : index
    %c0_73 = arith.constant 0 : index
    %113 = vector.load %arg4[%c0_72, %c0_73] : memref<1x64xf32, #tpu.memory_space<vmem>>, vector<1x64xf32>
    %114 = arith.mulf %101, %112 : vector<1x64xf32>
    %115 = arith.subf %113, %114 : vector<1x64xf32>
    %c0_74 = arith.constant 0 : index
    %c0_75 = arith.constant 0 : index
    %c0_76 = arith.constant 0 : index
    %116 = vector.load %arg6[%c0_74, %c0_75, %c0_76] : memref<2x72x64xf32, #tpu.memory_space<vmem>>, vector<1x72x64xf32>
    %117 = vector.shape_cast %116 : vector<1x72x64xf32> to vector<72x64xf32>
    %118 = vector.broadcast %112 : vector<1x64xf32> to vector<72x64xf32>
    %119 = arith.mulf %117, %118 : vector<72x64xf32>
    %120 = vector.broadcast %115 : vector<1x64xf32> to vector<72x64xf32>
    %121 = arith.addf %119, %120 : vector<72x64xf32>
    %cst_77 = arith.constant 0.000000e+00 : f32
    %122 = vector.broadcast %cst_77 : f32 to vector<72x64xf32>
    %123 = arith.cmpf oge, %121, %122 : vector<72x64xf32>
    %cst_78 = arith.constant 2.000000e-01 : f32
    %124 = vector.broadcast %cst_78 : f32 to vector<72x64xf32>
    %125 = arith.mulf %124, %121 : vector<72x64xf32>
    %126 = arith.select %123, %121, %125 : vector<72x64xi1>, vector<72x64xf32>
    %127 = arith.truncf %126 : vector<72x64xf32> to vector<72x64xbf16>
    %c0_79 = arith.constant 0 : index
    %c0_80 = arith.constant 0 : index
    %c0_81 = arith.constant 0 : index
    %128 = vector.load %arg5[%c0_79, %c0_80, %c0_81] : memref<2x72x64xbf16, #tpu.memory_space<vmem>>, vector<1x72x64xbf16>
    %129 = vector.shape_cast %128 : vector<1x72x64xbf16> to vector<72x64xbf16>
    %130 = vector.shape_cast %127 : vector<72x64xbf16> to vector<1x72x64xbf16>
    tpu.vector_store %arg5[%c0_79, %c0_80, %c0_81], %130 {strides = array<i32>} : memref<2x72x64xbf16, #tpu.memory_space<vmem>>, vector<1x72x64xbf16>,
    %c1_82 = arith.constant 1 : index
    %c0_83 = arith.constant 0 : index
    %c0_84 = arith.constant 0 : index
    %131 = vector.load %arg6[%c1_82, %c0_83, %c0_84] : memref<2x72x64xf32, #tpu.memory_space<vmem>>, vector<1x72x64xf32>
    %132 = vector.shape_cast %131 : vector<1x72x64xf32> to vector<72x64xf32>
    %133 = vector.broadcast %112 : vector<1x64xf32> to vector<72x64xf32>
    %134 = arith.mulf %132, %133 : vector<72x64xf32>
    %135 = vector.broadcast %115 : vector<1x64xf32> to vector<72x64xf32>
    %136 = arith.addf %134, %135 : vector<72x64xf32>
    %cst_85 = arith.constant 0.000000e+00 : f32
    %137 = vector.broadcast %cst_85 : f32 to vector<72x64xf32>
    %138 = arith.cmpf oge, %136, %137 : vector<72x64xf32>
    %cst_86 = arith.constant 2.000000e-01 : f32
    %139 = vector.broadcast %cst_86 : f32 to vector<72x64xf32>
    %140 = arith.mulf %139, %136 : vector<72x64xf32>
    %141 = arith.select %138, %136, %140 : vector<72x64xi1>, vector<72x64xf32>
    %142 = arith.truncf %141 : vector<72x64xf32> to vector<72x64xbf16>
    %c1_87 = arith.constant 1 : index
    %c0_88 = arith.constant 0 : index
    %c0_89 = arith.constant 0 : index
    %143 = vector.load %arg5[%c1_87, %c0_88, %c0_89] : memref<2x72x64xbf16, #tpu.memory_space<vmem>>, vector<1x72x64xbf16>
    %144 = vector.shape_cast %143 : vector<1x72x64xbf16> to vector<72x64xbf16>
    %145 = vector.shape_cast %142 : vector<72x64xbf16> to vector<1x72x64xbf16>
    tpu.vector_store %arg5[%c1_87, %c0_88, %c0_89], %145 {strides = array<i32>} : memref<2x72x64xbf16, #tpu.memory_space<vmem>>, vector<1x72x64xbf16>,
    return
  }
  func.func @transform_0(%arg0: i32) -> (i32, i32, i32) {
    %c0_i32 = arith.constant 0 : i32
    %c0_i32_0 = arith.constant 0 : i32
    %c0_i32_1 = arith.constant 0 : i32
    %c0_i32_2 = arith.constant 0 : i32
    return %c0_i32, %c0_i32_0, %c0_i32_1 : i32, i32, i32
  }
  func.func @transform_1(%arg0: i32) -> (i32, i32, i32) {
    %c0_i32 = arith.constant 0 : i32
    %c0_i32_0 = arith.constant 0 : i32
    %c0_i32_1 = arith.constant 0 : i32
    %c0_i32_2 = arith.constant 0 : i32
    return %c0_i32, %c0_i32_0, %c0_i32_1 : i32, i32, i32
  }
  func.func @transform_2(%arg0: i32) -> (i32, i32) {
    %c0_i32 = arith.constant 0 : i32
    %c0_i32_0 = arith.constant 0 : i32
    %c0_i32_1 = arith.constant 0 : i32
    return %c0_i32, %c0_i32_0 : i32, i32
  }
  func.func @transform_3(%arg0: i32) -> (i32, i32) {
    %c0_i32 = arith.constant 0 : i32
    %c0_i32_0 = arith.constant 0 : i32
    %c0_i32_1 = arith.constant 0 : i32
    return %c0_i32, %c0_i32_0 : i32, i32
  }
  func.func @transform_4(%arg0: i32) -> (i32, i32, i32) {
    %c0_i32 = arith.constant 0 : i32
    %c0_i32_0 = arith.constant 0 : i32
    %c0_i32_1 = arith.constant 0 : i32
    %c0_i32_2 = arith.constant 0 : i32
    return %c0_i32, %c0_i32_0, %c0_i32_1 : i32, i32, i32
  }
}

module attributes {stable_mosaic.version = 11 : i64} {
  func.func @_conv_bn_act_kernel(%arg0: i32, %arg1: memref<2x32x256xbf16, #tpu.memory_space<vmem>>, %arg2: memref<4x256x128xbf16, #tpu.memory_space<vmem>>, %arg3: memref<1x128xf32, #tpu.memory_space<vmem>>, %arg4: memref<1x128xf32, #tpu.memory_space<vmem>>, %arg5: memref<2x24x128xbf16, #tpu.memory_space<vmem>>, %arg6: memref<2x24x128xf32, #tpu.memory_space<vmem>>) attributes {dimension_semantics = [#tpu.dimension_semantics<arbitrary>], iteration_bounds = array<i64: 1>, scalar_prefetch = 0 : i64, scratch_operands = 1 : i64, tpu.core_type = #tpu.core_type<tc>, window_params = [{pipeline_mode = #tpu.pipeline_mode<synchronous>, transform_indices = @transform_0, window_bounds = array<i64: 2, 32, 256>}, {pipeline_mode = #tpu.pipeline_mode<synchronous>, transform_indices = @transform_1, window_bounds = array<i64: 4, 256, 128>}, {pipeline_mode = #tpu.pipeline_mode<synchronous>, transform_indices = @transform_2, window_bounds = array<i64: 1, 128>}, {pipeline_mode = #tpu.pipeline_mode<synchronous>, transform_indices = @transform_3, window_bounds = array<i64: 1, 128>}, {pipeline_mode = #tpu.pipeline_mode<synchronous>, transform_indices = @transform_4, window_bounds = array<i64: 2, 24, 128>}]} {
    %0 = tpu.iota {dimensions = array<i32: 0>} : vector<24x1xi32>
    %c5_i32 = arith.constant 5 : i32
    %c0_i32 = arith.constant 0 : i32
    %1 = arith.cmpi eq, %c5_i32, %c0_i32 : i32
    %c1_i32 = arith.constant 1 : i32
    %2 = arith.select %1, %c1_i32, %c5_i32 : i32
    %3 = vector.broadcast %2 : i32 to vector<24x1xi32>
    %4 = arith.remsi %0, %3 : vector<24x1xi32>
    %c0_i32_0 = arith.constant 0 : i32
    %5 = vector.broadcast %c0_i32_0 : i32 to vector<24x1xi32>
    %6 = arith.cmpi ne, %4, %5 : vector<24x1xi32>
    %c0_i32_1 = arith.constant 0 : i32
    %7 = vector.broadcast %c0_i32_1 : i32 to vector<24x1xi32>
    %8 = arith.cmpi slt, %4, %7 : vector<24x1xi32>
    %c0_i32_2 = arith.constant 0 : i32
    %9 = arith.cmpi slt, %2, %c0_i32_2 : i32
    %10 = vector.broadcast %9 : i1 to vector<24x1xi1>
    %11 = vector.broadcast %10 : vector<24x1xi1> to vector<24x1xi1>
    %12 = arith.xori %8, %11 : vector<24x1xi1>
    %13 = arith.andi %12, %6 : vector<24x1xi1>
    %14 = vector.broadcast %2 : i32 to vector<24x1xi32>
    %15 = arith.addi %4, %14 : vector<24x1xi32>
    %16 = arith.select %13, %15, %4 : vector<24x1xi1>, vector<24x1xi32>
    %c4_i32 = arith.constant 4 : i32
    %17 = vector.broadcast %c4_i32 : i32 to vector<24x1xi32>
    %18 = arith.cmpi slt, %16, %17 : vector<24x1xi32>
    %c20_i32 = arith.constant 20 : i32
    %19 = vector.broadcast %c20_i32 : i32 to vector<24x1xi32>
    %20 = arith.cmpi slt, %0, %19 : vector<24x1xi32>
    %21 = arith.andi %18, %20 : vector<24x1xi1>
    %22 = arith.extui %21 : vector<24x1xi1> to vector<24x1xi32>
    %23 = arith.sitofp %22 : vector<24x1xi32> to vector<24x1xf32>
    %cst = arith.constant 0.000000e+00 : f32
    %24 = vector.broadcast %cst : f32 to vector<1x128xf32>
    %cst_3 = arith.constant 0.000000e+00 : f32
    %25 = vector.broadcast %cst_3 : f32 to vector<1x128xf32>
    %cst_4 = arith.constant 0.000000e+00 : f32
    %26 = vector.broadcast %cst_4 : f32 to vector<24x128xf32>
    %c0 = arith.constant 0 : index
    %c0_5 = arith.constant 0 : index
    %c0_6 = arith.constant 0 : index
    %27 = vector.load %arg1[%c0, %c0_5, %c0_6] : memref<2x32x256xbf16, #tpu.memory_space<vmem>>, vector<1x24x256xbf16>
    %28 = vector.shape_cast %27 : vector<1x24x256xbf16> to vector<24x256xbf16>
    %c0_7 = arith.constant 0 : index
    %c0_8 = arith.constant 0 : index
    %c0_9 = arith.constant 0 : index
    %29 = vector.load %arg2[%c0_7, %c0_8, %c0_9] : memref<4x256x128xbf16, #tpu.memory_space<vmem>>, vector<1x256x128xbf16>
    %30 = vector.shape_cast %29 : vector<1x256x128xbf16> to vector<256x128xbf16>
    %cst_10 = arith.constant dense<0.000000e+00> : vector<24x128xf32>
    %31 = tpu.matmul %28, %30, %cst_10 {dimension_numbers = #tpu.dot_dimension_numbers<[1], [0], [0], [1], [0, 0, 1, 1], [], []>} : vector<24x256xbf16>, vector<256x128xbf16>, vector<24x128xf32> -> vector<24x128xf32>
    %32 = arith.addf %26, %31 : vector<24x128xf32>
    %c0_11 = arith.constant 0 : index
    %c1 = arith.constant 1 : index
    %c0_12 = arith.constant 0 : index
    %33 = vector.load %arg1[%c0_11, %c1, %c0_12] : memref<2x32x256xbf16, #tpu.memory_space<vmem>>, vector<1x24x256xbf16>
    %34 = vector.shape_cast %33 : vector<1x24x256xbf16> to vector<24x256xbf16>
    %c1_13 = arith.constant 1 : index
    %c0_14 = arith.constant 0 : index
    %c0_15 = arith.constant 0 : index
    %35 = vector.load %arg2[%c1_13, %c0_14, %c0_15] : memref<4x256x128xbf16, #tpu.memory_space<vmem>>, vector<1x256x128xbf16>
    %36 = vector.shape_cast %35 : vector<1x256x128xbf16> to vector<256x128xbf16>
    %cst_16 = arith.constant dense<0.000000e+00> : vector<24x128xf32>
    %37 = tpu.matmul %34, %36, %cst_16 {dimension_numbers = #tpu.dot_dimension_numbers<[1], [0], [0], [1], [0, 0, 1, 1], [], []>} : vector<24x256xbf16>, vector<256x128xbf16>, vector<24x128xf32> -> vector<24x128xf32>
    %38 = arith.addf %32, %37 : vector<24x128xf32>
    %c0_17 = arith.constant 0 : index
    %c5 = arith.constant 5 : index
    %c0_18 = arith.constant 0 : index
    %39 = vector.load %arg1[%c0_17, %c5, %c0_18] : memref<2x32x256xbf16, #tpu.memory_space<vmem>>, vector<1x24x256xbf16>
    %40 = vector.shape_cast %39 : vector<1x24x256xbf16> to vector<24x256xbf16>
    %c2 = arith.constant 2 : index
    %c0_19 = arith.constant 0 : index
    %c0_20 = arith.constant 0 : index
    %41 = vector.load %arg2[%c2, %c0_19, %c0_20] : memref<4x256x128xbf16, #tpu.memory_space<vmem>>, vector<1x256x128xbf16>
    %42 = vector.shape_cast %41 : vector<1x256x128xbf16> to vector<256x128xbf16>
    %cst_21 = arith.constant dense<0.000000e+00> : vector<24x128xf32>
    %43 = tpu.matmul %40, %42, %cst_21 {dimension_numbers = #tpu.dot_dimension_numbers<[1], [0], [0], [1], [0, 0, 1, 1], [], []>} : vector<24x256xbf16>, vector<256x128xbf16>, vector<24x128xf32> -> vector<24x128xf32>
    %44 = arith.addf %38, %43 : vector<24x128xf32>
    %c0_22 = arith.constant 0 : index
    %c6 = arith.constant 6 : index
    %c0_23 = arith.constant 0 : index
    %45 = vector.load %arg1[%c0_22, %c6, %c0_23] : memref<2x32x256xbf16, #tpu.memory_space<vmem>>, vector<1x24x256xbf16>
    %46 = vector.shape_cast %45 : vector<1x24x256xbf16> to vector<24x256xbf16>
    %c3 = arith.constant 3 : index
    %c0_24 = arith.constant 0 : index
    %c0_25 = arith.constant 0 : index
    %47 = vector.load %arg2[%c3, %c0_24, %c0_25] : memref<4x256x128xbf16, #tpu.memory_space<vmem>>, vector<1x256x128xbf16>
    %48 = vector.shape_cast %47 : vector<1x256x128xbf16> to vector<256x128xbf16>
    %cst_26 = arith.constant dense<0.000000e+00> : vector<24x128xf32>
    %49 = tpu.matmul %46, %48, %cst_26 {dimension_numbers = #tpu.dot_dimension_numbers<[1], [0], [0], [1], [0, 0, 1, 1], [], []>} : vector<24x256xbf16>, vector<256x128xbf16>, vector<24x128xf32> -> vector<24x128xf32>
    %50 = arith.addf %44, %49 : vector<24x128xf32>
    %c0_27 = arith.constant 0 : index
    %c0_28 = arith.constant 0 : index
    %c0_29 = arith.constant 0 : index
    %51 = vector.load %arg6[%c0_27, %c0_28, %c0_29] : memref<2x24x128xf32, #tpu.memory_space<vmem>>, vector<1x24x128xf32>
    %52 = vector.shape_cast %51 : vector<1x24x128xf32> to vector<24x128xf32>
    %53 = vector.shape_cast %50 : vector<24x128xf32> to vector<1x24x128xf32>
    tpu.vector_store %arg6[%c0_27, %c0_28, %c0_29], %53 {strides = array<i32>} : memref<2x24x128xf32, #tpu.memory_space<vmem>>, vector<1x24x128xf32>,
    %54 = vector.broadcast %23 : vector<24x1xf32> to vector<24x128xf32>
    %55 = arith.mulf %50, %54 : vector<24x128xf32>
    %cst_30 = arith.constant dense<0.000000e+00> : vector<128xf32>
    %56 = vector.multi_reduction <add>, %55, %cst_30 [0] : vector<24x128xf32> to vector<128xf32>
    %57 = vector.shape_cast %56 : vector<128xf32> to vector<1x128xf32>
    %58 = arith.addf %24, %57 : vector<1x128xf32>
    %59 = arith.mulf %55, %50 : vector<24x128xf32>
    %cst_31 = arith.constant dense<0.000000e+00> : vector<128xf32>
    %60 = vector.multi_reduction <add>, %59, %cst_31 [0] : vector<24x128xf32> to vector<128xf32>
    %61 = vector.shape_cast %60 : vector<128xf32> to vector<1x128xf32>
    %62 = arith.addf %25, %61 : vector<1x128xf32>
    %cst_32 = arith.constant 0.000000e+00 : f32
    %63 = vector.broadcast %cst_32 : f32 to vector<24x128xf32>
    %c1_33 = arith.constant 1 : index
    %c0_34 = arith.constant 0 : index
    %c0_35 = arith.constant 0 : index
    %64 = vector.load %arg1[%c1_33, %c0_34, %c0_35] : memref<2x32x256xbf16, #tpu.memory_space<vmem>>, vector<1x24x256xbf16>
    %65 = vector.shape_cast %64 : vector<1x24x256xbf16> to vector<24x256xbf16>
    %c0_36 = arith.constant 0 : index
    %c0_37 = arith.constant 0 : index
    %c0_38 = arith.constant 0 : index
    %66 = vector.load %arg2[%c0_36, %c0_37, %c0_38] : memref<4x256x128xbf16, #tpu.memory_space<vmem>>, vector<1x256x128xbf16>
    %67 = vector.shape_cast %66 : vector<1x256x128xbf16> to vector<256x128xbf16>
    %cst_39 = arith.constant dense<0.000000e+00> : vector<24x128xf32>
    %68 = tpu.matmul %65, %67, %cst_39 {dimension_numbers = #tpu.dot_dimension_numbers<[1], [0], [0], [1], [0, 0, 1, 1], [], []>} : vector<24x256xbf16>, vector<256x128xbf16>, vector<24x128xf32> -> vector<24x128xf32>
    %69 = arith.addf %63, %68 : vector<24x128xf32>
    %c1_40 = arith.constant 1 : index
    %c1_41 = arith.constant 1 : index
    %c0_42 = arith.constant 0 : index
    %70 = vector.load %arg1[%c1_40, %c1_41, %c0_42] : memref<2x32x256xbf16, #tpu.memory_space<vmem>>, vector<1x24x256xbf16>
    %71 = vector.shape_cast %70 : vector<1x24x256xbf16> to vector<24x256xbf16>
    %c1_43 = arith.constant 1 : index
    %c0_44 = arith.constant 0 : index
    %c0_45 = arith.constant 0 : index
    %72 = vector.load %arg2[%c1_43, %c0_44, %c0_45] : memref<4x256x128xbf16, #tpu.memory_space<vmem>>, vector<1x256x128xbf16>
    %73 = vector.shape_cast %72 : vector<1x256x128xbf16> to vector<256x128xbf16>
    %cst_46 = arith.constant dense<0.000000e+00> : vector<24x128xf32>
    %74 = tpu.matmul %71, %73, %cst_46 {dimension_numbers = #tpu.dot_dimension_numbers<[1], [0], [0], [1], [0, 0, 1, 1], [], []>} : vector<24x256xbf16>, vector<256x128xbf16>, vector<24x128xf32> -> vector<24x128xf32>
    %75 = arith.addf %69, %74 : vector<24x128xf32>
    %c1_47 = arith.constant 1 : index
    %c5_48 = arith.constant 5 : index
    %c0_49 = arith.constant 0 : index
    %76 = vector.load %arg1[%c1_47, %c5_48, %c0_49] : memref<2x32x256xbf16, #tpu.memory_space<vmem>>, vector<1x24x256xbf16>
    %77 = vector.shape_cast %76 : vector<1x24x256xbf16> to vector<24x256xbf16>
    %c2_50 = arith.constant 2 : index
    %c0_51 = arith.constant 0 : index
    %c0_52 = arith.constant 0 : index
    %78 = vector.load %arg2[%c2_50, %c0_51, %c0_52] : memref<4x256x128xbf16, #tpu.memory_space<vmem>>, vector<1x256x128xbf16>
    %79 = vector.shape_cast %78 : vector<1x256x128xbf16> to vector<256x128xbf16>
    %cst_53 = arith.constant dense<0.000000e+00> : vector<24x128xf32>
    %80 = tpu.matmul %77, %79, %cst_53 {dimension_numbers = #tpu.dot_dimension_numbers<[1], [0], [0], [1], [0, 0, 1, 1], [], []>} : vector<24x256xbf16>, vector<256x128xbf16>, vector<24x128xf32> -> vector<24x128xf32>
    %81 = arith.addf %75, %80 : vector<24x128xf32>
    %c1_54 = arith.constant 1 : index
    %c6_55 = arith.constant 6 : index
    %c0_56 = arith.constant 0 : index
    %82 = vector.load %arg1[%c1_54, %c6_55, %c0_56] : memref<2x32x256xbf16, #tpu.memory_space<vmem>>, vector<1x24x256xbf16>
    %83 = vector.shape_cast %82 : vector<1x24x256xbf16> to vector<24x256xbf16>
    %c3_57 = arith.constant 3 : index
    %c0_58 = arith.constant 0 : index
    %c0_59 = arith.constant 0 : index
    %84 = vector.load %arg2[%c3_57, %c0_58, %c0_59] : memref<4x256x128xbf16, #tpu.memory_space<vmem>>, vector<1x256x128xbf16>
    %85 = vector.shape_cast %84 : vector<1x256x128xbf16> to vector<256x128xbf16>
    %cst_60 = arith.constant dense<0.000000e+00> : vector<24x128xf32>
    %86 = tpu.matmul %83, %85, %cst_60 {dimension_numbers = #tpu.dot_dimension_numbers<[1], [0], [0], [1], [0, 0, 1, 1], [], []>} : vector<24x256xbf16>, vector<256x128xbf16>, vector<24x128xf32> -> vector<24x128xf32>
    %87 = arith.addf %81, %86 : vector<24x128xf32>
    %c1_61 = arith.constant 1 : index
    %c0_62 = arith.constant 0 : index
    %c0_63 = arith.constant 0 : index
    %88 = vector.load %arg6[%c1_61, %c0_62, %c0_63] : memref<2x24x128xf32, #tpu.memory_space<vmem>>, vector<1x24x128xf32>
    %89 = vector.shape_cast %88 : vector<1x24x128xf32> to vector<24x128xf32>
    %90 = vector.shape_cast %87 : vector<24x128xf32> to vector<1x24x128xf32>
    tpu.vector_store %arg6[%c1_61, %c0_62, %c0_63], %90 {strides = array<i32>} : memref<2x24x128xf32, #tpu.memory_space<vmem>>, vector<1x24x128xf32>,
    %91 = vector.broadcast %23 : vector<24x1xf32> to vector<24x128xf32>
    %92 = arith.mulf %87, %91 : vector<24x128xf32>
    %cst_64 = arith.constant dense<0.000000e+00> : vector<128xf32>
    %93 = vector.multi_reduction <add>, %92, %cst_64 [0] : vector<24x128xf32> to vector<128xf32>
    %94 = vector.shape_cast %93 : vector<128xf32> to vector<1x128xf32>
    %95 = arith.addf %58, %94 : vector<1x128xf32>
    %96 = arith.mulf %92, %87 : vector<24x128xf32>
    %cst_65 = arith.constant dense<0.000000e+00> : vector<128xf32>
    %97 = vector.multi_reduction <add>, %96, %cst_65 [0] : vector<24x128xf32> to vector<128xf32>
    %98 = vector.shape_cast %97 : vector<128xf32> to vector<1x128xf32>
    %99 = arith.addf %62, %98 : vector<1x128xf32>
    %cst_66 = arith.constant 3.200000e+01 : f32
    %100 = vector.broadcast %cst_66 : f32 to vector<1x128xf32>
    %101 = arith.divf %95, %100 : vector<1x128xf32>
    %cst_67 = arith.constant 3.200000e+01 : f32
    %102 = vector.broadcast %cst_67 : f32 to vector<1x128xf32>
    %103 = arith.divf %99, %102 : vector<1x128xf32>
    %104 = arith.mulf %101, %101 : vector<1x128xf32>
    %105 = arith.subf %103, %104 : vector<1x128xf32>
    %cst_68 = arith.constant 0.000000e+00 : f32
    %106 = vector.broadcast %cst_68 : f32 to vector<1x128xf32>
    %107 = arith.maximumf %105, %106 : vector<1x128xf32>
    %c0_69 = arith.constant 0 : index
    %c0_70 = arith.constant 0 : index
    %108 = vector.load %arg3[%c0_69, %c0_70] : memref<1x128xf32, #tpu.memory_space<vmem>>, vector<1x128xf32>
    %cst_71 = arith.constant 9.99999974E-6 : f32
    %109 = vector.broadcast %cst_71 : f32 to vector<1x128xf32>
    %110 = arith.addf %107, %109 : vector<1x128xf32>
    %111 = math.rsqrt %110 : vector<1x128xf32>
    %112 = arith.mulf %108, %111 : vector<1x128xf32>
    %c0_72 = arith.constant 0 : index
    %c0_73 = arith.constant 0 : index
    %113 = vector.load %arg4[%c0_72, %c0_73] : memref<1x128xf32, #tpu.memory_space<vmem>>, vector<1x128xf32>
    %114 = arith.mulf %101, %112 : vector<1x128xf32>
    %115 = arith.subf %113, %114 : vector<1x128xf32>
    %c0_74 = arith.constant 0 : index
    %c0_75 = arith.constant 0 : index
    %c0_76 = arith.constant 0 : index
    %116 = vector.load %arg6[%c0_74, %c0_75, %c0_76] : memref<2x24x128xf32, #tpu.memory_space<vmem>>, vector<1x24x128xf32>
    %117 = vector.shape_cast %116 : vector<1x24x128xf32> to vector<24x128xf32>
    %118 = vector.broadcast %112 : vector<1x128xf32> to vector<24x128xf32>
    %119 = arith.mulf %117, %118 : vector<24x128xf32>
    %120 = vector.broadcast %115 : vector<1x128xf32> to vector<24x128xf32>
    %121 = arith.addf %119, %120 : vector<24x128xf32>
    %cst_77 = arith.constant 0.000000e+00 : f32
    %122 = vector.broadcast %cst_77 : f32 to vector<24x128xf32>
    %123 = arith.cmpf oge, %121, %122 : vector<24x128xf32>
    %cst_78 = arith.constant 2.000000e-01 : f32
    %124 = vector.broadcast %cst_78 : f32 to vector<24x128xf32>
    %125 = arith.mulf %124, %121 : vector<24x128xf32>
    %126 = arith.select %123, %121, %125 : vector<24x128xi1>, vector<24x128xf32>
    %127 = arith.truncf %126 : vector<24x128xf32> to vector<24x128xbf16>
    %c0_79 = arith.constant 0 : index
    %c0_80 = arith.constant 0 : index
    %c0_81 = arith.constant 0 : index
    %128 = vector.load %arg5[%c0_79, %c0_80, %c0_81] : memref<2x24x128xbf16, #tpu.memory_space<vmem>>, vector<1x24x128xbf16>
    %129 = vector.shape_cast %128 : vector<1x24x128xbf16> to vector<24x128xbf16>
    %130 = vector.shape_cast %127 : vector<24x128xbf16> to vector<1x24x128xbf16>
    tpu.vector_store %arg5[%c0_79, %c0_80, %c0_81], %130 {strides = array<i32>} : memref<2x24x128xbf16, #tpu.memory_space<vmem>>, vector<1x24x128xbf16>,
    %c1_82 = arith.constant 1 : index
    %c0_83 = arith.constant 0 : index
    %c0_84 = arith.constant 0 : index
    %131 = vector.load %arg6[%c1_82, %c0_83, %c0_84] : memref<2x24x128xf32, #tpu.memory_space<vmem>>, vector<1x24x128xf32>
    %132 = vector.shape_cast %131 : vector<1x24x128xf32> to vector<24x128xf32>
    %133 = vector.broadcast %112 : vector<1x128xf32> to vector<24x128xf32>
    %134 = arith.mulf %132, %133 : vector<24x128xf32>
    %135 = vector.broadcast %115 : vector<1x128xf32> to vector<24x128xf32>
    %136 = arith.addf %134, %135 : vector<24x128xf32>
    %cst_85 = arith.constant 0.000000e+00 : f32
    %137 = vector.broadcast %cst_85 : f32 to vector<24x128xf32>
    %138 = arith.cmpf oge, %136, %137 : vector<24x128xf32>
    %cst_86 = arith.constant 2.000000e-01 : f32
    %139 = vector.broadcast %cst_86 : f32 to vector<24x128xf32>
    %140 = arith.mulf %139, %136 : vector<24x128xf32>
    %141 = arith.select %138, %136, %140 : vector<24x128xi1>, vector<24x128xf32>
    %142 = arith.truncf %141 : vector<24x128xf32> to vector<24x128xbf16>
    %c1_87 = arith.constant 1 : index
    %c0_88 = arith.constant 0 : index
    %c0_89 = arith.constant 0 : index
    %143 = vector.load %arg5[%c1_87, %c0_88, %c0_89] : memref<2x24x128xbf16, #tpu.memory_space<vmem>>, vector<1x24x128xbf16>
    %144 = vector.shape_cast %143 : vector<1x24x128xbf16> to vector<24x128xbf16>
    %145 = vector.shape_cast %142 : vector<24x128xbf16> to vector<1x24x128xbf16>
    tpu.vector_store %arg5[%c1_87, %c0_88, %c0_89], %145 {strides = array<i32>} : memref<2x24x128xbf16, #tpu.memory_space<vmem>>, vector<1x24x128xbf16>,
    return
  }
  func.func @transform_0(%arg0: i32) -> (i32, i32, i32) {
    %c0_i32 = arith.constant 0 : i32
    %c0_i32_0 = arith.constant 0 : i32
    %c0_i32_1 = arith.constant 0 : i32
    %c0_i32_2 = arith.constant 0 : i32
    return %c0_i32, %c0_i32_0, %c0_i32_1 : i32, i32, i32
  }
  func.func @transform_1(%arg0: i32) -> (i32, i32, i32) {
    %c0_i32 = arith.constant 0 : i32
    %c0_i32_0 = arith.constant 0 : i32
    %c0_i32_1 = arith.constant 0 : i32
    %c0_i32_2 = arith.constant 0 : i32
    return %c0_i32, %c0_i32_0, %c0_i32_1 : i32, i32, i32
  }
  func.func @transform_2(%arg0: i32) -> (i32, i32) {
    %c0_i32 = arith.constant 0 : i32
    %c0_i32_0 = arith.constant 0 : i32
    %c0_i32_1 = arith.constant 0 : i32
    return %c0_i32, %c0_i32_0 : i32, i32
  }
  func.func @transform_3(%arg0: i32) -> (i32, i32) {
    %c0_i32 = arith.constant 0 : i32
    %c0_i32_0 = arith.constant 0 : i32
    %c0_i32_1 = arith.constant 0 : i32
    return %c0_i32, %c0_i32_0 : i32, i32
  }
  func.func @transform_4(%arg0: i32) -> (i32, i32, i32) {
    %c0_i32 = arith.constant 0 : i32
    %c0_i32_0 = arith.constant 0 : i32
    %c0_i32_1 = arith.constant 0 : i32
    %c0_i32_2 = arith.constant 0 : i32
    return %c0_i32, %c0_i32_0, %c0_i32_1 : i32, i32, i32
  }
}

module attributes {stable_mosaic.version = 11 : i64} {
  func.func @_fc_kernel(%arg0: i32, %arg1: memref<2x2048xbf16, #tpu.memory_space<vmem>>, %arg2: memref<2048x128xbf16, #tpu.memory_space<vmem>>, %arg3: memref<1x128xf32, #tpu.memory_space<vmem>>, %arg4: memref<2x128xf32, #tpu.memory_space<vmem>>) attributes {dimension_semantics = [#tpu.dimension_semantics<parallel>], iteration_bounds = array<i64: 1>, scalar_prefetch = 0 : i64, scratch_operands = 0 : i64, tpu.core_type = #tpu.core_type<tc>, window_params = [{transform_indices = @transform_0, window_bounds = array<i64: 2, 2048>}, {pipeline_mode = #tpu.pipeline_mode<synchronous>, transform_indices = @transform_1, window_bounds = array<i64: 2048, 128>}, {pipeline_mode = #tpu.pipeline_mode<synchronous>, transform_indices = @transform_2, window_bounds = array<i64: 1, 128>}, {transform_indices = @transform_3, window_bounds = array<i64: 2, 128>}]} {
    %c0 = arith.constant 0 : index
    %c0_0 = arith.constant 0 : index
    %0 = vector.load %arg1[%c0, %c0_0] : memref<2x2048xbf16, #tpu.memory_space<vmem>>, vector<2x2048xbf16>
    %c0_1 = arith.constant 0 : index
    %c0_2 = arith.constant 0 : index
    %1 = vector.load %arg2[%c0_1, %c0_2] : memref<2048x128xbf16, #tpu.memory_space<vmem>>, vector<2048x128xbf16>
    %cst = arith.constant dense<0.000000e+00> : vector<2x128xf32>
    %2 = tpu.matmul %0, %1, %cst {dimension_numbers = #tpu.dot_dimension_numbers<[1], [0], [0], [1], [0, 0, 1, 1], [], []>} : vector<2x2048xbf16>, vector<2048x128xbf16>, vector<2x128xf32> -> vector<2x128xf32>
    %c0_3 = arith.constant 0 : index
    %c0_4 = arith.constant 0 : index
    %3 = vector.load %arg3[%c0_3, %c0_4] : memref<1x128xf32, #tpu.memory_space<vmem>>, vector<1x128xf32>
    %4 = vector.broadcast %3 : vector<1x128xf32> to vector<2x128xf32>
    %5 = arith.addf %2, %4 : vector<2x128xf32>
    %c0_5 = arith.constant 0 : index
    %c0_6 = arith.constant 0 : index
    %6 = vector.load %arg4[%c0_5, %c0_6] : memref<2x128xf32, #tpu.memory_space<vmem>>, vector<2x128xf32>
    tpu.vector_store %arg4[%c0_5, %c0_6], %5 {strides = array<i32>} : memref<2x128xf32, #tpu.memory_space<vmem>>, vector<2x128xf32>,
    return
  }
  func.func @transform_0(%arg0: i32) -> (i32, i32) {
    %c0_i32 = arith.constant 0 : i32
    %c0_i32_0 = arith.constant 0 : i32
    return %arg0, %c0_i32 : i32, i32
  }
  func.func @transform_1(%arg0: i32) -> (i32, i32) {
    %c0_i32 = arith.constant 0 : i32
    %c0_i32_0 = arith.constant 0 : i32
    %c0_i32_1 = arith.constant 0 : i32
    return %c0_i32, %c0_i32_0 : i32, i32
  }
  func.func @transform_2(%arg0: i32) -> (i32, i32) {
    %c0_i32 = arith.constant 0 : i32
    %c0_i32_0 = arith.constant 0 : i32
    %c0_i32_1 = arith.constant 0 : i32
    return %c0_i32, %c0_i32_0 : i32, i32
  }
  func.func @transform_3(%arg0: i32) -> (i32, i32) {
    %c0_i32 = arith.constant 0 : i32
    %c0_i32_0 = arith.constant 0 : i32
    return %arg0, %c0_i32 : i32, i32
  }
}

</mosaic_0001>

<bundles_post_ra>
// kernel: encoder_svhn_forward.4
= control target key start
LH: loop header
LB: loop body
LE: loop exit
PB: predicated region body
PF: predicated region fallthrough
CT: control target
= control target key end

     0   :  { %s2687_s9 = smov 0   ;;  %s3207_s0 = inlined_call_operand.vmem [shape: bf16[2,296,32], index: 0, kind: input, shape index: {}]   ;;  %s3208_s1 = inlined_call_operand.vmem [shape: bf16[4,32,32], index: 1, kind: input, shape index: {}]   ;;  %s3209_s2 = inlined_call_operand.vmem [shape: bf16[2,272,32], index: 2, kind: output, shape index: {}]  }
   0x1 LB: > { %s2039_s10 = sadd.s32 4294967295, %s2668_s9   ;;  %p2043_p0 = scmp.ge.s32.totalorder %s2668_s9, 1  ;;  %s2668_s9 = sphi %s2687_s9, %s12_s9  }
   0x2   : > { %p112_p1 = scmp.lt.s32.totalorder %s2668_s9, 3 }
   0x4   : > { %p113_p2 = pnand %p2043_p0, %p112_p1 }
   0x5   : > { %p134_p3 = scmp.lt.s32.totalorder (!%p113_p2), %s2039_s10, 1 }
   0x6   : > { %116 = sbr.rel (%p113_p2) target bundleno = 494 (0x1ee), region = 28 }
   0xb   : > { %v2617_v0 = vld [vmem:[%s3208_s1 + $0x8] sm:$0xff]   ;;  %v2670_v1 = vmov 0.0   ;;  %v2618_v2 = vld [vmem:[%s3208_s1 + $0x18] sm:$0xff]   ;;  %v2619_v3 = vld [vmem:[%s3208_s1] sm:$0xff]   ;;  %vm2671_vm0 = vmmov 0   ;;  %s3211_s10 = smov (!%p134_p3, %s2039_s10), 1 }
   0xc   : > { %2389 = vmatprep.subr.bf16.mxu1 %v2670_v1  ;;  %2317 = vmatprep.subr.bf16.mxu0 %v2670_v1  ;;  %v2620_v4 = vld [vmem:[%s3208_s1 + $0x10] sm:$0xff]   ;;  %s2605_s19 = smul.u32 148, %s3211_s10  ;;  %vm430_vm1 = vcmask 261120   ;;  %v2624_v5 = vld [vmem:[%s3208_s1 + $0x38] sm:$0xff]   ;;  %vm277_vm2 = vsmask.f32 7424 }
   0xd   : > { %2390 = vmatpush3.bf16.msra.mxu1 %v2617_v0  ;;  %2393 = vmatprep.mubr.msk.bf16.mxu1 %vm2671_vm0, %v2670_v1  ;;  %v2634_v12 = vld [vmem:[%s3208_s1 + $0x30] sm:$0xff]   ;;  %v2623_v15 = vld [vmem:[%s3208_s1 + $0x28] sm:$0xff]   ;;  %v2633_v23 = vld [vmem:[%s3208_s1 + $0x20] sm:$0xff]   ;;  %vm1409_vm3 = vcmask 1046528   ;;  %s2606_s3 = smul.u32 136, %s3211_s10  ;;  %vm1949_vm5 = vcmask 257024  }
   0xe   : > { %2318 = vmatpush3.bf16.msra.mxu0 %v2618_v2  ;;  %2391 = vmatprep.subr.bf16.mxu1 %v2670_v1  ;;  %s2722_s22 = scalar_lea.vmem %s3207_s0, %s2605_s19 }
   0xf   : > { %2319 = vmatprep.subr.bf16.mxu0 %v2670_v1  ;;  %2321 = vmatprep.mubr.msk.bf16.mxu0 %vm2671_vm0, %v2670_v1  ;;  %v2621_v6 = vld [vmem:[%s2722_s22] sm:$0xff]   ;;  %v2622_v7 = vld [vmem:[%s2722_s22 + $0x8] sm:$0xff]   ;;  %v2625_v11 = vld [vmem:[%s2722_s22 + $0x10] sm:$0xff]   ;;  %s3102_s6 = scalar_lea.vmem %s3209_s2, %s2606_s3 }
  0x10   : > { %v279_v8 = vshrl.u32 %v2621_v6, 16  ;;  %v281_v9 = vshll.u32 %v2621_v6, 16  ;;  %v286_v10 = vshll.u32 %v2622_v7, 16  ;;  %v290_v17 = vshrl.u32 %v2622_v7, 16  ;;  %v2626_v22 = vld [vmem:[%s2722_s22 + $0x18] sm:$0xff]   ;;  %v2627_v29 = vld [vmem:[%s2722_s22 + $0x20] sm:$0xff]  }
  0x11   : > { %2392 = vmatpush3.bf16.msra.mxu1 %v2619_v3  ;;  %v294_v18 = vshll.u32 %v2625_v11, 16  ;;  %v298_v25 = vshrl.u32 %v2625_v11, 16  ;;  %v302_v26 = vshll.u32 %v2626_v22, 16  ;;  %v306_v31 = vshrl.u32 %v2626_v22, 16  ;;  %v2628_v35 = vld [vmem:[%s2722_s22 + $0x28] sm:$0xff]   ;;  %v2629_v39 = vld [vmem:[%s2722_s22 + $0x30] sm:$0xff]  }
  0x12   : > { %2320 = vmatpush3.bf16.msra.mxu0 %v2620_v4  ;;  %2533 = vmatprep.subr.bf16.mxu1 %v2670_v1  ;;  %v283_v13 = vrot.slane %v281_v9, 1  ;;  %v288_v14 = vrot.slane %v286_v10, 1  ;;  %v310_v32 = vshll.u32 %v2627_v29, 16  ;;  %v314_v37 = vshrl.u32 %v2627_v29, 16  ;;  %v2630_v47 = vld [vmem:[%s2722_s22 + $0x38] sm:$0xff]   ;;  %v2631_v53 = vld [vmem:[%s2722_s22 + $0x40] sm:$0xff]  }
  0x13   : > { %2461 = vmatprep.subr.bf16.mxu0 %v2670_v1  ;;  %v296_v21 = vrot.slane %v294_v18, 1  ;;  %v304_v28 = vrot.slane %v302_v26, 1  ;;  %v318_v38 = vshll.u32 %v2628_v35, 16  ;;  %v322_v42 = vshrl.u32 %v2628_v35, 16  ;;  %v2632_v59 = vld [vmem:[%s2722_s22 + $0x48] sm:$0xff]   ;;  %v2635_v2 = vld [vmem:[%s2722_s22 + $0x50] sm:$0xff]  }
  0x14   : > { %2394 = vmatmul.mubr.msk.bf16.vlgmr.msra.gmra.mxu1 %vm430_vm1, %v2621_v6  ;;  %v284_v16 = vor.u32 %v283_v13, %v279_v8  ;;  %v292_v20 = vor.u32 %v290_v17, %v288_v14  ;;  %v312_v34 = vrot.slane %v310_v32, 1  ;;  %v326_v43 = vshll.u32 %v2629_v39, 16  ;;  %v2636_v8 = vld [vmem:[%s2722_s22 + $0x58] sm:$0xff]   ;;  %v2639_v26 = vld [vmem:[%s2722_s22 + $0x70] sm:$0xff]  }
  0x15   : > { %2534 = vmatpush3.bf16.msra.mxu1 %v2624_v5  ;;  %2397 = vmatprep.mubr.msk.bf16.mxu1 %vm2671_vm0, %v2670_v1  ;;  %v300_v27 = vor.u32 %v298_v25, %v296_v21  ;;  %v308_v33 = vor.u32 %v306_v31, %v304_v28  ;;  %v320_v41 = vrot.slane %v318_v38, 1  ;;  %v330_v49 = vshrl.u32 %v2629_v39, 16  ;;  %v2640_v32 = vld [vmem:[%s2722_s22 + $0x78] sm:$0xff]   ;;  %v2641_v38 = vld [vmem:[%s2722_s22 + $0x80] sm:$0xff]  }
  0x16   : > { %2535 = vmatprep.subr.bf16.mxu1 %v2670_v1  ;;  %v289_v19 = vsel %vm277_vm2, %v284_v16, %v288_v14  ;;  %v297_v24 = vsel %vm277_vm2, %v292_v20, %v296_v21  ;;  %v316_v40 = vor.u32 %v314_v37, %v312_v34  ;;  %v328_v46 = vrot.slane %v326_v43, 1  ;;  %v2637_v14 = vld [vmem:[%s2722_s22 + $0x60] sm:$0xff]   ;;  %v2638_v20 = vld [vmem:[%s2722_s22 + $0x68] sm:$0xff]  }
  0x17   : > { %2322 = vmatmul.mubr.msk.bf16.vlgmr.msra.gmra.mxu0 %vm430_vm1, %v289_v19  ;;  %v305_v30 = vsel %vm277_vm2, %v300_v27, %v304_v28  ;;  %v313_v36 = vsel %vm277_vm2, %v308_v33, %v312_v34  ;;  %v324_v45 = vor.u32 %v322_v42, %v320_v41  ;;  %v334_v50 = vshll.u32 %v2630_v47, 16 }
  0x18   : > { %2462 = vmatpush3.bf16.msra.mxu0 %v2623_v15  ;;  %2325 = vmatprep.mubr.msk.bf16.mxu0 %vm2671_vm0, %v2670_v1  ;;  %v321_v44 = vsel %vm277_vm2, %v316_v40, %v320_v41  ;;  %v332_v51 = vor.u32 %v330_v49, %v328_v46  ;;  %v338_v55 = vshrl.u32 %v2630_v47, 16  ;;  %v342_v56 = vshll.u32 %v2631_v53, 16 }
  0x19   : > { %2536 = vmatpush3.bf16.msra.mxu1 %v2634_v12  ;;  %2463 = vmatprep.subr.bf16.mxu0 %v2670_v1  ;;  %v329_v48 = vsel %vm277_vm2, %v324_v45, %v328_v46  ;;  %v336_v52 = vrot.slane %v334_v50, 1  ;;  %v346_v61 = vshrl.u32 %v2631_v53, 16  ;;  %v350_v62 = vshll.u32 %v2632_v59, 16  ;;  %v866_v45 = vld [vmem:[%s2722_s22 + $0x8] sm:$0xf] }
  0x1a   : > { %v344_v58 = vrot.slane %v342_v56, 1  ;;  %v354_v4 = vshrl.u32 %v2632_v59, 16  ;;  %v358_v5 = vshll.u32 %v2635_v2, 16  ;;  %v362_v10 = vshrl.u32 %v2635_v2, 16  ;;  %v867_v46 = vld [vmem:[%s2722_s22 + $0xc] sm:$0xf] }
  0x1b   : > { %v337_v54 = vsel %vm277_vm2, %v332_v51, %v336_v52  ;;  %v340_v57 = vor.u32 %v338_v55, %v336_v52  ;;  %v352_v0 = vrot.slane %v350_v62, 1  ;;  %v370_v16 = vshrl.u32 %v2636_v8, 16  ;;  %v2644_v52 = vld [vmem:[%s2722_s22 + $0x10] sm:$0xff]  }
  0x1c   : > { %2398 = vmatmul.mubr.msk.bf16.gmra.mxu1 %vm430_vm1, %v2622_v7  ;;  %2464 = vmatpush3.bf16.msra.mxu0 %v2633_v23  ;;  %v348_v63 = vor.u32 %v346_v61, %v344_v58  ;;  %v360_v7 = vrot.slane %v358_v5, 1  ;;  %v374_v17 = vshll.u32 %v2637_v14, 16  ;;  %v382_v23 = vshll.u32 %v2638_v20, 16 }
  0x1d   : > { %2401 = vmatprep.mubr.msk.bf16.mxu1 %vm2671_vm0, %v2670_v1  ;;  %v345_v60 = vsel %vm277_vm2, %v340_v57, %v344_v58  ;;  %v356_v6 = vor.u32 %v354_v4, %v352_v0  ;;  %v386_v28 = vshrl.u32 %v2638_v20, 16  ;;  %v394_v34 = vshrl.u32 %v2639_v26, 16 }
  0x1e   : > { %v353_v3 = vsel %vm277_vm2, %v348_v63, %v352_v0  ;;  %v364_v12 = vor.u32 %v362_v10, %v360_v7  ;;  %v376_v19 = vrot.slane %v374_v17, 1  ;;  %v384_v25 = vrot.slane %v382_v23, 1  ;;  %v2646_v0 = vld [vmem:[%s2722_s22 + $0x18] sm:$0xff]   ;;  %v2648_v17 = vld [vmem:[%s2722_s22 + $0x28] sm:$0xff]  }
  0x1f   : > { %2326 = vmatmul.mubr.msk.bf16.gmra.mxu0 %vm430_vm1, %v297_v24  ;;  %v361_v9 = vsel %vm277_vm2, %v356_v6, %v360_v7  ;;  %v402_v40 = vshrl.u32 %v2640_v32, 16  ;;  %v406_v41 = vshll.u32 %v2641_v38, 16  ;;  %v410_v49 = vshrl.u32 %v2641_v38, 16 }
  0x20   : > { %2329 = vmatprep.mubr.msk.bf16.mxu0 %vm2671_vm0, %v2670_v1  ;;  %v2110_v51 = vcombine.low %v866_v45, %v867_v46  ;;  %v1411_v58 = vrot.slane %v2644_v52, 1  ;;  %v1002_v62 = vshll.u32 %v2644_v52, 16  ;;  %v1413_v4 = vrot.slane %v2646_v0, 1 }
  0x21   : > { %v408_v43 = vrot.slane %v406_v41, 1  ;;  %v1006_v6 = vshrl.u32 %v2644_v52, 16  ;;  %v1010_v7 = vshll.u32 %v2646_v0, 16  ;;  %v1026_v23 = vshll.u32 %v2648_v17, 16  ;;  %v2651_v41 = vld [vmem:[%s2722_s22 + $0x40] sm:$0xff]  }
  0x22   : > { %v997_v56 = vshll.u32 %v2110_v51, 16 }
  0x24   : > { %2402 = vmatmul.mubr.msk.bf16.gmra.mxu1 %vm430_vm1, %v2625_v11  ;;  %v366_v11 = vshll.u32 %v2636_v8, 16  ;;  %v999_v61 = vrot.slane %v997_v56, 1 }
  0x25   : > { %2405 = vmatprep.mubr.msk.bf16.mxu1 %vm2671_vm0, %v2670_v1 }
  0x26   : > { %v368_v13 = vrot.slane %v366_v11, 1  ;;  %v1012_v11 = vrot.slane %v1010_v7, 1 }
  0x27   : > { %2330 = vmatmul.mubr.msk.bf16.gmra.mxu0 %vm430_vm1, %v305_v30  ;;  %v388_v30 = vor.u32 %v386_v28, %v384_v25 }
  0x28   : > { %2333 = vmatprep.mubr.msk.bf16.mxu0 %vm2671_vm0, %v2670_v1  ;;  %v369_v15 = vsel %vm277_vm2, %v364_v12, %v368_v13  ;;  %v372_v18 = vor.u32 %v370_v16, %v368_v13 }
  0x2a   : > { %v377_v21 = vsel %vm277_vm2, %v372_v18, %v376_v19 }
  0x2c   : > { %2406 = vmatmul.mubr.msk.bf16.gmra.mxu1 %vm430_vm1, %v2626_v22  ;;  %v378_v22 = vshrl.u32 %v2637_v14, 16 }
  0x2d   : > { %2409 = vmatprep.mubr.msk.bf16.mxu1 %vm2671_vm0, %v2670_v1 }
  0x2e   : > { %v380_v24 = vor.u32 %v378_v22, %v376_v19 }
  0x2f   : > { %2334 = vmatmul.mubr.msk.bf16.gmra.mxu0 %vm430_vm1, %v313_v36 }
  0x30   : > { %2337 = vmatprep.mubr.msk.bf16.mxu0 %vm2671_vm0, %v2670_v1  ;;  %v385_v27 = vsel %vm277_vm2, %v380_v24, %v384_v25  ;;  %v2649_v25 = vld [vmem:[%s2722_s22 + $0x30] sm:$0xff]  }
  0x31   : > { %v1419_v28 = vrot.slane %v2649_v25, 1 }
  0x34   : > { %2410 = vmatmul.mubr.msk.bf16.gmra.mxu1 %vm430_vm1, %v2627_v29  ;;  %v390_v29 = vshll.u32 %v2639_v26, 16 }
  0x35   : > { %2413 = vmatprep.mubr.msk.bf16.mxu1 %vm2671_vm0, %v2670_v1 }
  0x36   : > { %v392_v31 = vrot.slane %v390_v29, 1 }
  0x37   : > { %2338 = vmatmul.mubr.msk.bf16.gmra.mxu0 %vm430_vm1, %v321_v44  ;;  %v2642_v44 = vld [vmem:[%s2722_s22 + $0x88] ss:$0 sps:$4 sm:$0x11]  }
  0x38   : > { %2341 = vmatprep.mubr.msk.bf16.mxu0 %vm2671_vm0, %v2670_v1  ;;  %v393_v33 = vsel %vm277_vm2, %v388_v30, %v392_v31  ;;  %v396_v36 = vor.u32 %v394_v34, %v392_v31  ;;  %v414_v50 = vshll.u32 %v2642_v44, 16  ;;  %v1030_v30 = vshrl.u32 %v2648_v17, 16 }
  0x39   : > { %v1034_v31 = vshll.u32 %v2649_v25, 16  ;;  %v1423_v44 = vrot.slane %v2651_v41, 1 }
  0x3a   : > { %v416_v55 = vrot.slane %v414_v50, 1 }
  0x3c   : > { %2414 = vmatmul.mubr.msk.bf16.gmra.mxu1 %vm430_vm1, %v2628_v35  ;;  %v398_v35 = vshll.u32 %v2640_v32, 16 }
  0x3d   : > { %2417 = vmatprep.mubr.msk.bf16.mxu1 %vm2671_vm0, %v2670_v1 }
  0x3e   : > { %v400_v37 = vrot.slane %v398_v35, 1  ;;  %v1036_v35 = vrot.slane %v1034_v31, 1 }
  0x3f   : > { %2342 = vmatmul.mubr.msk.bf16.gmra.mxu0 %vm430_vm1, %v329_v48 }
  0x40   : > { %2345 = vmatprep.mubr.msk.bf16.mxu0 %vm2671_vm0, %v2670_v1  ;;  %v404_v42 = vor.u32 %v402_v40, %v400_v37 }
  0x42   : > { %v409_v48 = vsel %vm277_vm2, %v404_v42, %v408_v43 }
  0x44   : > { %2418 = vmatmul.mubr.msk.bf16.gmra.mxu1 %vm430_vm1, %v2629_v39  ;;  %v401_v39 = vsel %vm277_vm2, %v396_v36, %v400_v37 }
  0x45   : > { %2421 = vmatprep.mubr.msk.bf16.mxu1 %vm2671_vm0, %v2670_v1 }
  0x47   : > { %2346 = vmatmul.mubr.msk.bf16.gmra.mxu0 %vm430_vm1, %v337_v54  ;;  %v412_v54 = vor.u32 %v410_v49, %v408_v43  ;;  %v2652_v49 = vld [vmem:[%s2722_s22 + $0x48] sm:$0xff]  }
  0x48   : > { %2349 = vmatprep.mubr.msk.bf16.mxu0 %vm2671_vm0, %v2670_v1  ;;  %v1425_v52 = vrot.slane %v2652_v49, 1 }
  0x4a   : > { %v1426_v56 = vsel %vm1409_vm3, %v1423_v44, %v1425_v52 }
  0x4c   : > { %2422 = vmatmul.mubr.msk.bf16.gmra.mxu1 %vm430_vm1, %v2630_v47  ;;  %v1400_v47 = vld [vmem:[%s2722_s22 + $0x8] sm:$0xe] }
  0x4d   : > { %2425 = vmatprep.mubr.msk.bf16.mxu1 %vm2671_vm0, %v2670_v1 }
  0x4f   : > { %2350 = vmatmul.mubr.msk.bf16.gmra.mxu0 %vm430_vm1, %v345_v60  ;;  %v995_v60 = vshrl.u32 %v2110_v51, 16 }
  0x50   : > { %2353 = vmatprep.mubr.msk.bf16.mxu0 %vm2671_vm0, %v2670_v1 }
  0x54   : > { %2426 = vmatmul.mubr.msk.bf16.gmra.mxu1 %vm430_vm1, %v2631_v53  ;;  %v2151_v53 = vcombine.low %v1400_v47, %v867_v46  ;;  %v1050_v47 = vshll.u32 %v2651_v41, 16 }
  0x55   : > { %2429 = vmatprep.mubr.msk.bf16.mxu1 %vm2671_vm0, %v2670_v1 }
  0x56   : > { %v1410_v57 = vrot.slane %v2151_v53, 1  ;;  %v1052_v51 = vrot.slane %v1050_v47, 1 }
  0x57   : > { %2354 = vmatmul.mubr.msk.bf16.gmra.mxu0 %vm430_vm1, %v353_v3  ;;  %v1004_v3 = vrot.slane %v1002_v62, 1 }
  0x58   : > { %2357 = vmatprep.mubr.msk.bf16.mxu0 %vm2671_vm0, %v2670_v1  ;;  %v1412_v63 = vsel %vm1409_vm3, %v1410_v57, %v1411_v58  ;;  %v2653_v57 = vld [vmem:[%s2722_s22 + $0x50] sm:$0xff]  }
  0x59   : > { %v1008_v10 = vor.u32 %v1006_v6, %v1004_v3 }
  0x5b   : > { %v1013_v13 = vsel %vm277_vm2, %v1008_v10, %v1012_v11 }
  0x5c   : > { %2430 = vmatmul.mubr.msk.bf16.gmra.mxu1 %vm430_vm1, %v2632_v59  ;;  %v417_v59 = vsel %vm277_vm2, %v412_v54, %v416_v55  ;;  %v1054_v54 = vshrl.u32 %v2651_v41, 16  ;;  %v1058_v55 = vshll.u32 %v2652_v49, 16  ;;  %v2656_v41 = vld [vmem:[%s2722_s22 + $0x68] sm:$0xff]  }
  0x5d   : > { %2433 = vmatprep.mubr.msk.bf16.mxu1 %vm2671_vm0, %v2670_v1 }
  0x5f   : > { %2358 = vmatmul.mubr.msk.bf16.gmra.mxu0 %vm430_vm1, %v361_v9  ;;  %v2647_v9 = vld [vmem:[%s2722_s22 + $0x20] sm:$0xff]  }
  0x60   : > { %2361 = vmatprep.mubr.msk.bf16.mxu0 %vm2671_vm0, %v2670_v1  ;;  %v1415_v12 = vrot.slane %v2647_v9, 1  ;;  %v1022_v22 = vshrl.u32 %v2647_v9, 16 }
  0x62   : > { %v1416_v16 = vsel %vm1409_vm3, %v1413_v4, %v1415_v12 }
  0x64   : > { %2434 = vmatmul.mubr.msk.bf16.gmra.mxu1 %vm430_vm1, %v2635_v2  ;;  %v1000_v2 = vor.u32 %v999_v61, %v995_v60  ;;  %v1060_v60 = vrot.slane %v1058_v55, 1  ;;  %v1427_v61 = vrot.slane %v2653_v57, 1 }
  0x65   : > { %2437 = vmatprep.mubr.msk.bf16.mxu1 %vm2671_vm0, %v2670_v1 }
  0x66   : > { %v1005_v5 = vsel %vm277_vm2, %v1000_v2, %v1004_v3  ;;  %v1062_v2 = vshrl.u32 %v2652_v49, 16  ;;  %v1066_v3 = vshll.u32 %v2653_v57, 16  ;;  %v1433_v49 = vrot.slane %v2656_v41, 1 }
  0x67   : > { %2362 = vmatmul.mubr.msk.bf16.gmra.mxu0 %vm430_vm1, %v369_v15  ;;  %v1018_v15 = vshll.u32 %v2647_v9, 16 }
  0x68   : > { %2365 = vmatprep.mubr.msk.bf16.mxu0 %vm2671_vm0, %v2670_v1  ;;  %v1064_v10 = vor.u32 %v1062_v2, %v1060_v60 }
  0x69   : > { %v1020_v19 = vrot.slane %v1018_v15, 1 }
  0x6c   : > { %2438 = vmatmul.mubr.msk.bf16.gmra.mxu1 %vm430_vm1, %v2636_v8  ;;  %v1414_v8 = vsel %vm1409_vm3, %v1411_v58, %v1413_v4  ;;  %v1428_v4 = vsel %vm1409_vm3, %v1425_v52, %v1427_v61 }
  0x6d   : > { %2441 = vmatprep.mubr.msk.bf16.mxu1 %vm2671_vm0, %v2670_v1 }
  0x6f   : > { %2366 = vmatmul.mubr.msk.bf16.gmra.mxu0 %vm430_vm1, %v377_v21 }
  0x70   : > { %2369 = vmatprep.mubr.msk.bf16.mxu0 %vm2671_vm0, %v2670_v1 }
  0x74   : > { %2442 = vmatmul.mubr.msk.bf16.gmra.mxu1 %vm430_vm1, %v2637_v14  ;;  %v1014_v14 = vshrl.u32 %v2646_v0, 16 }
  0x75   : > { %2445 = vmatprep.mubr.msk.bf16.mxu1 %vm2671_vm0, %v2670_v1 }
  0x76   : > { %v1016_v18 = vor.u32 %v1014_v14, %v1012_v11  ;;  %v1068_v11 = vrot.slane %v1066_v3, 1 }
  0x77   : > { %2370 = vmatmul.mubr.msk.bf16.gmra.mxu0 %vm430_vm1, %v385_v27  ;;  %v1028_v27 = vrot.slane %v1026_v23, 1  ;;  %v2655_v23 = vld [vmem:[%s2722_s22 + $0x60] sm:$0xff]  }
  0x78   : > { %2373 = vmatprep.mubr.msk.bf16.mxu0 %vm2671_vm0, %v2670_v1  ;;  %v1021_v21 = vsel %vm277_vm2, %v1016_v18, %v1020_v19  ;;  %v1069_v18 = vsel %vm277_vm2, %v1064_v10, %v1068_v11  ;;  %v1431_v31 = vrot.slane %v2655_v23, 1  ;;  %v1086_v55 = vshrl.u32 %v2655_v23, 16 }
  0x79   : > { %v1032_v34 = vor.u32 %v1030_v30, %v1028_v27 }
  0x7b   : > { %v1037_v37 = vsel %vm277_vm2, %v1032_v34, %v1036_v35 }
  0x7c   : > { %2446 = vmatmul.mubr.msk.bf16.gmra.mxu1 %vm430_vm1, %v2638_v20  ;;  %v1417_v20 = vrot.slane %v2648_v17, 1 }
  0x7d   : > { %2449 = vmatprep.mubr.msk.bf16.mxu1 %vm2671_vm0, %v2670_v1 }
  0x7e   : > { %v1418_v24 = vsel %vm1409_vm3, %v1415_v12, %v1417_v20 }
  0x7f   : > { %2374 = vmatmul.mubr.msk.bf16.gmra.mxu0 %vm430_vm1, %v393_v33  ;;  %v2650_v33 = vld [vmem:[%s2722_s22 + $0x38] sm:$0xff]  }
  0x80   : > { %2377 = vmatprep.mubr.msk.bf16.mxu0 %vm2671_vm0, %v2670_v1  ;;  %v1421_v36 = vrot.slane %v2650_v33, 1  ;;  %v1046_v46 = vshrl.u32 %v2650_v33, 16 }
  0x82   : > { %v1422_v40 = vsel %vm1409_vm3, %v1419_v28, %v1421_v36 }
  0x84   : > { %2450 = vmatmul.mubr.msk.bf16.gmra.mxu1 %vm430_vm1, %v2639_v26  ;;  %v1024_v26 = vor.u32 %v1022_v22, %v1020_v19  ;;  %v1070_v19 = vshrl.u32 %v2653_v57, 16 }
  0x85   : > { %2453 = vmatprep.mubr.msk.bf16.mxu1 %vm2671_vm0, %v2670_v1 }
  0x86   : > { %v1029_v29 = vsel %vm277_vm2, %v1024_v26, %v1028_v27 }
  0x87   : > { %2378 = vmatmul.mubr.msk.bf16.gmra.mxu0 %vm430_vm1, %v401_v39  ;;  %v1042_v39 = vshll.u32 %v2650_v33, 16 }
  0x88   : > { %2381 = vmatprep.mubr.msk.bf16.mxu0 %vm2671_vm0, %v2670_v1 }
  0x89   : > { %v1044_v43 = vrot.slane %v1042_v39, 1 }
  0x8b   : > { %v1048_v50 = vor.u32 %v1046_v46, %v1044_v43 }
  0x8c   : > { %2454 = vmatmul.mubr.msk.bf16.gmra.mxu1 %vm430_vm1, %v2640_v32  ;;  %v1420_v32 = vsel %vm1409_vm3, %v1417_v20, %v1419_v28  ;;  %v1072_v28 = vor.u32 %v1070_v19, %v1068_v11  ;;  %v1094_v11 = vshrl.u32 %v2656_v41, 16 }
  0x8d   : > { %2457 = vmatprep.mubr.msk.bf16.mxu1 %vm2671_vm0, %v2670_v1  ;;  %v1053_v53 = vsel %vm277_vm2, %v1048_v50, %v1052_v51 }
  0x8f   : > { %2382 = vmatmul.mubr.msk.bf16.gmra.mxu0 %vm430_vm1, %v409_v48  ;;  %v1424_v48 = vsel %vm1409_vm3, %v1421_v36, %v1423_v44 }
  0x90   : > { %2385 = vmatprep.mubr.msk.bf16.mxu0 %vm2671_vm0, %v2670_v1 }
  0x94   : > { %2458 = vmatmul.mubr.msk.bf16.gmra.mxu1 %vm430_vm1, %v2641_v38  ;;  %v1038_v38 = vshrl.u32 %v2649_v25, 16 }
  0x95   : > { %2537 = vmatprep.mubr.msk.bf16.mxu1 %vm2671_vm0, %v2670_v1 }
  0x96   : > { %v1040_v42 = vor.u32 %v1038_v38, %v1036_v35  ;;  %v1082_v38 = vshll.u32 %v2655_v23, 16 }
  0x97   : > { %2386 = vmatmul.mubr.msk.bf16.gmra.mxu0 %vm430_vm1, %v417_v59  ;;  %v1056_v59 = vor.u32 %v1054_v54, %v1052_v51 }
  0x98   : > { %2465 = vmatprep.mubr.msk.bf16.mxu0 %vm2671_vm0, %v2670_v1  ;;  %v1045_v45 = vsel %vm277_vm2, %v1040_v42, %v1044_v43  ;;  %v1084_v47 = vrot.slane %v1082_v38, 1 }
  0x99   : > { %v1061_v0 = vsel %vm277_vm2, %v1056_v59, %v1060_v60  ;;  %v2657_v59 = vld [vmem:[%s2722_s22 + $0x70] sm:$0xff]  }
  0x9c   : > { %2538 = vmatmul.mubr.msk.bf16.vlgmr.msra.gmra.mxu1 %vm430_vm1, %v1412_v63 }
  0x9d   : > { %2541 = vmatprep.mubr.msk.bf16.mxu1 %vm2671_vm0, %v2670_v1 }
  0x9f   : > { %2466 = vmatmul.mubr.msk.bf16.vlgmr.msra.gmra.mxu0 %vm430_vm1, %v1005_v5  ;;  %v2654_v5 = vld [vmem:[%s2722_s22 + $0x58] sm:$0xff]  }
  0xa0   : > { %2469 = vmatprep.mubr.msk.bf16.mxu0 %vm2671_vm0, %v2670_v1  ;;  %v1074_v20 = vshll.u32 %v2654_v5, 16 }
  0xa4   : > { %2542 = vmatmul.mubr.msk.bf16.gmra.mxu1 %vm430_vm1, %v1414_v8 }
  0xa5   : > { %2545 = vmatprep.mubr.msk.bf16.mxu1 %vm2671_vm0, %v2670_v1 }
  0xa7   : > { %2470 = vmatmul.mubr.msk.bf16.gmra.mxu0 %vm430_vm1, %v1013_v13  ;;  %v1429_v13 = vrot.slane %v2654_v5, 1 }
  0xa8   : > { %2473 = vmatprep.mubr.msk.bf16.mxu0 %vm2671_vm0, %v2670_v1 }
  0xa9   : > { %v1430_v22 = vsel %vm1409_vm3, %v1427_v61, %v1429_v13 }
  0xac   : > { %2546 = vmatmul.mubr.msk.bf16.gmra.mxu1 %vm430_vm1, %v1416_v16 }
  0xad   : > { %2549 = vmatprep.mubr.msk.bf16.mxu1 %vm2671_vm0, %v2670_v1 }
  0xaf   : > { %2474 = vmatmul.mubr.msk.bf16.gmra.mxu0 %vm430_vm1, %v1021_v21 }
  0xb0   : > { %2477 = vmatprep.mubr.msk.bf16.mxu0 %vm2671_vm0, %v2670_v1 }
  0xb4   : > { %2550 = vmatmul.mubr.msk.bf16.gmra.mxu1 %vm430_vm1, %v1418_v24 }
  0xb5   : > { %2553 = vmatprep.mubr.msk.bf16.mxu1 %vm2671_vm0, %v2670_v1 }
  0xb7   : > { %2478 = vmatmul.mubr.msk.bf16.gmra.mxu0 %vm430_vm1, %v1029_v29  ;;  %v1076_v29 = vrot.slane %v1074_v20, 1 }
  0xb8   : > { %2481 = vmatprep.mubr.msk.bf16.mxu0 %vm2671_vm0, %v2670_v1 }
  0xb9   : > { %v1077_v36 = vsel %vm277_vm2, %v1072_v28, %v1076_v29 }
  0xbc   : > { %2554 = vmatmul.mubr.msk.bf16.gmra.mxu1 %vm430_vm1, %v1420_v32 }
  0xbd   : > { %2557 = vmatprep.mubr.msk.bf16.mxu1 %vm2671_vm0, %v2670_v1 }
  0xbf   : > { %2482 = vmatmul.mubr.msk.bf16.gmra.mxu0 %vm430_vm1, %v1037_v37  ;;  %v1078_v37 = vshrl.u32 %v2654_v5, 16 }
  0xc0   : > { %2485 = vmatprep.mubr.msk.bf16.mxu0 %vm2671_vm0, %v2670_v1 }
  0xc1   : > { %v1080_v46 = vor.u32 %v1078_v37, %v1076_v29 }
  0xc3   : > { %v1085_v54 = vsel %vm277_vm2, %v1080_v46, %v1084_v47 }
  0xc4   : > { %2558 = vmatmul.mubr.msk.bf16.gmra.mxu1 %vm430_vm1, %v1422_v40  ;;  %v1432_v40 = vsel %vm1409_vm3, %v1429_v13, %v1431_v31 }
  0xc5   : > { %2561 = vmatprep.mubr.msk.bf16.mxu1 %vm2671_vm0, %v2670_v1 }
  0xc7   : > { %2486 = vmatmul.mubr.msk.bf16.gmra.mxu0 %vm430_vm1, %v1045_v45 }
  0xc8   : > { %2489 = vmatprep.mubr.msk.bf16.mxu0 %vm2671_vm0, %v2670_v1 }
  0xcc   : > { %2562 = vmatmul.mubr.msk.bf16.gmra.mxu1 %vm430_vm1, %v1424_v48 }
  0xcd   : > { %2565 = vmatprep.mubr.msk.bf16.mxu1 %vm2671_vm0, %v2670_v1 }
  0xcf   : > { %2490 = vmatmul.mubr.msk.bf16.gmra.mxu0 %vm430_vm1, %v1053_v53 }
  0xd0   : > { %2493 = vmatprep.mubr.msk.bf16.mxu0 %vm2671_vm0, %v2670_v1 }
  0xd4   : > { %v731_v58 = vpop.f32.mrf.mxu1  ;;  %2566 = vmatmul.mubr.msk.bf16.gmra.mxu1 %vm430_vm1, %v1426_v56  ;;  %v1090_v56 = vshll.u32 %v2656_v41, 16 }
  0xd5   : > { %2569 = vmatprep.mubr.msk.bf16.mxu1 %vm2671_vm0, %v2670_v1 }
  0xd6   : > { %v2395_v62 = vpop.f32.mrf.mxu1  ;;  %v1092_v2 = vrot.slane %v1090_v56, 1  ;;  %v2660_v56 = vld [vmem:[%s2722_s22 + $0x88] sm:$0xff]  }
  0xd7   : > { %v516_v7 = vpop.f32.mrf.mxu0  ;;  %2494 = vmatmul.mubr.msk.bf16.gmra.mxu0 %vm430_vm1, %v1061_v0 }
  0xd8   : > { %v734_v63 = vpop.f32.mrf.mxu1  ;;  %v2952_v8 = vadd.f32 %v731_v58, %v516_v7  ;;  %2497 = vmatprep.mubr.msk.bf16.mxu0 %vm2671_vm0, %v2670_v1  ;;  %v1434_v58 = vsel %vm1409_vm3, %v1431_v31, %v1433_v49  ;;  %v1102_v31 = vshrl.u32 %v2657_v59, 16 }
  0xd9   : > { %v2323_v12 = vpop.f32.mrf.mxu0 }
  0xda   : > { %v2396_v6 = vpop.f32.mrf.mxu1  ;;  %v1098_v12 = vshll.u32 %v2657_v59, 16 }
  0xdb   : > { %v519_v15 = vpop.f32.mrf.mxu0 }
  0xdc   : > { %v739_v9 = vpop.f32.mrf.mxu1  ;;  %2570 = vmatmul.mubr.msk.bf16.gmra.mxu1 %vm430_vm1, %v1428_v4  ;;  %v2959_v16 = vadd.f32 %v734_v63, %v519_v15  ;;  %v1088_v63 = vor.u32 %v1086_v55, %v1084_v47  ;;  %v1435_v4 = vrot.slane %v2657_v59, 1  ;;  %v2658_v15 = vld [vmem:[%s2722_s22 + $0x78] sm:$0xff]  }
  0xdd   : > { %2573 = vmatprep.mubr.msk.bf16.mxu1 %vm2671_vm0, %v2670_v1  ;;  %v2324_v21 = vpop.f32.mrf.mxu0 }
  0xde   : > { %v2399_v14 = vpop.f32.mrf.mxu1  ;;  %v1093_v10 = vsel %vm277_vm2, %v1088_v63, %v1092_v2  ;;  %v1096_v21 = vor.u32 %v1094_v11, %v1092_v2  ;;  %v1441_v2 = vrot.slane %v2660_v56, 1  ;;  %v1122_v11 = vshll.u32 %v2660_v56, 16 }
  0xdf   : > { %v524_v25 = vpop.f32.mrf.mxu0  ;;  %2498 = vmatmul.mubr.msk.bf16.gmra.mxu0 %vm430_vm1, %v1069_v18  ;;  %v1436_v14 = vsel %vm1409_vm3, %v1433_v49, %v1435_v4 }
  0xe0   : > { %v742_v17 = vpop.f32.mrf.mxu1  ;;  %v2965_v26 = vadd.f32 %v739_v9, %v524_v25  ;;  %2501 = vmatprep.mubr.msk.bf16.mxu0 %vm2671_vm0, %v2670_v1 }
  0xe1   : > { %v2327_v30 = vpop.f32.mrf.mxu0 }
  0xe2   : > { %v2400_v24 = vpop.f32.mrf.mxu1 }
  0xe3   : > { %v527_v33 = vpop.f32.mrf.mxu0  ;;  %v1437_v24 = vrot.slane %v2658_v15, 1 }
  0xe4   : > { %v747_v27 = vpop.f32.mrf.mxu1  ;;  %2574 = vmatmul.mubr.msk.bf16.gmra.mxu1 %vm430_vm1, %v1430_v22  ;;  %v2972_v34 = vadd.f32 %v742_v17, %v527_v33  ;;  %v1100_v22 = vrot.slane %v1098_v12, 1 }
  0xe5   : > { %2577 = vmatprep.mubr.msk.bf16.mxu1 %vm2671_vm0, %v2670_v1  ;;  %v2328_v39 = vpop.f32.mrf.mxu0 }
  0xe6   : > { %v2403_v32 = vpop.f32.mrf.mxu1  ;;  %v1101_v30 = vsel %vm277_vm2, %v1096_v21, %v1100_v22  ;;  %v1104_v41 = vor.u32 %v1102_v31, %v1100_v22  ;;  %v1124_v22 = vrot.slane %v1122_v11, 1 }
  0xe7   : > { %v532_v43 = vpop.f32.mrf.mxu0  ;;  %2502 = vmatmul.mubr.msk.bf16.gmra.mxu0 %vm430_vm1, %v1077_v36  ;;  %v1106_v32 = vshll.u32 %v2658_v15, 16  ;;  %v2659_v36 = vld [vmem:[%s2722_s22 + $0x80] sm:$0xff]  }
  0xe8   : > { %v750_v35 = vpop.f32.mrf.mxu1  ;;  %v2978_v44 = vadd.f32 %v747_v27, %v532_v43  ;;  %2505 = vmatprep.mubr.msk.bf16.mxu0 %vm2671_vm0, %v2670_v1 }
  0xe9   : > { %v2331_v48 = vpop.f32.mrf.mxu0 }
  0xea   : > { %v2404_v42 = vpop.f32.mrf.mxu1 }
  0xeb   : > { %v535_v51 = vpop.f32.mrf.mxu0  ;;  %v1108_v42 = vrot.slane %v1106_v32, 1  ;;  %v1126_v32 = vshrl.u32 %v2660_v56, 16 }
  0xec   : > { %v755_v45 = vpop.f32.mrf.mxu1  ;;  %2578 = vmatmul.mubr.msk.bf16.gmra.mxu1 %vm430_vm1, %v1432_v40  ;;  %v2985_v52 = vadd.f32 %v750_v35, %v535_v51  ;;  %v1438_v35 = vsel %vm1409_vm3, %v1435_v4, %v1437_v24  ;;  %v1110_v51 = vshrl.u32 %v2658_v15, 16 }
  0xed   : > { %2581 = vmatprep.mubr.msk.bf16.mxu1 %vm2671_vm0, %v2670_v1  ;;  %v2332_v57 = vpop.f32.mrf.mxu0 }
  0xee   : > { %v2407_v50 = vpop.f32.mrf.mxu1 }
  0xef   : > { %v540_v61 = vpop.f32.mrf.mxu0  ;;  %2506 = vmatmul.mubr.msk.bf16.gmra.mxu0 %vm430_vm1, %v1085_v54  ;;  %v1109_v50 = vsel %vm277_vm2, %v1104_v41, %v1108_v42 }
  0xf0   : > { %v758_v53 = vpop.f32.mrf.mxu1  ;;  %v2991_v62 = vadd.f32 %v755_v45, %v540_v61  ;;  %2509 = vmatprep.mubr.msk.bf16.mxu0 %vm2671_vm0, %v2670_v1  ;;  %v1439_v45 = vrot.slane %v2659_v36, 1  ;;  %v1112_v61 = vor.u32 %v1110_v51, %v1108_v42  ;;  %v1128_v42 = vor.u32 %v1126_v32, %v1124_v22 }
  0xf1   : > { %v2335_v3 = vpop.f32.mrf.mxu0 }
  0xf2   : > { %v2408_v60 = vpop.f32.mrf.mxu1  ;;  %v1440_v55 = vsel %vm1409_vm3, %v1437_v24, %v1439_v45 }
  0xf3   : > { %v543_v6 = vpop.f32.mrf.mxu0 }
  0xf4   : > { %v763_v0 = vpop.f32.mrf.mxu1  ;;  %2582 = vmatmul.mubr.msk.bf16.gmra.mxu1 %vm430_vm1, %v1434_v58  ;;  %v2998_v7 = vadd.f32 %v758_v53, %v543_v6  ;;  %v1114_v53 = vshll.u32 %v2659_v36, 16 }
  0xf5   : > { %2585 = vmatprep.mubr.msk.bf16.mxu1 %vm2671_vm0, %v2670_v1  ;;  %v2336_v13 = vpop.f32.mrf.mxu0 }
  0xf6   : > { %v2411_v5 = vpop.f32.mrf.mxu1  ;;  %v1116_v63 = vrot.slane %v1114_v53, 1  ;;  %v1442_v13 = vsel %vm1409_vm3, %v1439_v45, %v1441_v2 }
  0xf7   : > { %v548_v18 = vpop.f32.mrf.mxu0  ;;  %2510 = vmatmul.mubr.msk.bf16.gmra.mxu0 %vm430_vm1, %v1093_v10  ;;  %v1118_v10 = vshrl.u32 %v2659_v36, 16 }
  0xf8   : > { %v766_v9 = vpop.f32.mrf.mxu1  ;;  %v3004_v19 = vadd.f32 %v763_v0, %v548_v18  ;;  %2513 = vmatprep.mubr.msk.bf16.mxu0 %vm2671_vm0, %v2670_v1 }
  0xf9   : > { %v2339_v23 = vpop.f32.mrf.mxu0  ;;  %v1120_v21 = vor.u32 %v1118_v10, %v1116_v63 }
  0xfa   : > { %v2412_v17 = vpop.f32.mrf.mxu1 }
  0xfb   : > { %v551_v27 = vpop.f32.mrf.mxu0  ;;  %v1125_v31 = vsel %vm277_vm2, %v1120_v21, %v1124_v22 }
  0xfc   : > { %v771_v20 = vpop.f32.mrf.mxu1  ;;  %2586 = vmatmul.mubr.msk.bf16.gmra.mxu1 %vm430_vm1, %v1436_v14  ;;  %v3011_v28 = vadd.f32 %v766_v9, %v551_v27  ;;  %v1117_v9 = vsel %vm277_vm2, %v1112_v61, %v1116_v63  ;;  %v2661_v14 = vld [vmem:[%s2722_s22 + $0x90] ss:$0 sps:$4 sm:$0x11]  }
  0xfd   : > { %2589 = vmatprep.mubr.msk.bf16.mxu1 %vm2671_vm0, %v2670_v1  ;;  %v2340_v33 = vpop.f32.mrf.mxu0  ;;  %v1443_v24 = vrot.slane %v2661_v14, 1 }
  0xfe   : > { %v2415_v25 = vpop.f32.mrf.mxu1  ;;  %v1130_v33 = vshll.u32 %v2661_v14, 16 }
  0xff   : > { %v556_v38 = vpop.f32.mrf.mxu0  ;;  %2514 = vmatmul.mubr.msk.bf16.gmra.mxu0 %vm430_vm1, %v1101_v30  ;;  %v1444_v36 = vsel %vm1409_vm3, %v1441_v2, %v1443_v24 }
 0x100   : > { %v774_v29 = vpop.f32.mrf.mxu1  ;;  %v3017_v39 = vadd.f32 %v771_v20, %v556_v38  ;;  %2517 = vmatprep.mubr.msk.bf16.mxu0 %vm2671_vm0, %v2670_v1 }
 0x101   : > { %v2343_v43 = vpop.f32.mrf.mxu0 }
 0x102   : > { %v2416_v37 = vpop.f32.mrf.mxu1  ;;  %v1132_v43 = vrot.slane %v1130_v33, 1 }
 0x103   : > { %v559_v47 = vpop.f32.mrf.mxu0 }
 0x104   : > { %v779_v40 = vpop.f32.mrf.mxu1  ;;  %2590 = vmatmul.mubr.msk.bf16.gmra.mxu1 %vm430_vm1, %v1438_v35  ;;  %v3024_v48 = vadd.f32 %v774_v29, %v559_v47  ;;  %v1133_v51 = vsel %vm277_vm2, %v1128_v42, %v1132_v43 }
 0x105   : > { %2593 = vmatprep.mubr.msk.bf16.mxu1 %vm2671_vm0, %v2670_v1  ;;  %v2344_v54 = vpop.f32.mrf.mxu0 }
 0x106   : > { %v2419_v46 = vpop.f32.mrf.mxu1 }
 0x107   : > { %v564_v58 = vpop.f32.mrf.mxu0  ;;  %2518 = vmatmul.mubr.msk.bf16.gmra.mxu0 %vm430_vm1, %v1109_v50 }
 0x108   : > { %v782_v49 = vpop.f32.mrf.mxu1  ;;  %v3030_v59 = vadd.f32 %v779_v40, %v564_v58  ;;  %2521 = vmatprep.mubr.msk.bf16.mxu0 %vm2671_vm0, %v2670_v1 }
 0x109   : > { %v2347_v0 = vpop.f32.mrf.mxu0 }
 0x10a   : > { %v2420_v57 = vpop.f32.mrf.mxu1 }
 0x10b   : > { %v567_v4 = vpop.f32.mrf.mxu0 }
 0x10c   : > { %v787_v60 = vpop.f32.mrf.mxu1  ;;  %2594 = vmatmul.mubr.msk.bf16.gmra.mxu1 %vm430_vm1, %v1440_v55  ;;  %v3037_v5 = vadd.f32 %v782_v49, %v567_v4 }
 0x10d   : > { %2597 = vmatprep.mubr.msk.bf16.mxu1 %vm2671_vm0, %v2670_v1  ;;  %v2348_v12 = vpop.f32.mrf.mxu0 }
 0x10e   : > { %v2423_v3 = vpop.f32.mrf.mxu1 }
 0x10f   : > { %v572_v17 = vpop.f32.mrf.mxu0  ;;  %2522 = vmatmul.mubr.msk.bf16.gmra.mxu0 %vm430_vm1, %v1117_v9 }
 0x110   : > { %v790_v6 = vpop.f32.mrf.mxu1  ;;  %v3043_v18 = vadd.f32 %v787_v60, %v572_v17  ;;  %2525 = vmatprep.mubr.msk.bf16.mxu0 %vm2671_vm0, %v2670_v1 }
 0x111   : > { %v2351_v23 = vpop.f32.mrf.mxu0 }
 0x112   : > { %v2424_v15 = vpop.f32.mrf.mxu1 }
 0x113   : > { %v575_v27 = vpop.f32.mrf.mxu0 }
 0x114   : > { %v795_v20 = vpop.f32.mrf.mxu1  ;;  %2598 = vmatmul.mubr.msk.bf16.gmra.mxu1 %vm430_vm1, %v1442_v13  ;;  %v3050_v29 = vadd.f32 %v790_v6, %v575_v27 }
 0x115   : > { %2601 = vmatprep.mubr.msk.bf16.mxu1 %vm2671_vm0, %v2670_v1  ;;  %v2352_v35 = vpop.f32.mrf.mxu0 }
 0x116   : > { %v2427_v25 = vpop.f32.mrf.mxu1 }
 0x117   : > { %v580_v38 = vpop.f32.mrf.mxu0  ;;  %2526 = vmatmul.mubr.msk.bf16.gmra.mxu0 %vm430_vm1, %v1125_v31 }
 0x118   : > { %v798_v30 = vpop.f32.mrf.mxu1  ;;  %v3055_v40 = vadd.f32 %v795_v20, %v580_v38  ;;  %2529 = vmatprep.mubr.msk.bf16.mxu0 %vm2671_vm0, %v2670_v1 }
 0x119   : > { %v2355_v45 = vpop.f32.mrf.mxu0 }
 0x11a   : > { %v2428_v37 = vpop.f32.mrf.mxu1 }
 0x11b   : > { %v583_v47 = vpop.f32.mrf.mxu0 }
 0x11c   : > { %v803_v41 = vpop.f32.mrf.mxu1  ;;  %2602 = vmatmul.mubr.msk.bf16.gmra.mxu1 %vm430_vm1, %v1444_v36  ;;  %v3060_v49 = vadd.f32 %v798_v30, %v583_v47 }
 0x11d   : > { %v2356_v53 = vpop.f32.mrf.mxu0 }
 0x11e   : > { %v2431_v46 = vpop.f32.mrf.mxu1 }
 0x11f   : > { %v588_v55 = vpop.f32.mrf.mxu0  ;;  %2530 = vmatmul.mubr.msk.bf16.gmra.mxu0 %vm430_vm1, %v1133_v51 }
 0x120   : > { %v806_v50 = vpop.f32.mrf.mxu1  ;;  %v3064_v56 = vadd.f32 %v803_v41, %v588_v55 }
 0x121   : > { %v2359_v58 = vpop.f32.mrf.mxu0 }
 0x122   : > { %v2432_v54 = vpop.f32.mrf.mxu1 }
 0x123   : > { %v591_v60 = vpop.f32.mrf.mxu0 }
 0x124   : > { %v811_v57 = vpop.f32.mrf.mxu1  ;;  %v3066_v61 = vadd.f32 %v806_v50, %v591_v60 }
 0x125   : > { %v2360_v0 = vpop.f32.mrf.mxu0 }
 0x126   : > { %v2435_v1 = vpop.f32.mrf.mxu1 }
 0x127   : > { %v596_v3 = vpop.f32.mrf.mxu0 }
 0x128   : > { %v814_v63 = vpop.f32.mrf.mxu1  ;;  %v3068_v4 = vadd.f32 %v811_v57, %v596_v3 }
 0x129   : > { %v2363_v9 = vpop.f32.mrf.mxu0 }
 0x12a   : > { %v2436_v2 = vpop.f32.mrf.mxu1 }
 0x12b   : > { %v599_v11 = vpop.f32.mrf.mxu0 }
 0x12c   : > { %v819_v6 = vpop.f32.mrf.mxu1  ;;  %v3070_v12 = vadd.f32 %v814_v63, %v599_v11 }
 0x12d   : > { %v2364_v14 = vpop.f32.mrf.mxu0 }
 0x12e   : > { %v2439_v10 = vpop.f32.mrf.mxu1 }
 0x12f   : > { %v604_v17 = vpop.f32.mrf.mxu0 }
 0x130   : > { %v822_v13 = vpop.f32.mrf.mxu1  ;;  %v3072_v20 = vadd.f32 %v819_v6, %v604_v17 }
 0x131   : > { %v2367_v22 = vpop.f32.mrf.mxu0 }
 0x132   : > { %v2440_v15 = vpop.f32.mrf.mxu1 }
 0x133   : > { %v607_v24 = vpop.f32.mrf.mxu0 }
 0x134   : > { %v827_v21 = vpop.f32.mrf.mxu1  ;;  %v3074_v25 = vadd.f32 %v822_v13, %v607_v24 }
 0x135   : > { %v2368_v30 = vpop.f32.mrf.mxu0 }
 0x136   : > { %v2443_v23 = vpop.f32.mrf.mxu1 }
 0x137   : > { %v612_v32 = vpop.f32.mrf.mxu0 }
 0x138   : > { %v830_v27 = vpop.f32.mrf.mxu1  ;;  %v3076_v33 = vadd.f32 %v827_v21, %v612_v32 }
 0x139   : > { %v2371_v36 = vpop.f32.mrf.mxu0 }
 0x13a   : > { %v2444_v31 = vpop.f32.mrf.mxu1 }
 0x13b   : > { %v615_v38 = vpop.f32.mrf.mxu0 }
 0x13c   : > { %v835_v35 = vpop.f32.mrf.mxu1  ;;  %v3078_v41 = vadd.f32 %v830_v27, %v615_v38 }
 0x13d   : > { %v2372_v43 = vpop.f32.mrf.mxu0 }
 0x13e   : > { %v2447_v37 = vpop.f32.mrf.mxu1 }
 0x13f   : > { %v620_v46 = vpop.f32.mrf.mxu0 }
 0x140   : > { %v838_v42 = vpop.f32.mrf.mxu1  ;;  %v3080_v47 = vadd.f32 %v835_v35, %v620_v46 }
 0x141   : > { %v2375_v51 = vpop.f32.mrf.mxu0 }
 0x142   : > { %v2448_v45 = vpop.f32.mrf.mxu1 }
 0x143   : > { %v623_v54 = vpop.f32.mrf.mxu0 }
 0x144   : > { %v843_v50 = vpop.f32.mrf.mxu1  ;;  %v3082_v55 = vadd.f32 %v838_v42, %v623_v54 }
 0x145   : > { %v2376_v58 = vpop.f32.mrf.mxu0 }
 0x146   : > { %v2451_v53 = vpop.f32.mrf.mxu1 }
 0x147   : > { %v628_v60 = vpop.f32.mrf.mxu0 }
 0x148   : > { %v846_v57 = vpop.f32.mrf.mxu1  ;;  %v3084_v63 = vadd.f32 %v843_v50, %v628_v60 }
 0x149   : > { %v2379_v2 = vpop.f32.mrf.mxu0 }
 0x14a   : > { %v2452_v1 = vpop.f32.mrf.mxu1 }
 0x14b   : > { %v631_v6 = vpop.f32.mrf.mxu0 }
 0x14c   : > { %v851_v0 = vpop.f32.mrf.mxu1  ;;  %v3086_v9 = vadd.f32 %v846_v57, %v631_v6 }
 0x14d   : > { %v2380_v11 = vpop.f32.mrf.mxu0 }
 0x14e   : > { %v2455_v3 = vpop.f32.mrf.mxu1 }
 0x14f   : > { %v636_v14 = vpop.f32.mrf.mxu0 }
 0x150   : > { %v854_v10 = vpop.f32.mrf.mxu1  ;;  %v3088_v15 = vadd.f32 %v851_v0, %v636_v14 }
 0x151   : > { %v2383_v21 = vpop.f32.mrf.mxu0 }
 0x152   : > { %v2456_v13 = vpop.f32.mrf.mxu1 }
 0x153   : > { %v639_v23 = vpop.f32.mrf.mxu0 }
 0x154   : > { %v859_v17 = vpop.f32.mrf.mxu1  ;;  %v3090_v24 = vadd.f32 %v854_v10, %v639_v23 }
 0x155   : > { %v2384_v30 = vpop.f32.mrf.mxu0 }
 0x156   : > { %v2459_v22 = vpop.f32.mrf.mxu1 }
 0x157   : > { %v644_v32 = vpop.f32.mrf.mxu0 }
 0x158   : > { %v862_v27 = vpop.f32.mrf.mxu1  ;;  %v3092_v35 = vadd.f32 %v859_v17, %v644_v32 }
 0x159   : > { %v2387_v37 = vpop.f32.mrf.mxu0 }
 0x15a   : > { %v2460_v31 = vpop.f32.mrf.mxu1 }
 0x15b   : > { %v647_v42 = vpop.f32.mrf.mxu0 }
 0x15c   : > { %v1542_v36 = vpop.f32.mrf.mxu1  ;;  %v3094_v43 = vadd.f32 %v862_v27, %v647_v42 }
 0x15d   : > { %v2388_v46 = vpop.f32.mrf.mxu0 }
 0x15e   : > { %v2539_v38 = vpop.f32.mrf.mxu1 }
 0x15f   : > { %v1231_v51 = vpop.f32.mrf.mxu0 }
 0x160   : > { %v1545_v45 = vpop.f32.mrf.mxu1  ;;  %v1366_v53 = vadd.f32 %v1231_v51, %v2952_v8 }
 0x161   : > { %v2467_v57 = vpop.f32.mrf.mxu0 }
 0x162   : > { %v2540_v50 = vpop.f32.mrf.mxu1  ;;  %v1677_v58 = vadd.f32 %v1542_v36, %v1366_v53 }
 0x163   : > { %v1234_v60 = vpop.f32.mrf.mxu0 }
 0x164   : > { %v1550_v54 = vpop.f32.mrf.mxu1  ;;  %vm1711_vm4 = vcmp.ge.f32.partialorder %v1677_v58, 0.0  ;;  %v1745_v0 = vmul.f32 0.2, %v1677_v58  ;;  %v1367_v2 = vadd.f32 %v1234_v60, %v2959_v16 }
 0x165   : > { %v2468_v6 = vpop.f32.mrf.mxu0 }
 0x166   : > { %v2543_v1 = vpop.f32.mrf.mxu1  ;;  %v1779_v10 = vsel %vm1711_vm4, %v1677_v58, %v1745_v0  ;;  %v1678_v8 = vadd.f32 %v1545_v45, %v1367_v2 }
 0x167   : > { %v2207_v13 = vpack.c.bf16 %v1779_v10, %v1779_v10  ;;  %v1239_v14 = vpop.f32.mrf.mxu0 }
 0x168   : > { %v1553_v3 = vpop.f32.mrf.mxu1  ;;  %vm1712_vm6 = vcmp.ge.f32.partialorder %v1678_v8, 0.0  ;;  %v1746_v17 = vmul.f32 0.2, %v1678_v8  ;;  %v1368_v21 = vadd.f32 %v1239_v14, %v2965_v26 }
 0x169   : > { %1950 = vst.msk [vmem:[%s3102_s6] sm:$0xf] %vm1949_vm5, %v2207_v13  ;;  %v2471_v22 = vpop.f32.mrf.mxu0 }
 0x16a   : > { %v2544_v11 = vpop.f32.mrf.mxu1  ;;  %v1780_v23 = vsel %vm1712_vm6, %v1678_v8, %v1746_v17  ;;  %v1679_v27 = vadd.f32 %v1550_v54, %v1368_v21 }
 0x16b   : > { %v2208_v31 = vpack.c.bf16 %v1780_v23, %v1780_v23  ;;  %v1242_v32 = vpop.f32.mrf.mxu0 }
 0x16c   : > { %v1558_v16 = vpop.f32.mrf.mxu1  ;;  %vm1713_vm7 = vcmp.ge.f32.partialorder %v1679_v27, 0.0  ;;  %v1747_v36 = vmul.f32 0.2, %v1679_v27  ;;  %v1369_v37 = vadd.f32 %v1242_v32, %v2972_v34 }
 0x16d   : > { %1951 = vst.msk [vmem:[%s3102_s6 + $0x4] sm:$0xf] %vm1949_vm5, %v2208_v31  ;;  %v2472_v42 = vpop.f32.mrf.mxu0 }
 0x16e   : > { %v2547_v30 = vpop.f32.mrf.mxu1  ;;  %v1781_v45 = vsel %vm1713_vm7, %v1679_v27, %v1747_v36  ;;  %v1680_v26 = vadd.f32 %v1553_v3, %v1369_v37 }
 0x16f   : > { %v2209_v50 = vpack.c.bf16 %v1781_v45, %v1781_v45  ;;  %v1247_v51 = vpop.f32.mrf.mxu0 }
 0x170   : > { %v1561_v38 = vpop.f32.mrf.mxu1  ;;  %vm1714_vm8 = vcmp.ge.f32.partialorder %v1680_v26, 0.0  ;;  %v1748_v53 = vmul.f32 0.2, %v1680_v26  ;;  %v1370_v54 = vadd.f32 %v1247_v51, %v2978_v44 }
 0x171   : > { %1952 = vst.msk [vmem:[%s3102_s6 + $0x8] sm:$0xf] %vm1949_vm5, %v2209_v50  ;;  %v2475_v58 = vpop.f32.mrf.mxu0 }
 0x172   : > { %v2548_v46 = vpop.f32.mrf.mxu1  ;;  %v1782_v1 = vsel %vm1714_vm8, %v1680_v26, %v1748_v53  ;;  %v1681_v34 = vadd.f32 %v1558_v16, %v1370_v54 }
 0x173   : > { %v2210_v0 = vpack.c.bf16 %v1782_v1, %v1782_v1  ;;  %v1250_v2 = vpop.f32.mrf.mxu0 }
 0x174   : > { %v1566_v57 = vpop.f32.mrf.mxu1  ;;  %vm1715_vm9 = vcmp.ge.f32.partialorder %v1681_v34, 0.0  ;;  %v1749_v3 = vmul.f32 0.2, %v1681_v34  ;;  %v1371_v6 = vadd.f32 %v1250_v2, %v2985_v52 }
 0x175   : > { %1953 = vst.msk [vmem:[%s3102_s6 + $0xc] sm:$0xf] %vm1949_vm5, %v2210_v0  ;;  %v2476_v8 = vpop.f32.mrf.mxu0 }
 0x176   : > { %v2551_v60 = vpop.f32.mrf.mxu1  ;;  %v1783_v11 = vsel %vm1715_vm9, %v1681_v34, %v1749_v3  ;;  %v1682_v44 = vadd.f32 %v1561_v38, %v1371_v6 }
 0x177   : > { %v2211_v14 = vpack.c.bf16 %v1783_v11, %v1783_v11  ;;  %v1255_v17 = vpop.f32.mrf.mxu0 }
 0x178   : > { %v1569_v10 = vpop.f32.mrf.mxu1  ;;  %vm1716_vm10 = vcmp.ge.f32.partialorder %v1682_v44, 0.0  ;;  %v1750_v21 = vmul.f32 0.2, %v1682_v44  ;;  %v1372_v16 = vadd.f32 %v1255_v17, %v2991_v62 }
 0x179   : > { %1954 = vst.msk [vmem:[%s3102_s6 + $0x10] sm:$0xf] %vm1949_vm5, %v2211_v14  ;;  %v2479_v23 = vpop.f32.mrf.mxu0 }
 0x17a   : > { %v2552_v13 = vpop.f32.mrf.mxu1  ;;  %v1784_v27 = vsel %vm1716_vm10, %v1682_v44, %v1750_v21  ;;  %v1683_v52 = vadd.f32 %v1566_v57, %v1372_v16 }
 0x17b   : > { %v2212_v31 = vpack.c.bf16 %v1784_v27, %v1784_v27  ;;  %v1258_v32 = vpop.f32.mrf.mxu0 }
 0x17c   : > { %v1574_v22 = vpop.f32.mrf.mxu1  ;;  %vm1717_vm11 = vcmp.ge.f32.partialorder %v1683_v52, 0.0  ;;  %v1751_v36 = vmul.f32 0.2, %v1683_v52  ;;  %v1373_v37 = vadd.f32 %v1258_v32, %v2998_v7 }
 0x17d   : > { %1955 = vst.msk [vmem:[%s3102_s6 + $0x14] sm:$0xf] %vm1949_vm5, %v2212_v31  ;;  %v2480_v42 = vpop.f32.mrf.mxu0 }
 0x17e   : > { %v2555_v30 = vpop.f32.mrf.mxu1  ;;  %v1785_v45 = vsel %vm1717_vm11, %v1683_v52, %v1751_v36  ;;  %v1684_v62 = vadd.f32 %v1569_v10, %v1373_v37 }
 0x17f   : > { %v2213_v46 = vpack.c.bf16 %v1785_v45, %v1785_v45  ;;  %v1263_v50 = vpop.f32.mrf.mxu0 }
 0x180   : > { %v1577_v38 = vpop.f32.mrf.mxu1  ;;  %vm1718_vm12 = vcmp.ge.f32.partialorder %v1684_v62, 0.0  ;;  %v1752_v51 = vmul.f32 0.2, %v1684_v62  ;;  %v1374_v53 = vadd.f32 %v1263_v50, %v3004_v19 }
 0x181   : > { %1956 = vst.msk [vmem:[%s3102_s6 + $0x18] sm:$0xf] %vm1949_vm5, %v2213_v46  ;;  %v2483_v57 = vpop.f32.mrf.mxu0 }
 0x182   : > { %v2556_v26 = vpop.f32.mrf.mxu1  ;;  %v1786_v58 = vsel %vm1718_vm12, %v1684_v62, %v1752_v51  ;;  %v1685_v7 = vadd.f32 %v1574_v22, %v1374_v53 }
 0x183   : > { %v2214_v34 = vpack.c.bf16 %v1786_v58, %v1786_v58  ;;  %v1266_v60 = vpop.f32.mrf.mxu0 }
 0x184   : > { %v1582_v54 = vpop.f32.mrf.mxu1  ;;  %vm1719_vm13 = vcmp.ge.f32.partialorder %v1685_v7, 0.0  ;;  %v1753_v0 = vmul.f32 0.2, %v1685_v7  ;;  %v1375_v2 = vadd.f32 %v1266_v60, %v3011_v28 }
 0x185   : > { %1957 = vst.msk [vmem:[%s3102_s6 + $0x1c] sm:$0xf] %vm1949_vm5, %v2214_v34  ;;  %v2484_v6 = vpop.f32.mrf.mxu0 }
 0x186   : > { %v2559_v1 = vpop.f32.mrf.mxu1  ;;  %v1787_v10 = vsel %vm1719_vm13, %v1685_v7, %v1753_v0  ;;  %v1686_v19 = vadd.f32 %v1577_v38, %v1375_v2 }
 0x187   : > { %v2215_v11 = vpack.c.bf16 %v1787_v10, %v1787_v10  ;;  %v1271_v44 = vpop.f32.mrf.mxu0 }
 0x188   : > { %v1585_v3 = vpop.f32.mrf.mxu1  ;;  %vm1720_vm14 = vcmp.ge.f32.partialorder %v1686_v19, 0.0  ;;  %v1754_v13 = vmul.f32 0.2, %v1686_v19  ;;  %v1376_v14 = vadd.f32 %v1271_v44, %v3017_v39 }
 0x189   : > { %1958 = vst.msk [vmem:[%s3102_s6 + $0x20] sm:$0xf] %vm1949_vm5, %v2215_v11  ;;  %v2487_v21 = vpop.f32.mrf.mxu0 }
 0x18a   : > { %v2560_v8 = vpop.f32.mrf.mxu1  ;;  %v1788_v16 = vsel %vm1720_vm14, %v1686_v19, %v1754_v13  ;;  %v1687_v28 = vadd.f32 %v1582_v54, %v1376_v14 }
 0x18b   : > { %v2216_v23 = vpack.c.bf16 %v1788_v16, %v1788_v16  ;;  %v1274_v27 = vpop.f32.mrf.mxu0 }
 0x18c   : > { %v1590_v17 = vpop.f32.mrf.mxu1  ;;  %vm1721_vm15 = vcmp.ge.f32.partialorder %v1687_v28, 0.0  ;;  %v1755_v52 = vmul.f32 0.2, %v1687_v28  ;;  %v1377_v30 = vadd.f32 %v1274_v27, %v3024_v48 }
 0x18d   : > { %1959 = vst.msk [vmem:[%s3102_s6 + $0x24] sm:$0xf] %vm1949_vm5, %v2216_v23  ;;  %v2488_v32 = vpop.f32.mrf.mxu0 }
 0x18e   : > { %v2563_v22 = vpop.f32.mrf.mxu1  ;;  %v1789_v36 = vsel %vm1721_vm15, %v1687_v28, %v1755_v52  ;;  %v1688_v39 = vadd.f32 %v1585_v3, %v1377_v30 }
 0x18f   : > { %v2217_v38 = vpack.c.bf16 %v1789_v36, %v1789_v36  ;;  %v1279_v42 = vpop.f32.mrf.mxu0 }
 0x190   : > { %v1593_v31 = vpop.f32.mrf.mxu1  ;;  %vm1722_vm0 = vcmp.ge.f32.partialorder %v1688_v39, 0.0  ;;  %v1756_v45 = vmul.f32 0.2, %v1688_v39  ;;  %v1378_v62 = vadd.f32 %v1279_v42, %v3030_v59 }
 0x191   : > { %1960 = vst.msk [vmem:[%s3102_s6 + $0x28] sm:$0xf] %vm1949_vm5, %v2217_v38  ;;  %v2491_v46 = vpop.f32.mrf.mxu0 }
 0x192   : > { %v2564_v37 = vpop.f32.mrf.mxu1  ;;  %v1790_v50 = vsel %vm1722_vm0, %v1688_v39, %v1756_v45  ;;  %v1689_v48 = vadd.f32 %v1590_v17, %v1378_v62 }
 0x193   : > { %v2218_v53 = vpack.c.bf16 %v1790_v50, %v1790_v50  ;;  %v1282_v54 = vpop.f32.mrf.mxu0 }
 0x194   : > { %v1598_v26 = vpop.f32.mrf.mxu1  ;;  %vm1723_vm1 = vcmp.ge.f32.partialorder %v1689_v48, 0.0  ;;  %v1757_v57 = vmul.f32 0.2, %v1689_v48  ;;  %v1379_v58 = vadd.f32 %v1282_v54, %v3037_v5 }
 0x195   : > { %1961 = vst.msk [vmem:[%s3102_s6 + $0x2c] sm:$0xf] %vm1949_vm5, %v2218_v53  ;;  %v2492_v1 = vpop.f32.mrf.mxu0 }
 0x196   : > { %v2567_v51 = vpop.f32.mrf.mxu1  ;;  %v1791_v34 = vsel %vm1723_vm1, %v1689_v48, %v1757_v57  ;;  %v1690_v59 = vadd.f32 %v1593_v31, %v1379_v58 }
 0x197   : > { %v2219_v0 = vpack.c.bf16 %v1791_v34, %v1791_v34  ;;  %v1287_v2 = vpop.f32.mrf.mxu0 }
 0x198   : > { %v1601_v7 = vpop.f32.mrf.mxu1  ;;  %vm1724_vm2 = vcmp.ge.f32.partialorder %v1690_v59, 0.0  ;;  %v1758_v3 = vmul.f32 0.2, %v1690_v59  ;;  %v1380_v6 = vadd.f32 %v1287_v2, %v3043_v18 }
 0x199   : > { %1962 = vst.msk [vmem:[%s3102_s6 + $0x30] sm:$0xf] %vm1949_vm5, %v2219_v0  ;;  %v2495_v19 = vpop.f32.mrf.mxu0 }
 0x19a   : > { %v2568_v60 = vpop.f32.mrf.mxu1  ;;  %v1792_v8 = vsel %vm1724_vm2, %v1690_v59, %v1758_v3  ;;  %v1691_v5 = vadd.f32 %v1598_v26, %v1380_v6 }
 0x19b   : > { %v2220_v44 = vpack.c.bf16 %v1792_v8, %v1792_v8  ;;  %v1290_v13 = vpop.f32.mrf.mxu0 }
 0x19c   : > { %v1606_v10 = vpop.f32.mrf.mxu1  ;;  %vm1725_vm3 = vcmp.ge.f32.partialorder %v1691_v5, 0.0  ;;  %v1759_v14 = vmul.f32 0.2, %v1691_v5  ;;  %v1381_v17 = vadd.f32 %v1290_v13, %v3050_v29 }
 0x19d   : > { %1963 = vst.msk [vmem:[%s3102_s6 + $0x34] sm:$0xf] %vm1949_vm5, %v2220_v44  ;;  %v2496_v16 = vpop.f32.mrf.mxu0 }
 0x19e   : > { %v2571_v11 = vpop.f32.mrf.mxu1  ;;  %v1793_v28 = vsel %vm1725_vm3, %v1691_v5, %v1759_v14  ;;  %v1692_v18 = vadd.f32 %v1601_v7, %v1381_v17 }
 0x19f   : > { %v2221_v23 = vpack.c.bf16 %v1793_v28, %v1793_v28  ;;  %v1295_v27 = vpop.f32.mrf.mxu0 }
 0x1a0   : > { %v1609_v21 = vpop.f32.mrf.mxu1  ;;  %vm1726_vm4 = vcmp.ge.f32.partialorder %v1692_v18, 0.0  ;;  %v1760_v52 = vmul.f32 0.2, %v1692_v18  ;;  %v1382_v30 = vadd.f32 %v1295_v27, %v3055_v40 }
 0x1a1   : > { %1964 = vst.msk [vmem:[%s3102_s6 + $0x38] sm:$0xf] %vm1949_vm5, %v2221_v23  ;;  %v2499_v32 = vpop.f32.mrf.mxu0 }
 0x1a2   : > { %v2572_v22 = vpop.f32.mrf.mxu1  ;;  %v1794_v36 = vsel %vm1726_vm4, %v1692_v18, %v1760_v52  ;;  %v1693_v29 = vadd.f32 %v1606_v10, %v1382_v30 }
 0x1a3   : > { %v2222_v37 = vpack.c.bf16 %v1794_v36, %v1794_v36  ;;  %v1298_v38 = vpop.f32.mrf.mxu0 }
 0x1a4   : > { %v1614_v31 = vpop.f32.mrf.mxu1  ;;  %vm1727_vm6 = vcmp.ge.f32.partialorder %v1693_v29, 0.0  ;;  %v1761_v42 = vmul.f32 0.2, %v1693_v29  ;;  %v1383_v45 = vadd.f32 %v1298_v38, %v3060_v49 }
 0x1a5   : > { %1965 = vst.msk [vmem:[%s3102_s6 + $0x3c] sm:$0xf] %vm1949_vm5, %v2222_v37  ;;  %v2500_v26 = vpop.f32.mrf.mxu0 }
 0x1a6   : > { %v2575_v39 = vpop.f32.mrf.mxu1  ;;  %v1795_v46 = vsel %vm1727_vm6, %v1693_v29, %v1761_v42  ;;  %v1694_v40 = vadd.f32 %v1609_v21, %v1383_v45 }
 0x1a7   : > { %v2223_v48 = vpack.c.bf16 %v1795_v46, %v1795_v46  ;;  %v1303_v51 = vpop.f32.mrf.mxu0 }
 0x1a8   : > { %v1617_v62 = vpop.f32.mrf.mxu1  ;;  %vm1728_vm7 = vcmp.ge.f32.partialorder %v1694_v40, 0.0  ;;  %v1762_v53 = vmul.f32 0.2, %v1694_v40  ;;  %v1384_v54 = vadd.f32 %v1303_v51, %v3064_v56 }
 0x1a9   : > { %1966 = vst.msk [vmem:[%s3102_s6 + $0x40] sm:$0xf] %vm1949_vm5, %v2223_v48  ;;  %v2503_v58 = vpop.f32.mrf.mxu0 }
 0x1aa   : > { %v2576_v50 = vpop.f32.mrf.mxu1  ;;  %v1796_v7 = vsel %vm1728_vm7, %v1694_v40, %v1762_v53  ;;  %v1695_v49 = vadd.f32 %v1614_v31, %v1384_v54 }
 0x1ab   : > { %v2224_v34 = vpack.c.bf16 %v1796_v7, %v1796_v7  ;;  %v1306_v59 = vpop.f32.mrf.mxu0 }
 0x1ac   : > { %v1622_v57 = vpop.f32.mrf.mxu1  ;;  %vm1729_vm8 = vcmp.ge.f32.partialorder %v1695_v49, 0.0  ;;  %v1763_v60 = vmul.f32 0.2, %v1695_v49  ;;  %v1385_v0 = vadd.f32 %v1306_v59, %v3066_v61 }
 0x1ad   : > { %1967 = vst.msk [vmem:[%s3102_s6 + $0x44] sm:$0xf] %vm1949_vm5, %v2224_v34  ;;  %v2504_v3 = vpop.f32.mrf.mxu0 }
 0x1ae   : > { %v2579_v1 = vpop.f32.mrf.mxu1  ;;  %v1797_v6 = vsel %vm1729_vm8, %v1695_v49, %v1763_v60  ;;  %v1696_v56 = vadd.f32 %v1617_v62, %v1385_v0 }
 0x1af   : > { %v2225_v19 = vpack.c.bf16 %v1797_v6, %v1797_v6  ;;  %v1311_v8 = vpop.f32.mrf.mxu0 }
 0x1b0   : > { %v1625_v2 = vpop.f32.mrf.mxu1  ;;  %vm1730_vm9 = vcmp.ge.f32.partialorder %v1696_v56, 0.0  ;;  %v1764_v5 = vmul.f32 0.2, %v1696_v56  ;;  %v1386_v11 = vadd.f32 %v1311_v8, %v3068_v4 }
 0x1b1   : > { %1968 = vst.msk [vmem:[%s3102_s6 + $0x48] sm:$0xf] %vm1949_vm5, %v2225_v19  ;;  %v2507_v13 = vpop.f32.mrf.mxu0 }
 0x1b2   : > { %v2580_v10 = vpop.f32.mrf.mxu1  ;;  %v1798_v14 = vsel %vm1730_vm9, %v1696_v56, %v1764_v5  ;;  %v1697_v61 = vadd.f32 %v1622_v57, %v1386_v11 }
 0x1b3   : > { %v2226_v21 = vpack.c.bf16 %v1798_v14, %v1798_v14  ;;  %v1314_v16 = vpop.f32.mrf.mxu0 }
 0x1b4   : > { %v1630_v44 = vpop.f32.mrf.mxu1  ;;  %vm1731_vm10 = vcmp.ge.f32.partialorder %v1697_v61, 0.0  ;;  %v1765_v28 = vmul.f32 0.2, %v1697_v61  ;;  %v1387_v18 = vadd.f32 %v1314_v16, %v3070_v12 }
 0x1b5   : > { %1969 = vst.msk [vmem:[%s3102_s6 + $0x4c] sm:$0xf] %vm1949_vm5, %v2226_v21  ;;  %v2508_v23 = vpop.f32.mrf.mxu0 }
 0x1b6   : > { %v2583_v17 = vpop.f32.mrf.mxu1  ;;  %v1799_v27 = vsel %vm1731_vm10, %v1697_v61, %v1765_v28  ;;  %v1698_v4 = vadd.f32 %v1625_v2, %v1387_v18 }
 0x1b7   : > { %v2227_v30 = vpack.c.bf16 %v1799_v27, %v1799_v27  ;;  %v1319_v31 = vpop.f32.mrf.mxu0 }
 0x1b8   : > { %v1633_v22 = vpop.f32.mrf.mxu1  ;;  %vm1732_vm11 = vcmp.ge.f32.partialorder %v1698_v4, 0.0  ;;  %v1766_v32 = vmul.f32 0.2, %v1698_v4  ;;  %v1388_v36 = vadd.f32 %v1319_v31, %v3072_v20 }
 0x1b9   : > { %1970 = vst.msk [vmem:[%s3102_s6 + $0x50] sm:$0xf] %vm1949_vm5, %v2227_v30  ;;  %v2511_v39 = vpop.f32.mrf.mxu0 }
 0x1ba   : > { %v2584_v52 = vpop.f32.mrf.mxu1  ;;  %v1800_v37 = vsel %vm1732_vm11, %v1698_v4, %v1766_v32  ;;  %v1699_v12 = vadd.f32 %v1630_v44, %v1388_v36 }
 0x1bb   : > { %v2228_v42 = vpack.c.bf16 %v1800_v37, %v1800_v37  ;;  %v1322_v45 = vpop.f32.mrf.mxu0 }
 0x1bc   : > { %v1638_v29 = vpop.f32.mrf.mxu1  ;;  %vm1733_vm12 = vcmp.ge.f32.partialorder %v1699_v12, 0.0  ;;  %v1767_v62 = vmul.f32 0.2, %v1699_v12  ;;  %v1389_v26 = vadd.f32 %v1322_v45, %v3074_v25 }
 0x1bd   : > { %1971 = vst.msk [vmem:[%s3102_s6 + $0x54] sm:$0xf] %vm1949_vm5, %v2228_v42  ;;  %v2512_v40 = vpop.f32.mrf.mxu0 }
 0x1be   : > { %v2587_v38 = vpop.f32.mrf.mxu1  ;;  %v1801_v50 = vsel %vm1733_vm12, %v1699_v12, %v1767_v62  ;;  %v1700_v20 = vadd.f32 %v1633_v22, %v1389_v26 }
 0x1bf   : > { %v2229_v51 = vpack.c.bf16 %v1801_v50, %v1801_v50  ;;  %v1327_v53 = vpop.f32.mrf.mxu0 }
 0x1c0   : > { %v1641_v46 = vpop.f32.mrf.mxu1  ;;  %vm1734_vm13 = vcmp.ge.f32.partialorder %v1700_v20, 0.0  ;;  %v1768_v54 = vmul.f32 0.2, %v1700_v20  ;;  %v1390_v57 = vadd.f32 %v1327_v53, %v3076_v33 }
 0x1c1   : > { %1972 = vst.msk [vmem:[%s3102_s6 + $0x58] sm:$0xf] %vm1949_vm5, %v2229_v51  ;;  %v2515_v7 = vpop.f32.mrf.mxu0 }
 0x1c2   : > { %v2588_v48 = vpop.f32.mrf.mxu1  ;;  %v1802_v49 = vsel %vm1734_vm13, %v1700_v20, %v1768_v54  ;;  %v1701_v25 = vadd.f32 %v1638_v29, %v1390_v57 }
 0x1c3   : > { %v2230_v34 = vpack.c.bf16 %v1802_v49, %v1802_v49  ;;  %v1330_v59 = vpop.f32.mrf.mxu0 }
 0x1c4   : > { %v1646_v58 = vpop.f32.mrf.mxu1  ;;  %vm1735_vm14 = vcmp.ge.f32.partialorder %v1701_v25, 0.0  ;;  %v1769_v60 = vmul.f32 0.2, %v1701_v25  ;;  %v1391_v0 = vadd.f32 %v1330_v59, %v3078_v41 }
 0x1c5   : > { %1973 = vst.msk [vmem:[%s3102_s6 + $0x5c] sm:$0xf] %vm1949_vm5, %v2230_v34  ;;  %v2516_v3 = vpop.f32.mrf.mxu0 }
 0x1c6   : > { %v2591_v1 = vpop.f32.mrf.mxu1  ;;  %v1803_v6 = vsel %vm1735_vm14, %v1701_v25, %v1769_v60  ;;  %v1702_v33 = vadd.f32 %v1641_v46, %v1391_v0 }
 0x1c7   : > { %v2231_v10 = vpack.c.bf16 %v1803_v6, %v1803_v6  ;;  %v1335_v19 = vpop.f32.mrf.mxu0 }
 0x1c8   : > { %v1649_v2 = vpop.f32.mrf.mxu1  ;;  %vm1736_vm15 = vcmp.ge.f32.partialorder %v1702_v33, 0.0  ;;  %v1770_v8 = vmul.f32 0.2, %v1702_v33  ;;  %v1392_v5 = vadd.f32 %v1335_v19, %v3080_v47 }
 0x1c9   : > { %1974 = vst.msk [vmem:[%s3102_s6 + $0x60] sm:$0xf] %vm1949_vm5, %v2231_v10  ;;  %v2519_v44 = vpop.f32.mrf.mxu0 }
 0x1ca   : > { %v2592_v56 = vpop.f32.mrf.mxu1  ;;  %v1804_v13 = vsel %vm1736_vm15, %v1702_v33, %v1770_v8  ;;  %v1703_v41 = vadd.f32 %v1646_v58, %v1392_v5 }
 0x1cb   : > { %v2232_v61 = vpack.c.bf16 %v1804_v13, %v1804_v13  ;;  %v1338_v17 = vpop.f32.mrf.mxu0 }
 0x1cc   : > { %v1654_v11 = vpop.f32.mrf.mxu1  ;;  %vm1737_vm0 = vcmp.ge.f32.partialorder %v1703_v41, 0.0  ;;  %v1771_v21 = vmul.f32 0.2, %v1703_v41  ;;  %v1393_v16 = vadd.f32 %v1338_v17, %v3082_v55 }
 0x1cd   : > { %1975 = vst.msk [vmem:[%s3102_s6 + $0x64] sm:$0xf] %vm1949_vm5, %v2232_v61  ;;  %v2520_v18 = vpop.f32.mrf.mxu0 }
 0x1ce   : > { %v2595_v14 = vpop.f32.mrf.mxu1  ;;  %v1805_v22 = vsel %vm1737_vm0, %v1703_v41, %v1771_v21  ;;  %v1704_v47 = vadd.f32 %v1649_v2, %v1393_v16 }
 0x1cf   : > { %v2233_v27 = vpack.c.bf16 %v1805_v22, %v1805_v22  ;;  %v1343_v4 = vpop.f32.mrf.mxu0 }
 0x1d0   : > { %v1657_v28 = vpop.f32.mrf.mxu1  ;;  %vm1738_vm1 = vcmp.ge.f32.partialorder %v1704_v47, 0.0  ;;  %v1772_v52 = vmul.f32 0.2, %v1704_v47  ;;  %v1394_v30 = vadd.f32 %v1343_v4, %v3084_v63 }
 0x1d1   : > { %1976 = vst.msk [vmem:[%s3102_s6 + $0x68] sm:$0xf] %vm1949_vm5, %v2233_v27  ;;  %v2523_v32 = vpop.f32.mrf.mxu0 }
 0x1d2   : > { %v2596_v23 = vpop.f32.mrf.mxu1  ;;  %v1806_v36 = vsel %vm1738_vm1, %v1704_v47, %v1772_v52  ;;  %v1705_v55 = vadd.f32 %v1654_v11, %v1394_v30 }
 0x1d3   : > { %v2234_v39 = vpack.c.bf16 %v1806_v36, %v1806_v36  ;;  %v1346_v37 = vpop.f32.mrf.mxu0 }
 0x1d4   : > { %v1662_v31 = vpop.f32.mrf.mxu1  ;;  %vm1739_vm2 = vcmp.ge.f32.partialorder %v1705_v55, 0.0  ;;  %v1773_v12 = vmul.f32 0.2, %v1705_v55  ;;  %v1395_v38 = vadd.f32 %v1346_v37, %v3086_v9 }
 0x1d5   : > { %1977 = vst.msk [vmem:[%s3102_s6 + $0x6c] sm:$0xf] %vm1949_vm5, %v2234_v39  ;;  %v2524_v45 = vpop.f32.mrf.mxu0 }
 0x1d6   : > { %v2599_v29 = vpop.f32.mrf.mxu1  ;;  %v1807_v62 = vsel %vm1739_vm2, %v1705_v55, %v1773_v12  ;;  %v1706_v63 = vadd.f32 %v1657_v28, %v1395_v38 }
 0x1d7   : > { %v2235_v46 = vpack.c.bf16 %v1807_v62, %v1807_v62  ;;  %v1351_v40 = vpop.f32.mrf.mxu0 }
 0x1d8   : > { %v1665_v42 = vpop.f32.mrf.mxu1  ;;  %vm1740_vm3 = vcmp.ge.f32.partialorder %v1706_v63, 0.0  ;;  %v1774_v50 = vmul.f32 0.2, %v1706_v63  ;;  %v1396_v20 = vadd.f32 %v1351_v40, %v3088_v15 }
 0x1d9   : > { %1978 = vst.msk [vmem:[%s3102_s6 + $0x70] sm:$0xf] %vm1949_vm5, %v2235_v46  ;;  %v2527_v51 = vpop.f32.mrf.mxu0 }
 0x1da   : > { %v2600_v26 = vpop.f32.mrf.mxu1  ;;  %v1808_v53 = vsel %vm1740_vm3, %v1706_v63, %v1774_v50  ;;  %v1707_v9 = vadd.f32 %v1662_v31, %v1396_v20 }
 0x1db   : > { %v2236_v57 = vpack.c.bf16 %v1808_v53, %v1808_v53  ;;  %v1354_v58 = vpop.f32.mrf.mxu0 }
 0x1dc   : > { %v1670_v48 = vpop.f32.mrf.mxu1  ;;  %vm1741_vm4 = vcmp.ge.f32.partialorder %v1707_v9, 0.0  ;;  %v1775_v7 = vmul.f32 0.2, %v1707_v9  ;;  %v1397_v49 = vadd.f32 %v1354_v58, %v3090_v24 }
 0x1dd   : > { %1979 = vst.msk [vmem:[%s3102_s6 + $0x74] sm:$0xf] %vm1949_vm5, %v2236_v57  ;;  %v2528_v1 = vpop.f32.mrf.mxu0 }
 0x1de   : > { %v2603_v54 = vpop.f32.mrf.mxu1  ;;  %v1809_v34 = vsel %vm1741_vm4, %v1707_v9, %v1775_v7  ;;  %v1708_v15 = vadd.f32 %v1665_v42, %v1397_v49 }
 0x1df   : > { %v2237_v60 = vpack.c.bf16 %v1809_v34, %v1809_v34  ;;  %v1359_v0 = vpop.f32.mrf.mxu0 }
 0x1e0   : > { %v1673_v25 = vpop.f32.mrf.mxu1  ;;  %vm1742_vm6 = vcmp.ge.f32.partialorder %v1708_v15, 0.0  ;;  %v1776_v2 = vmul.f32 0.2, %v1708_v15  ;;  %v1398_v3 = vadd.f32 %v1359_v0, %v3092_v35 }
 0x1e1   : > { %1980 = vst.msk [vmem:[%s3102_s6 + $0x78] sm:$0xf] %vm1949_vm5, %v2237_v60  ;;  %v2531_v6 = vpop.f32.mrf.mxu0 }
 0x1e2   : > { %v2604_v59 = vpop.f32.mrf.mxu1  ;;  %v1810_v33 = vsel %vm1742_vm6, %v1708_v15, %v1776_v2  ;;  %v1709_v24 = vadd.f32 %v1670_v48, %v1398_v3 }
 0x1e3   : > { %v2238_v56 = vpack.c.bf16 %v1810_v33, %v1810_v33  ;;  %v1362_v10 = vpop.f32.mrf.mxu0 }
 0x1e4   : > { %vm1743_vm7 = vcmp.ge.f32.partialorder %v1709_v24, 0.0  ;;  %v1777_v19 = vmul.f32 0.2, %v1709_v24  ;;  %v1399_v8 = vadd.f32 %v1362_v10, %v3094_v43 }
 0x1e5   : > { %1981 = vst.msk [vmem:[%s3102_s6 + $0x7c] sm:$0xf] %vm1949_vm5, %v2238_v56  ;;  %v2532_v5 = vpop.f32.mrf.mxu0 }
 0x1e6   : > { %v1811_v11 = vsel %vm1743_vm7, %v1709_v24, %v1777_v19  ;;  %v1710_v44 = vadd.f32 %v1673_v25, %v1399_v8 }
 0x1e7   : > { %v2239_v13 = vpack.c.bf16 %v1811_v11, %v1811_v11 }
 0x1e8   : > { %vm1744_vm8 = vcmp.ge.f32.partialorder %v1710_v44, 0.0  ;;  %v1778_v35 = vmul.f32 0.2, %v1710_v44 }
 0x1e9   : > { %1982 = vst.msk [vmem:[%s3102_s6 + $0x80] sm:$0xf] %vm1949_vm5, %v2239_v13 }
 0x1ea   : > { %v1812_v41 = vsel %vm1744_vm8, %v1710_v44, %v1778_v35 }
 0x1eb   : > { %v2240_v14 = vpack.c.bf16 %v1812_v41, %v1812_v41 }
 0x1ed   : > { %1983 = vst.msk [vmem:[%s3102_s6 + $0x84] sm:$0xf] %vm1949_vm5, %v2240_v14 }
 0x1ee PF: > { %s12_s9 = sadd.s32 1, %s2668_s9  }
 0x1ef   : > { %p9_p4 = scmp.ge.s32.totalorder %s12_s9, 4  }
 0x1f1   :  { %11 = sbr.rel (!%p9_p4) target bundleno = 1 (0x1), region = 61 }

// kernel: encoder_svhn_forward.5
= control target key start
LH: loop header
LB: loop body
LE: loop exit
PB: predicated region body
PF: predicated region fallthrough
CT: control target
= control target key end

     0   :  { %v2855_v0 = vmov 0.0   ;;  %vm2856_vm0 = vmmov 0   ;;  %vm285_vm1 = vsmask.f32 7424  ;;  %vm822_vm2 = vcmask 1046528   ;;  %s3889_s1 = inlined_call_operand.vmem [shape: bf16[4,128,64], index: 1, kind: input, shape index: {}]   ;;  %s3890_s0 = inlined_call_operand.vmem [shape: bf16[2,88,128], index: 0, kind: input, shape index: {}]   ;;  %s3891_s2 = inlined_call_operand.vmem [shape: f32[1,64], index: 2, kind: input, shape index: {}]   ;;  %s3892_s3 = inlined_call_operand.vmem [shape: f32[1,64], index: 3, kind: input, shape index: {}]   ;;  %s3893_s4 = inlined_call_operand.vmem [shape: bf16[2,72,64], index: 4, kind: output, shape index: {}]  }
   0x1   :  { %2457 = vmatprep.subr.bf16.mxu0 %v2855_v0  ;;  %2493 = vmatprep.subr.bf16.mxu1 %v2855_v0  ;;  %v2765_v1 = vld [vmem:[%s3889_s1 + $0x78] sm:$0xff]   ;;  %v2767_v3 = vld [vmem:[%s3889_s1 + $0x70] sm:$0xff]   ;;  %v2769_v5 = vld [vmem:[%s3889_s1 + $0x68] sm:$0xff]  }
   0x2   :  { %v2766_v2 = vld [vmem:[%s3889_s1 + $0x38] sm:$0xff]   ;;  %2473 = vmatprep.mubr.msk.bf16.mxu0 %vm2856_vm0, %v2855_v0  ;;  %2509 = vmatprep.mubr.msk.bf16.mxu1 %vm2856_vm0, %v2855_v0  ;;  %v2768_v4 = vld [vmem:[%s3889_s1 + $0x30] sm:$0xff]   ;;  %v2770_v6 = vld [vmem:[%s3889_s1 + $0x28] sm:$0xff]  }
   0x3   :  { %2458 = vmatpush3.bf16.msra.mxu0 %v2765_v1  ;;  %2494 = vmatpush3.bf16.msra.mxu1 %v2766_v2  ;;  %v2771_v7 = vld [vmem:[%s3889_s1 + $0x60] sm:$0xff]   ;;  %v2773_v9 = vld [vmem:[%s3889_s1 + $0x58] sm:$0xff]   ;;  %v2775_v11 = vld [vmem:[%s3889_s1 + $0x50] sm:$0xff]  }
   0x4   :  { %2459 = vmatprep.subr.bf16.mxu0 %v2855_v0  ;;  %2495 = vmatprep.subr.bf16.mxu1 %v2855_v0  ;;  %v2772_v8 = vld [vmem:[%s3889_s1 + $0x20] sm:$0xff]   ;;  %v2774_v10 = vld [vmem:[%s3889_s1 + $0x18] sm:$0xff]   ;;  %v2782_v13 = vld [vmem:[%s3890_s0 + $0x8] sm:$0xff]  }
   0x5   :  { %v2781_v12 = vld [vmem:[%s3890_s0] sm:$0xff]   ;;  %v2776_v14 = vld [vmem:[%s3889_s1 + $0x10] sm:$0xff]   ;;  %v2777_v16 = vld [vmem:[%s3889_s1 + $0x48] sm:$0xff]   ;;  %v294_v19 = vshll.u32 %v2782_v13, 16  ;;  %v298_v28 = vshrl.u32 %v2782_v13, 16 }
   0x6   :  { %v289_v15 = vshll.u32 %v2781_v12, 16  ;;  %v287_v17 = vshrl.u32 %v2781_v12, 16  ;;  %v2778_v20 = vld [vmem:[%s3889_s1 + $0x8] sm:$0xff]   ;;  %v2779_v21 = vld [vmem:[%s3889_s1 + $0x40] sm:$0xff]   ;;  %v2954_v24 = vld [vmem:[%s3890_s0 + $0x10] sm:$0xff]  }
   0x7   :  { %2460 = vmatpush3.bf16.msra.mxu0 %v2767_v3  ;;  %2496 = vmatpush3.bf16.msra.mxu1 %v2768_v4  ;;  %v296_v23 = vrot.slane %v294_v19, 1  ;;  %v2780_v25 = vld [vmem:[%s3889_s1] sm:$0xff]   ;;  %v2783_v27 = vld [vmem:[%s3889_s1 + $0xb8] sm:$0xff]   ;;  %v302_v29 = vshll.u32 %v2954_v24, 16  ;;  %v2785_v31 = vld [vmem:[%s3889_s1 + $0xb0] sm:$0xff]   ;;  %v306_v40 = vshrl.u32 %v2954_v24, 16 }
   0x8   :  { %2461 = vmatprep.subr.bf16.mxu0 %v2855_v0  ;;  %2497 = vmatprep.subr.bf16.mxu1 %v2855_v0  ;;  %v291_v18 = vrot.slane %v289_v15, 1  ;;  %v2784_v30 = vld [vmem:[%s3889_s1 + $0xf8] sm:$0xff]   ;;  %v2787_v35 = vld [vmem:[%s3889_s1 + $0xf0] sm:$0xff]   ;;  %v2991_v36 = vld [vmem:[%s3890_s0 + $0x20] sm:$0xf] }
   0x9   :  { %v300_v32 = vor.u32 %v298_v28, %v296_v23  ;;  %v304_v33 = vrot.slane %v302_v29, 1  ;;  %v2977_v34 = vld [vmem:[%s3890_s0 + $0x18] sm:$0xff]   ;;  %v242_v37 = vld [vmem:[%s3890_s0 + $0x24] sm:$0x1]  ;;  %v2788_v39 = vld [vmem:[%s3889_s1 + $0xa8] sm:$0xff]  }
   0xa   :  { %v292_v22 = vor.u32 %v291_v18, %v287_v17  ;;  %v310_v41 = vshll.u32 %v2977_v34, 16  ;;  %v2789_v42 = vld [vmem:[%s3889_s1 + $0xe8] sm:$0xff]   ;;  %v2123_v43 = vcombine.low %v2991_v36, %v242_v37  ;;  %v2791_v46 = vld [vmem:[%s3889_s1 + $0xa0] sm:$0xff]   ;;  %v2793_v50 = vld [vmem:[%s3889_s1 + $0x98] sm:$0xff]   ;;  %v314_v51 = vshrl.u32 %v2977_v34, 16 }
   0xb   :  { %2462 = vmatpush3.bf16.msra.mxu0 %v2769_v5  ;;  %2498 = vmatpush3.bf16.msra.mxu1 %v2770_v6  ;;  %v305_v38 = vsel %vm285_vm1, %v300_v32, %v304_v33  ;;  %v308_v44 = vor.u32 %v306_v40, %v304_v33  ;;  %v2792_v47 = vld [vmem:[%s3889_s1 + $0xe0] sm:$0xff]   ;;  %v2794_v52 = vld [vmem:[%s3889_s1 + $0xd8] sm:$0xff]   ;;  %v2796_v54 = vld [vmem:[%s3889_s1 + $0x90] sm:$0xff]  }
   0xc   :  { %2463 = vmatprep.subr.bf16.mxu0 %v2855_v0  ;;  %2499 = vmatprep.subr.bf16.mxu1 %v2855_v0  ;;  %v297_v26 = vsel %vm285_vm1, %v292_v22, %v296_v23  ;;  %v312_v45 = vrot.slane %v310_v41, 1  ;;  %v318_v48 = vshll.u32 %v2123_v43, 16  ;;  %v576_v55 = vld [vmem:[%s3890_s0 + $0x4] sm:$0xf]  ;;  %v577_v57 = vld [vmem:[%s3890_s0 + $0x8] sm:$0xf] }
   0xd   :  { %v2797_v58 = vld [vmem:[%s3889_s1 + $0xd0] sm:$0xff]   ;;  %v2157_v59 = vcombine.low %v576_v55, %v577_v57  ;;  %v2798_v61 = vld [vmem:[%s3889_s1 + $0x88] sm:$0xff]   ;;  %v322_v62 = vshrl.u32 %v2123_v43, 16  ;;  %v2801_v1 = vld [vmem:[%s3889_s1 + $0x80] sm:$0xff]  }
   0xe   :  { %v313_v49 = vsel %vm285_vm1, %v308_v44, %v312_v45  ;;  %v320_v53 = vrot.slane %v318_v48, 1  ;;  %v316_v56 = vor.u32 %v314_v51, %v312_v45  ;;  %v2800_v63 = vld [vmem:[%s3889_s1 + $0xc8] sm:$0xff]   ;;  %v2802_v4 = vld [vmem:[%s3889_s1 + $0xc0] sm:$0xff]   ;;  %v2806_v17 = vld [vmem:[%s3889_s1 + $0x78] sm:$0xff]  }
   0xf   :  { %2464 = vmatpush3.bf16.msra.mxu0 %v2771_v7  ;;  %2500 = vmatpush3.bf16.msra.mxu1 %v2772_v8  ;;  %v2804_v2 = vld [vmem:[%s3890_s0 + $0xc] sm:$0xff]   ;;  %v631_v3 = vshll.u32 %v2157_v59, 16  ;;  %v801_v5 = vld [vmem:[%s3890_s0 + $0x4] sm:$0xe]  ;;  %v2132_v7 = vcombine.low %v2991_v36, %v2991_v36  ;;  %v629_v8 = vshrl.u32 %v2157_v59, 16  ;;  %v2807_v22 = vld [vmem:[%s3889_s1 + $0x38] sm:$0xff]  }
  0x10   :  { %2465 = vmatprep.subr.bf16.mxu0 %v2855_v0  ;;  %2501 = vmatprep.subr.bf16.mxu1 %v2855_v0  ;;  %v321_v60 = vsel %vm285_vm1, %v316_v56, %v320_v53  ;;  %v324_v6 = vor.u32 %v322_v62, %v320_v53  ;;  %v640_v19 = vshrl.u32 %v2804_v2, 16  ;;  %v3099_v23 = vld [vmem:[%s3890_s0 + $0x1c] sm:$0xff]   ;;  %v2810_v28 = vld [vmem:[%s3889_s1 + $0x30] sm:$0xff]   ;;  %v2811_v29 = vld [vmem:[%s3889_s1 + $0x68] sm:$0xff]  }
  0x11   :  { %v2814_v36 = vld [vmem:[%s3889_s1 + $0x60] sm:$0xff]   ;;  %v656_v43 = vshrl.u32 %v3099_v23, 16  ;;  %v2820_v51 = vld [vmem:[%s3889_s1 + $0x10] sm:$0xff]   ;;  %v2821_v55 = vld [vmem:[%s3889_s1 + $0x48] sm:$0xff]  }
  0x12   :  { %v2815_v40 = vld [vmem:[%s3889_s1 + $0x20] sm:$0xff]   ;;  %v2825_v53 = vld [vmem:[%s3890_s0 + $0x2c] sm:$0xff]  }
  0x13   :  { %2466 = vmatpush3.bf16.msra.mxu0 %v2773_v9  ;;  %2502 = vmatpush3.bf16.msra.mxu1 %v2774_v10  ;;  %v633_v9 = vrot.slane %v631_v3, 1  ;;  %v636_v10 = vshll.u32 %v2804_v2, 16  ;;  %v2822_v56 = vld [vmem:[%s3889_s1 + $0x8] sm:$0xff]   ;;  %v1113_v59 = vshll.u32 %v2825_v53, 16 }
  0x14   :  { %2467 = vmatprep.subr.bf16.mxu0 %v2855_v0  ;;  %2503 = vmatprep.subr.bf16.mxu1 %v2855_v0 }
  0x17   :  { %2468 = vmatpush3.bf16.msra.mxu0 %v2775_v11  ;;  %2504 = vmatpush3.bf16.msra.mxu1 %v2776_v14  ;;  %v2186_v11 = vcombine.low %v801_v5, %v577_v57  ;;  %v2809_v14 = vld [vmem:[%s3890_s0 + $0x14] sm:$0xff]   ;;  %v2830_v5 = vld [vmem:[%s3890_s0 + $0x3c] sm:$0xff]  }
  0x18   :  { %2469 = vmatprep.subr.bf16.mxu0 %v2855_v0  ;;  %2505 = vmatprep.subr.bf16.mxu1 %v2855_v0 }
  0x19   :  { %v823_v15 = vrot.slane %v2186_v11, 1  ;;  %v2829_v11 = vld [vmem:[%s3889_s1 + $0xb0] sm:$0xff]  }
  0x1b   :  { %2470 = vmatpush3.bf16.msra.mxu0 %v2777_v16  ;;  %2506 = vmatpush3.bf16.msra.mxu1 %v2778_v20  ;;  %v824_v16 = vrot.slane %v2804_v2, 1  ;;  %v644_v20 = vshll.u32 %v2809_v14, 16 }
  0x1c   :  { %2471 = vmatprep.subr.bf16.mxu0 %v2855_v0  ;;  %2507 = vmatprep.subr.bf16.mxu1 %v2855_v0 }
  0x1f   :  { %2472 = vmatpush3.bf16.msra.mxu0 %v2779_v21  ;;  %2508 = vmatpush3.bf16.msra.mxu1 %v2780_v25  ;;  %v825_v21 = vsel %vm822_vm2, %v823_v15, %v824_v16  ;;  %v2831_v15 = vld [vmem:[%s3889_s1 + $0xf0] sm:$0xff]  }
  0x20   :  { %2529 = vmatprep.subr.bf16.mxu0 %v2855_v0  ;;  %2565 = vmatprep.subr.bf16.mxu1 %v2855_v0 }
  0x22   :  { %2474 = vmatmul.mubr.bf16.vlgmr.msra.gmra.mxu0 %v297_v26  ;;  %2510 = vmatmul.mubr.bf16.vlgmr.msra.gmra.mxu1 %v2781_v12  ;;  %v634_v12 = vor.u32 %v633_v9, %v629_v8  ;;  %v646_v26 = vrot.slane %v644_v20, 1  ;;  %v1126_v9 = vshll.u32 %v2830_v5, 16  ;;  %v2833_v20 = vld [vmem:[%s3889_s1 + $0xe8] sm:$0xff]  }
  0x23   :  { %2530 = vmatpush3.bf16.msra.mxu0 %v2783_v27  ;;  %2566 = vmatpush3.bf16.msra.mxu1 %v2784_v30  ;;  %v826_v27 = vrot.slane %v2809_v14, 1  ;;  %v648_v30 = vshrl.u32 %v2809_v14, 16  ;;  %v3213_v14 = vld [vmem:[%s3890_s0 + $0x44] sm:$0xff]  }
  0x24   :  { %2531 = vmatprep.subr.bf16.mxu0 %v2855_v0  ;;  %2477 = vmatprep.mubr.msk.bf16.mxu0 %vm2856_vm0, %v2855_v0 }
  0x25   :  { %2513 = vmatprep.mubr.msk.bf16.mxu1 %vm2856_vm0, %v2855_v0  ;;  %2567 = vmatprep.subr.bf16.mxu1 %v2855_v0  ;;  %v827_v33 = vsel %vm822_vm2, %v824_v16, %v826_v27  ;;  %v650_v37 = vor.u32 %v648_v30, %v646_v26  ;;  %v1138_v30 = vshrl.u32 %v3213_v14, 16 }
  0x27   :  { %2532 = vmatpush3.bf16.msra.mxu0 %v2785_v31  ;;  %2568 = vmatpush3.bf16.msra.mxu1 %v2787_v35  ;;  %v652_v31 = vshll.u32 %v3099_v23, 16 }
  0x28   :  { %2533 = vmatprep.subr.bf16.mxu0 %v2855_v0  ;;  %2569 = vmatprep.subr.bf16.mxu1 %v2855_v0 }
  0x29   :  { %v654_v35 = vrot.slane %v652_v31, 1 }
  0x2a   :  { %2478 = vmatmul.mubr.bf16.gmra.mxu0 %v305_v38  ;;  %2514 = vmatmul.mubr.bf16.gmra.mxu1 %v2782_v13  ;;  %v638_v13 = vrot.slane %v636_v10, 1  ;;  %v2818_v38 = vld [vmem:[%s3890_s0 + $0x24] sm:$0x1f]   ;;  %v2828_v10 = vld [vmem:[%s3889_s1 + $0xf8] sm:$0xff]  }
  0x2b   :  { %2534 = vmatpush3.bf16.msra.mxu0 %v2788_v39  ;;  %2570 = vmatpush3.bf16.msra.mxu1 %v2789_v42  ;;  %v828_v39 = vrot.slane %v3099_v23, 1  ;;  %v655_v41 = vsel %vm285_vm1, %v650_v37, %v654_v35  ;;  %v2816_v42 = vld [vmem:[%s3889_s1 + $0x58] sm:$0xff]   ;;  %v660_v44 = vshll.u32 %v2818_v38, 16  ;;  %v664_v57 = vshrl.u32 %v2818_v38, 16  ;;  %v2244_v37 = vld [vmem:[%s3890_s0 + $0x34] sm:$0xf] }
  0x2c   :  { %2481 = vmatprep.mubr.msk.bf16.mxu0 %vm2856_vm0, %v2855_v0  ;;  %2517 = vmatprep.mubr.msk.bf16.mxu1 %vm2856_vm0, %v2855_v0  ;;  %v639_v18 = vsel %vm285_vm1, %v634_v12, %v638_v13  ;;  %v642_v25 = vor.u32 %v640_v19, %v638_v13  ;;  %v1128_v13 = vrot.slane %v1126_v9, 1  ;;  %v1134_v19 = vshll.u32 %v3213_v14, 16 }
  0x2d   :  { %2535 = vmatprep.subr.bf16.mxu0 %v2855_v0  ;;  %2571 = vmatprep.subr.bf16.mxu1 %v2855_v0  ;;  %v829_v45 = vsel %vm822_vm2, %v826_v27, %v828_v39  ;;  %v662_v48 = vrot.slane %v660_v44, 1  ;;  %v2836_v27 = vld [vmem:[%s3889_s1 + $0xe0] sm:$0xff]   ;;  %v2848_v44 = vld [vmem:[%s3890_s0 + $0x38] sm:$0xff]  }
  0x2e   :  { %v647_v32 = vsel %vm285_vm1, %v642_v25, %v646_v26  ;;  %v2835_v25 = vld [vmem:[%s3889_s1 + $0xa0] sm:$0xff]  }
  0x2f   :  { %2536 = vmatpush3.bf16.msra.mxu0 %v2791_v46  ;;  %2572 = vmatpush3.bf16.msra.mxu1 %v2792_v47  ;;  %v2817_v46 = vld [vmem:[%s3889_s1 + $0x18] sm:$0xff]   ;;  %v658_v47 = vor.u32 %v656_v43, %v654_v35  ;;  %v666_v62 = vor.u32 %v664_v57, %v662_v48  ;;  %v2840_v35 = vld [vmem:[%s3889_s1 + $0x90] sm:$0xff]   ;;  %v2850_v57 = vld [vmem:[%s3890_s0 + $0x40] sm:$0xff]  }
  0x30   :  { %2537 = vmatprep.subr.bf16.mxu0 %v2855_v0  ;;  %2573 = vmatprep.subr.bf16.mxu1 %v2855_v0 }
  0x32   :  { %2482 = vmatmul.mubr.bf16.gmra.mxu0 %v313_v49  ;;  %2518 = vmatmul.mubr.bf16.gmra.mxu1 %v2954_v24  ;;  %v2808_v24 = vld [vmem:[%s3889_s1 + $0x70] sm:$0xff]  }
  0x33   :  { %2538 = vmatpush3.bf16.msra.mxu0 %v2793_v50  ;;  %2485 = vmatprep.mubr.msk.bf16.mxu0 %vm2856_vm0, %v2855_v0  ;;  %v2819_v49 = vld [vmem:[%s3889_s1 + $0x50] sm:$0xff]   ;;  %v830_v50 = vrot.slane %v2818_v38, 1 }
  0x34   :  { %2521 = vmatprep.mubr.msk.bf16.mxu1 %vm2856_vm0, %v2855_v0  ;;  %2574 = vmatpush3.bf16.msra.mxu1 %v2794_v52  ;;  %v663_v52 = vsel %vm285_vm1, %v658_v47, %v662_v48  ;;  %v2841_v38 = vld [vmem:[%s3889_s1 + $0xd0] sm:$0xff]   ;;  %v2846_v47 = vld [vmem:[%s3889_s1 + $0xc0] sm:$0xff]  }
  0x35   :  { %2539 = vmatprep.subr.bf16.mxu0 %v2855_v0  ;;  %2575 = vmatprep.subr.bf16.mxu1 %v2855_v0  ;;  %v2282_v48 = vld [vmem:[%s3890_s0 + $0x30] sm:$0xe] }
  0x37   :  { %2540 = vmatpush3.bf16.msra.mxu0 %v2796_v54  ;;  %v831_v54 = vsel %vm822_vm2, %v828_v39, %v830_v50 }
  0x38   :  { %2541 = vmatprep.subr.bf16.mxu0 %v2855_v0  ;;  %2576 = vmatpush3.bf16.msra.mxu1 %v2797_v58  ;;  %v2826_v58 = vld [vmem:[%s3890_s0 + $0x34] sm:$0xff]  }
  0x39   :  { %2577 = vmatprep.subr.bf16.mxu1 %v2855_v0  ;;  %v1118_v2 = vshll.u32 %v2826_v58, 16  ;;  %v1122_v8 = vshrl.u32 %v2826_v58, 16 }
  0x3a   :  { %2486 = vmatmul.mubr.bf16.gmra.mxu0 %v321_v60  ;;  %2522 = vmatmul.mubr.bf16.gmra.mxu1 %v2977_v34  ;;  %v2812_v34 = vld [vmem:[%s3889_s1 + $0x28] sm:$0xff]   ;;  %v2823_v60 = vld [vmem:[%s3889_s1 + $0x40] sm:$0xff]  }
  0x3b   :  { %2489 = vmatprep.mubr.msk.bf16.mxu0 %vm2856_vm0, %v2855_v0  ;;  %2525 = vmatprep.mubr.msk.bf16.mxu1 %vm2856_vm0, %v2855_v0 }
  0x3c   :  { %2542 = vmatpush3.bf16.msra.mxu0 %v2798_v61  ;;  %2578 = vmatpush3.bf16.msra.mxu1 %v2800_v63  ;;  %v2824_v61 = vld [vmem:[%s3889_s1] sm:$0xff]   ;;  %v1111_v63 = vshrl.u32 %v2825_v53, 16 }
  0x3d   :  { %2543 = vmatprep.subr.bf16.mxu0 %v2855_v0  ;;  %2579 = vmatprep.subr.bf16.mxu1 %v2855_v0 }
  0x40   :  { %2544 = vmatpush3.bf16.msra.mxu0 %v2801_v1  ;;  %2580 = vmatpush3.bf16.msra.mxu1 %v2802_v4  ;;  %v1115_v1 = vrot.slane %v1113_v59, 1  ;;  %v1120_v4 = vrot.slane %v1118_v2, 1  ;;  %v1645_v59 = vrot.slane %v2848_v44, 1 }
  0x41   :  { %2601 = vmatprep.subr.bf16.mxu0 %v2855_v0  ;;  %2637 = vmatprep.subr.bf16.mxu1 %v2855_v0 }
  0x42   :  { %2490 = vmatmul.mubr.bf16.gmra.mxu0 %v324_v6  ;;  %2526 = vmatmul.mubr.bf16.gmra.mxu1 %v2132_v7  ;;  %v1116_v3 = vor.u32 %v1115_v1, %v1111_v63  ;;  %v2827_v7 = vld [vmem:[%s3889_s1 + $0xb8] sm:$0xff]   ;;  %v1124_v12 = vor.u32 %v1122_v8, %v1120_v4 }
  0x43   :  { %2545 = vmatprep.mubr.msk.bf16.mxu0 %vm2856_vm0, %v2855_v0  ;;  %2581 = vmatprep.mubr.msk.bf16.mxu1 %vm2856_vm0, %v2855_v0 }
  0x44   :  { %v1121_v6 = vsel %vm285_vm1, %v1116_v3, %v1120_v4  ;;  %v1129_v16 = vsel %vm285_vm1, %v1124_v12, %v1128_v13  ;;  %v2851_v3 = vld [vmem:[%s3890_s0 + $0x48] sm:$0xff]   ;;  %v1647_v4 = vrot.slane %v2850_v57, 1 }
  0x45   :  { %v1649_v12 = vrot.slane %v2851_v3, 1 }
  0x46   :  { %v1648_v8 = vsel %vm822_vm2, %v1645_v59, %v1647_v4 }
  0x4a   :  { %2546 = vmatmul.mubr.bf16.vlgmr.msra.gmra.mxu0 %v639_v18  ;;  %2582 = vmatmul.mubr.bf16.vlgmr.msra.gmra.mxu1 %v825_v21  ;;  %v1130_v18 = vshrl.u32 %v2830_v5, 16  ;;  %v3236_v21 = vld [vmem:[%s3890_s0 + $0x4c] sm:$0xf] }
  0x4b   :  { %2602 = vmatpush3.bf16.msra.mxu0 %v2806_v17  ;;  %2638 = vmatpush3.bf16.msra.mxu1 %v2807_v22  ;;  %v2832_v17 = vld [vmem:[%s3889_s1 + $0xa8] sm:$0xff]   ;;  %v2204_v22 = vld [vmem:[%s3890_s0 + $0x50] sm:$0x1] }
  0x4c   :  { %2603 = vmatprep.subr.bf16.mxu0 %v2855_v0  ;;  %2549 = vmatprep.mubr.msk.bf16.mxu0 %vm2856_vm0, %v2855_v0  ;;  %v1132_v23 = vor.u32 %v1130_v18, %v1128_v13  ;;  %v2225_v26 = vcombine.low %v3236_v21, %v2204_v22 }
  0x4d   :  { %2585 = vmatprep.mubr.msk.bf16.mxu1 %vm2856_vm0, %v2855_v0  ;;  %2639 = vmatprep.subr.bf16.mxu1 %v2855_v0 }
  0x4e   :  { %v1142_v31 = vshll.u32 %v2225_v26, 16  ;;  %v1146_v43 = vshrl.u32 %v2225_v26, 16  ;;  %v18_v26 = vlaneseq }
  0x4f   :  { %2604 = vmatpush3.bf16.msra.mxu0 %v2808_v24  ;;  %2640 = vmatpush3.bf16.msra.mxu1 %v2810_v28  ;;  %v1136_v24 = vrot.slane %v1134_v19, 1 }
  0x50   :  { %2605 = vmatprep.subr.bf16.mxu0 %v2855_v0  ;;  %2641 = vmatprep.subr.bf16.mxu1 %v2855_v0 }
  0x51   :  { %v1137_v28 = vsel %vm285_vm1, %v1132_v23, %v1136_v24 }
  0x52   :  { %2550 = vmatmul.mubr.bf16.gmra.mxu0 %v647_v32  ;;  %2586 = vmatmul.mubr.bf16.gmra.mxu1 %v827_v33  ;;  %v2838_v32 = vld [vmem:[%s3889_s1 + $0xd8] sm:$0xff]   ;;  %v1140_v33 = vor.u32 %v1138_v30, %v1136_v24 }
  0x53   :  { %2606 = vmatpush3.bf16.msra.mxu0 %v2811_v29  ;;  %2642 = vmatpush3.bf16.msra.mxu1 %v2812_v34  ;;  %v2837_v29 = vld [vmem:[%s3889_s1 + $0x98] sm:$0xff]   ;;  %v1144_v34 = vrot.slane %v1142_v31, 1  ;;  %v3358_v31 = vshrl.u32 %v18_v26, 7 }
  0x54   :  { %2553 = vmatprep.mubr.msk.bf16.mxu0 %vm2856_vm0, %v2855_v0  ;;  %2589 = vmatprep.mubr.msk.bf16.mxu1 %vm2856_vm0, %v2855_v0 }
  0x55   :  { %2607 = vmatprep.subr.bf16.mxu0 %v2855_v0  ;;  %2643 = vmatprep.subr.bf16.mxu1 %v2855_v0  ;;  %v1145_v39 = vsel %vm285_vm1, %v1140_v33, %v1144_v34 }
  0x57   :  { %2608 = vmatpush3.bf16.msra.mxu0 %v2814_v36  ;;  %2644 = vmatpush3.bf16.msra.mxu1 %v2815_v40  ;;  %v2243_v36 = vld [vmem:[%s3890_s0 + $0x30] sm:$0xf] }
  0x58   :  { %2609 = vmatprep.subr.bf16.mxu0 %v2855_v0  ;;  %2645 = vmatprep.subr.bf16.mxu1 %v2855_v0  ;;  %v2269_v40 = vcombine.low %v2243_v36, %v2244_v37 }
  0x5a   :  { %2554 = vmatmul.mubr.bf16.gmra.mxu0 %v655_v41  ;;  %2590 = vmatmul.mubr.bf16.gmra.mxu1 %v829_v45  ;;  %v2842_v41 = vld [vmem:[%s3889_s1 + $0x88] sm:$0xff]   ;;  %v1454_v45 = vshll.u32 %v2269_v40, 16 }
  0x5b   :  { %2610 = vmatpush3.bf16.msra.mxu0 %v2816_v42  ;;  %2557 = vmatprep.mubr.msk.bf16.mxu0 %vm2856_vm0, %v2855_v0  ;;  %v2844_v42 = vld [vmem:[%s3889_s1 + $0xc8] sm:$0xff]  }
  0x5c   :  { %2593 = vmatprep.mubr.msk.bf16.mxu1 %vm2856_vm0, %v2855_v0  ;;  %2646 = vmatpush3.bf16.msra.mxu1 %v2817_v46  ;;  %v2845_v46 = vld [vmem:[%s3889_s1 + $0x80] sm:$0xff]  }
  0x5d   :  { %2611 = vmatprep.subr.bf16.mxu0 %v2855_v0  ;;  %2647 = vmatprep.subr.bf16.mxu1 %v2855_v0 }
  0x5f   :  { %2612 = vmatpush3.bf16.msra.mxu0 %v2819_v49  ;;  %v1148_v49 = vor.u32 %v1146_v43, %v1144_v34 }
  0x60   :  { %2613 = vmatprep.subr.bf16.mxu0 %v2855_v0  ;;  %2648 = vmatpush3.bf16.msra.mxu1 %v2820_v51  ;;  %v1452_v51 = vshrl.u32 %v2269_v40, 16 }
  0x61   :  { %2649 = vmatprep.subr.bf16.mxu1 %v2855_v0 }
  0x62   :  { %2558 = vmatmul.mubr.bf16.gmra.mxu0 %v663_v52  ;;  %2594 = vmatmul.mubr.bf16.gmra.mxu1 %v831_v54  ;;  %v1456_v52 = vrot.slane %v1454_v45, 1  ;;  %v2299_v54 = vcombine.low %v2282_v48, %v2244_v37  ;;  %v22_v48 = vadd.s32 24, %v3358_v31 }
  0x63   :  { %2561 = vmatprep.mubr.msk.bf16.mxu0 %vm2856_vm0, %v2855_v0  ;;  %2597 = vmatprep.mubr.msk.bf16.mxu1 %vm2856_vm0, %v2855_v0 }
  0x64   :  { %2614 = vmatpush3.bf16.msra.mxu0 %v2821_v55  ;;  %2650 = vmatpush3.bf16.msra.mxu1 %v2822_v56  ;;  %v1457_v55 = vor.u32 %v1456_v52, %v1452_v51 }
  0x65   :  { %2615 = vmatprep.subr.bf16.mxu0 %v2855_v0  ;;  %2651 = vmatprep.subr.bf16.mxu1 %v2855_v0 }
  0x68   :  { %2616 = vmatpush3.bf16.msra.mxu0 %v2823_v60  ;;  %2652 = vmatpush3.bf16.msra.mxu1 %v2824_v61  ;;  %v1463_v61 = vshrl.u32 %v2848_v44, 16 }
  0x69   :  { %2673 = vmatprep.subr.bf16.mxu0 %v2855_v0  ;;  %2709 = vmatprep.subr.bf16.mxu1 %v2855_v0 }
  0x6a   :  { %2562 = vmatmul.mubr.bf16.gmra.mxu0 %v666_v62  ;;  %2598 = vmatmul.mubr.bf16.gmra.mxu1 %v830_v50  ;;  %v2234_v50 = vcombine.low %v3236_v21, %v3236_v21  ;;  %v1467_v62 = vshll.u32 %v2850_v57, 16 }
  0x6b   :  { %2617 = vmatprep.mubr.msk.bf16.mxu0 %vm2856_vm0, %v2855_v0  ;;  %2653 = vmatprep.mubr.msk.bf16.mxu1 %vm2856_vm0, %v2855_v0 }
  0x6c   :  { %v1469_v2 = vrot.slane %v1467_v62, 1 }
  0x72   :  { %2618 = vmatmul.mubr.bf16.vlgmr.msra.gmra.mxu0 %v1121_v6  ;;  %2654 = vmatmul.mubr.bf16.vlgmr.msra.gmra.mxu1 %v2825_v53  ;;  %v1459_v53 = vshll.u32 %v2848_v44, 16  ;;  %v1471_v6 = vshrl.u32 %v2850_v57, 16 }
  0x73   :  { %2674 = vmatpush3.bf16.msra.mxu0 %v2827_v7  ;;  %2710 = vmatpush3.bf16.msra.mxu1 %v2828_v10  ;;  %v1475_v7 = vshll.u32 %v2851_v3, 16 }
  0x74   :  { %2675 = vmatprep.subr.bf16.mxu0 %v2855_v0  ;;  %2621 = vmatprep.mubr.msk.bf16.mxu0 %vm2856_vm0, %v2855_v0  ;;  %v1461_v56 = vrot.slane %v1459_v53, 1  ;;  %v1473_v9 = vor.u32 %v1471_v6, %v1469_v2 }
  0x75   :  { %2657 = vmatprep.mubr.msk.bf16.mxu1 %vm2856_vm0, %v2855_v0  ;;  %2711 = vmatprep.subr.bf16.mxu1 %v2855_v0  ;;  %v1477_v10 = vrot.slane %v1475_v7, 1  ;;  %v3405_v7 = vadd.s32 40, %v3358_v31 }
  0x76   :  { %v1462_v60 = vsel %vm285_vm1, %v1457_v55, %v1461_v56  ;;  %v1465_v1 = vor.u32 %v1463_v61, %v1461_v56 }
  0x77   :  { %2676 = vmatpush3.bf16.msra.mxu0 %v2829_v11  ;;  %2712 = vmatpush3.bf16.msra.mxu1 %v2831_v15  ;;  %v2852_v11 = vld [vmem:[%s3890_s0 + $0x50] sm:$0x1f]   ;;  %v1478_v13 = vsel %vm285_vm1, %v1473_v9, %v1477_v10 }
  0x78   :  { %2677 = vmatprep.subr.bf16.mxu0 %v2855_v0  ;;  %2713 = vmatprep.subr.bf16.mxu1 %v2855_v0  ;;  %v1483_v15 = vshll.u32 %v2852_v11, 16  ;;  %v1651_v19 = vrot.slane %v2852_v11, 1  ;;  %v1487_v22 = vshrl.u32 %v2852_v11, 16 }
  0x7a   :  { %2622 = vmatmul.mubr.bf16.gmra.mxu0 %v1129_v16  ;;  %2658 = vmatmul.mubr.bf16.gmra.mxu1 %v2826_v58  ;;  %v1644_v58 = vrot.slane %v2299_v54, 1  ;;  %v1650_v16 = vsel %vm822_vm2, %v1647_v4, %v1649_v12  ;;  %v1485_v18 = vrot.slane %v1483_v15, 1  ;;  %v1652_v21 = vsel %vm822_vm2, %v1649_v12, %v1651_v19 }
  0x7b   :  { %2678 = vmatpush3.bf16.msra.mxu0 %v2832_v17  ;;  %2714 = vmatpush3.bf16.msra.mxu1 %v2833_v20  ;;  %v3386_v54 = vmul.u32.u64.low 3817748708, %v22_v48  ;;  %v3387_v55 = vmul.u32.u64.high 3817748708, %v22_v48, %v3386_v54 }
  0x7c   :  { %2625 = vmatprep.mubr.msk.bf16.mxu0 %vm2856_vm0, %v2855_v0  ;;  %2661 = vmatprep.mubr.msk.bf16.mxu1 %vm2856_vm0, %v2855_v0  ;;  %v1646_v63 = vsel %vm822_vm2, %v1644_v58, %v1645_v59  ;;  %v1489_v23 = vor.u32 %v1487_v22, %v1485_v18  ;;  %v3390_v58 = vadd.s32 32, %v3358_v31 }
  0x7d   :  { %2679 = vmatprep.subr.bf16.mxu0 %v2855_v0  ;;  %2715 = vmatprep.subr.bf16.mxu1 %v2855_v0  ;;  %v67_v11 = vshrl.u32 %v3387_v55, 3 }
  0x7f   :  { %2680 = vmatpush3.bf16.msra.mxu0 %v2835_v25  ;;  %2716 = vmatpush3.bf16.msra.mxu1 %v2836_v27 }
  0x80   :  { %2681 = vmatprep.subr.bf16.mxu0 %v2855_v0  ;;  %2717 = vmatprep.subr.bf16.mxu1 %v2855_v0 }
  0x82   :  { %2626 = vmatmul.mubr.bf16.gmra.mxu0 %v1137_v28  ;;  %2662 = vmatmul.mubr.bf16.gmra.mxu1 %v2830_v5  ;;  %v1470_v5 = vsel %vm285_vm1, %v1465_v1, %v1469_v2 }
  0x83   :  { %2682 = vmatpush3.bf16.msra.mxu0 %v2837_v29  ;;  %2629 = vmatprep.mubr.msk.bf16.mxu0 %vm2856_vm0, %v2855_v0 }
  0x84   :  { %2665 = vmatprep.mubr.msk.bf16.mxu1 %vm2856_vm0, %v2855_v0  ;;  %2718 = vmatpush3.bf16.msra.mxu1 %v2838_v32 }
  0x85   :  { %2683 = vmatprep.subr.bf16.mxu0 %v2855_v0  ;;  %2719 = vmatprep.subr.bf16.mxu1 %v2855_v0 }
  0x87   :  { %2684 = vmatpush3.bf16.msra.mxu0 %v2840_v35  ;;  %v20_v35 = vadd.s32 8, %v3358_v31 }
  0x88   :  { %2685 = vmatprep.subr.bf16.mxu0 %v2855_v0  ;;  %2720 = vmatpush3.bf16.msra.mxu1 %v2841_v38  ;;  %v3366_v37 = vmul.u32.u64.low 3817748708, %v3358_v31  ;;  %v3367_v38 = vmul.u32.u64.high 3817748708, %v3358_v31, %v3366_v37 }
  0x89   :  { %2721 = vmatprep.subr.bf16.mxu1 %v2855_v0  ;;  %v3372_v43 = vmul.u32.u64.low 3817748708, %v20_v35  ;;  %v3373_v44 = vmul.u32.u64.high 3817748708, %v20_v35, %v3372_v43  ;;  %v3434_v37 = vadd.s32 56, %v3358_v31 }
  0x8a   :  { %2630 = vmatmul.mubr.bf16.gmra.mxu0 %v1145_v39  ;;  %2666 = vmatmul.mubr.bf16.gmra.mxu1 %v3213_v14  ;;  %v1479_v14 = vshrl.u32 %v2851_v3, 16  ;;  %v21_v39 = vadd.s32 16, %v3358_v31  ;;  %v34_v53 = vshrl.u32 %v3367_v38, 3 }
  0x8b   :  { %2633 = vmatprep.mubr.msk.bf16.mxu0 %vm2856_vm0, %v2855_v0  ;;  %2669 = vmatprep.mubr.msk.bf16.mxu1 %vm2856_vm0, %v2855_v0  ;;  %v3399_v3 = vmul.u32.u64.low 3817748708, %v3390_v58  ;;  %v3400_v4 = vmul.u32.u64.high 3817748708, %v3390_v58, %v3399_v3 }
  0x8c   :  { %2686 = vmatpush3.bf16.msra.mxu0 %v2842_v41  ;;  %2722 = vmatpush3.bf16.msra.mxu1 %v2844_v42  ;;  %v1481_v17 = vor.u32 %v1479_v14, %v1477_v10  ;;  %v35_v62 = vmul.u32 9, %v34_v53 }
  0x8d   :  { %2687 = vmatprep.subr.bf16.mxu0 %v2855_v0  ;;  %2723 = vmatprep.subr.bf16.mxu1 %v2855_v0 }
  0x8e   :  { %v1486_v20 = vsel %vm285_vm1, %v1481_v17, %v1485_v18  ;;  %v36_v9 = vsub.s32 %v3358_v31, %v35_v62  ;;  %v3417_v17 = vmul.u32.u64.low 3817748708, %v3405_v7  ;;  %v3418_v18 = vmul.u32.u64.high 3817748708, %v3405_v7, %v3417_v17 }
  0x90   :  { %2688 = vmatpush3.bf16.msra.mxu0 %v2845_v46  ;;  %2724 = vmatpush3.bf16.msra.mxu1 %v2846_v47  ;;  %v3377_v46 = vmul.u32.u64.low 3817748708, %v21_v39  ;;  %v3378_v47 = vmul.u32.u64.high 3817748708, %v21_v39, %v3377_v46  ;;  %vm127_vm3 = vcmp.ne.s32.totalorder %v36_v9, 0  ;;  %vm136_vm4 = vcmp.lt.s32.totalorder %v36_v9, 0 }
  0x91   :  { %vm3429_vm5 = vmand %vm136_vm4, %vm127_vm3  ;;  %v89_v54 = vshrl.u32 %v3418_v18, 3 }
  0x92   :  { %2634 = vmatmul.mubr.bf16.gmra.mxu0 %v1148_v49  ;;  %2670 = vmatmul.mubr.bf16.gmra.mxu1 %v2234_v50 }
  0x93   :  { %2689 = vmatprep.mubr.msk.bf16.mxu0 %vm2856_vm0, %v2855_v0  ;;  %2725 = vmatprep.mubr.msk.bf16.mxu1 %vm2856_vm0, %v2855_v0 }
  0x9a   :  { %2690 = vmatmul.mubr.bf16.vlgmr.msra.gmra.mxu0 %v1462_v60  ;;  %2726 = vmatmul.mubr.bf16.vlgmr.msra.gmra.mxu1 %v1646_v63  ;;  %v45_v60 = vshrl.u32 %v3373_v44, 3  ;;  %v56_v63 = vshrl.u32 %v3378_v47, 3 }
  0x9b   :  { %2693 = vmatprep.mubr.msk.bf16.mxu0 %vm2856_vm0, %v2855_v0  ;;  %2729 = vmatprep.mubr.msk.bf16.mxu1 %vm2856_vm0, %v2855_v0 }
  0x9c   :  { %v46_v6 = vmul.u32 9, %v45_v60  ;;  %v57_v10 = vmul.u32 9, %v56_v63 }
  0xa2   :  { %2694 = vmatmul.mubr.bf16.gmra.mxu0 %v1470_v5  ;;  %2730 = vmatmul.mubr.bf16.gmra.mxu1 %v1648_v8 }
  0xa3   :  { %2697 = vmatprep.mubr.msk.bf16.mxu0 %vm2856_vm0, %v2855_v0  ;;  %2733 = vmatprep.mubr.msk.bf16.mxu1 %vm2856_vm0, %v2855_v0 }
  0xaa   :  { %2698 = vmatmul.mubr.bf16.gmra.mxu0 %v1478_v13  ;;  %2734 = vmatmul.mubr.bf16.gmra.mxu1 %v1650_v16  ;;  %v3412_v13 = vadd.s32 48, %v3358_v31  ;;  %v47_v16 = vsub.s32 %v20_v35, %v46_v6 }
  0xab   :  { %2701 = vmatprep.mubr.msk.bf16.mxu0 %vm2856_vm0, %v2855_v0  ;;  %2737 = vmatprep.mubr.msk.bf16.mxu1 %vm2856_vm0, %v2855_v0 }
  0xac   :  { %vm128_vm6 = vcmp.ne.s32.totalorder %v47_v16, 0  ;;  %vm137_vm7 = vcmp.lt.s32.totalorder %v47_v16, 0  ;;  %v155_v46 = vadd.s32 9, %v47_v16 }
  0xad   :  { %vm3440_vm10 = vmand %vm137_vm7, %vm128_vm6 }
  0xb2   :  { %2702 = vmatmul.mubr.bf16.gmra.mxu0 %v1486_v20  ;;  %2738 = vmatmul.mubr.bf16.gmra.mxu1 %v1652_v21  ;;  %v58_v20 = vsub.s32 %v21_v39, %v57_v10  ;;  %v68_v21 = vmul.u32 9, %v67_v11  ;;  %v90_v11 = vmul.u32 9, %v89_v54 }
  0xb3   :  { %2705 = vmatprep.mubr.msk.bf16.mxu0 %vm2856_vm0, %v2855_v0  ;;  %2741 = vmatprep.mubr.msk.bf16.mxu1 %vm2856_vm0, %v2855_v0  ;;  %vm966_vm0 = vcmask 523264  }
  0xb4   :  { %vm129_vm8 = vcmp.ne.s32.totalorder %v58_v20, 0  ;;  %vm138_vm9 = vcmp.lt.s32.totalorder %v58_v20, 0  ;;  %v69_v39 = vsub.s32 %v22_v48, %v68_v21  ;;  %v156_v47 = vadd.s32 9, %v58_v20 }
  0xb5   :  { %vm3444_vm11 = vmand %vm138_vm9, %vm129_vm8  ;;  %v3450_v48 = vmul.u32.u64.low 3817748708, %v3434_v37  ;;  %v3451_v55 = vmul.u32.u64.high 3817748708, %v3434_v37, %v3450_v48 }
  0xb6   :  { %vm130_vm12 = vcmp.ne.s32.totalorder %v69_v39, 0  ;;  %vm139_vm13 = vcmp.lt.s32.totalorder %v69_v39, 0  ;;  %v165_v3 = vsel %vm3444_vm11, %v156_v47, %v58_v20 }
  0xb7   :  { %vm3463_vm15 = vmand %vm139_vm13, %vm130_vm12  ;;  %vm3483_vm2 = vcmp.lt.s32.totalorder %v165_v3, 8 }
  0xba   :  { %2706 = vmatmul.mubr.bf16.gmra.mxu0 %v1489_v23  ;;  %2742 = vmatmul.mubr.bf16.gmra.mxu1 %v1651_v19  ;;  %v3423_v23 = vmul.u32.u64.low 3817748708, %v3412_v13  ;;  %v3424_v26 = vmul.u32.u64.high 3817748708, %v3412_v13, %v3423_v23 }
  0xbc   :  { %v100_v62 = vshrl.u32 %v3424_v26, 3 }
  0xbe   :  { %v101_v20 = vmul.u32 9, %v100_v62 }
  0xe2   :  { %v3350_v24 = vpop.f32.mrf.mxu0  ;;  %v3352_v25 = vpop.f32.mrf.mxu1 }
  0xe3   :  { %v539_v63 = vadd.f32 %v3352_v25, %v3350_v24 }
  0xe4   :  { %v2475_v27 = vpop.f32.mrf.mxu0  ;;  %v2511_v28 = vpop.f32.mrf.mxu1 }
  0xe5   :  { %v154_v28 = vadd.s32 9, %v36_v9 }
  0xe6   :  { %v3354_v29 = vpop.f32.mrf.mxu0  ;;  %v3356_v30 = vpop.f32.mrf.mxu1 }
  0xe7   :  { %v163_v43 = vsel %vm3429_vm5, %v154_v28, %v36_v9  ;;  %v3492_v28 = vsub.s32 %v3405_v7, %v90_v11 }
  0xe8   :  { %v2476_v32 = vpop.f32.mrf.mxu0  ;;  %v2512_v33 = vpop.f32.mrf.mxu1  ;;  %vm172_vm14 = vcmp.lt.s32.totalorder %v163_v43, 8  ;;  %v3508_v43 = vsub.s32 %v3412_v13, %v101_v20 }
  0xe9   :  { %v78_v32 = vshrl.u32 %v3400_v4, 3  ;;  %v157_v4 = vadd.s32 9, %v69_v39  ;;  %vm132_vm7 = vcmp.ne.s32.totalorder %v3492_v28, 0  ;;  %vm141_vm8 = vcmp.lt.s32.totalorder %v3492_v28, 0 }
  0xea   :  { %v3360_v34 = vpop.f32.mrf.mxu0  ;;  %v3363_v36 = vpop.f32.mrf.mxu1  ;;  %vm133_vm9 = vcmp.ne.s32.totalorder %v3508_v43, 0  ;;  %vm142_vm11 = vcmp.lt.s32.totalorder %v3508_v43, 0 }
  0xeb   :  { %v166_v26 = vsel %vm3463_vm15, %v157_v4, %v69_v39  ;;  %v547_v44 = vadd.f32 %v3363_v36, %v3360_v34  ;;  %vm3575_vm13 = vmand %vm142_vm11, %vm133_vm9 }
  0xec   :  { %v2479_v40 = vpop.f32.mrf.mxu0  ;;  %v2515_v41 = vpop.f32.mrf.mxu1  ;;  %vm3502_vm5 = vcmp.lt.s32.totalorder %v166_v26, 8 }
  0xee   :  { %v3370_v42 = vpop.f32.mrf.mxu0  ;;  %v3375_v45 = vpop.f32.mrf.mxu1 }
  0xf0   :  { %v2480_v49 = vpop.f32.mrf.mxu0  ;;  %v2516_v50 = vpop.f32.mrf.mxu1 }
  0xf1   :  { %v79_v49 = vmul.u32 9, %v78_v32  ;;  %v111_v32 = vshrl.u32 %v3451_v55, 3 }
  0xf2   :  { %v3381_v51 = vpop.f32.mrf.mxu0  ;;  %v3383_v52 = vpop.f32.mrf.mxu1 }
  0xf3   :  { %v3468_v10 = vsub.s32 %v3390_v58, %v79_v49  ;;  %v542_v58 = vadd.f32 %v3356_v30, %v3354_v29  ;;  %v3515_v49 = vsel %vm3483_vm2, 1.0, %v2855_v0  ;;  %v112_v34 = vmul.u32 9, %v111_v32 }
  0xf4   :  { %v2483_v56 = vpop.f32.mrf.mxu0  ;;  %v2519_v57 = vpop.f32.mrf.mxu1  ;;  %v555_v23 = vadd.f32 %v3383_v52, %v3381_v51 }
  0xf5   :  { %v3454_v56 = vadd.s32 64, %v3358_v31  ;;  %vm131_vm3 = vcmp.ne.s32.totalorder %v3468_v10, 0  ;;  %vm140_vm4 = vcmp.lt.s32.totalorder %v3468_v10, 0  ;;  %v158_v7 = vadd.s32 9, %v3468_v10 }
  0xf6   :  { %v3392_v59 = vpop.f32.mrf.mxu0  ;;  %v3395_v61 = vpop.f32.mrf.mxu1  ;;  %vm3521_vm6 = vmand %vm140_vm4, %vm131_vm3  ;;  %v3554_v11 = vsub.s32 %v3434_v37, %v112_v34 }
  0xf7   :  { %v558_v34 = vadd.f32 %v3395_v61, %v3392_v59 }
  0xf8   :  { %v2484_v1 = vpop.f32.mrf.mxu0  ;;  %v2520_v2 = vpop.f32.mrf.mxu1  ;;  %vm143_vm15 = vcmp.lt.s32.totalorder %v3554_v11, 0 }
  0xf9   :  { %v164_v2 = vsel %vm3440_vm10, %v155_v46, %v47_v16  ;;  %v3475_v16 = vsel %vm172_vm14, 1.0, %v2855_v0  ;;  %vm3548_vm10 = vmand %vm141_vm8, %vm132_vm7  ;;  %vm134_vm14 = vcmp.ne.s32.totalorder %v3554_v11, 0 }
  0xfa   :  { %v3402_v5 = vpop.f32.mrf.mxu0  ;;  %v3407_v8 = vpop.f32.mrf.mxu1  ;;  %vm3477_vm1 = vcmp.lt.s32.totalorder %v164_v2, 8  ;;  %vm3607_vm2 = vmand %vm143_vm15, %vm134_vm14 }
  0xfb   :  { %v3500_v39 = vsel %vm3477_vm1, 1.0, %v2855_v0 }
  0xfc   :  { %v2487_v12 = vpop.f32.mrf.mxu0  ;;  %v2523_v14 = vpop.f32.mrf.mxu1 }
  0xfd   :  { %v3471_v12 = vmul.u32.u64.low 3817748708, %v3454_v56  ;;  %v3472_v24 = vmul.u32.u64.high 3817748708, %v3454_v56, %v3471_v12 }
  0xfe   :  { %v3414_v15 = vpop.f32.mrf.mxu0  ;;  %v3420_v19 = vpop.f32.mrf.mxu1 }
  0xff   :  { %v122_v36 = vshrl.u32 %v3472_v24, 3 }
 0x100   :  { %v2488_v22 = vpop.f32.mrf.mxu0  ;;  %v2524_v27 = vpop.f32.mrf.mxu1 }
 0x101   :  { %v123_v12 = vmul.u32 9, %v122_v36 }
 0x102   :  { %v3427_v33 = vpop.f32.mrf.mxu0  ;;  %v3436_v38 = vpop.f32.mrf.mxu1 }
 0x103   :  { %v3582_v51 = vsub.s32 %v3454_v56, %v123_v12 }
 0x104   :  { %v2491_v40 = vpop.f32.mrf.mxu0  ;;  %v2527_v41 = vpop.f32.mrf.mxu1 }
 0x105   :  { %vm135_vm3 = vcmp.ne.s32.totalorder %v3582_v51, 0  ;;  %vm144_vm4 = vcmp.lt.s32.totalorder %v3582_v51, 0 }
 0x106   :  { %v447_v50 = vpop.f32.mrf.mxu0  ;;  %v573_v57 = vpop.f32.mrf.mxu1 }
 0x107   :  { %v3533_v57 = vsel %vm3502_vm5, 1.0, %v2855_v0 }
 0x108   :  { %v2492_v60 = vpop.f32.mrf.mxu0  ;;  %v2528_v1 = vpop.f32.mrf.mxu1 }
 0x109   :  { %v550_v60 = vadd.f32 %v3375_v45, %v3370_v42  ;;  %v159_v1 = vadd.s32 9, %v3492_v28  ;;  %v563_v42 = vadd.f32 %v3407_v8, %v3402_v5 }
 0x10a   :  { %v754_v6 = vpop.f32.mrf.mxu0  ;;  %v919_v14 = vpop.f32.mrf.mxu1 }
 0x10b   :  { %v792_v25 = vadd.f32 %v754_v6, %v539_v63  ;;  %v167_v63 = vsel %vm3521_vm6, %v158_v7, %v3468_v10  ;;  %v168_v37 = vsel %vm3548_vm10, %v159_v1, %v3492_v28  ;;  %vm3636_vm6 = vmand %vm144_vm4, %vm135_vm3 }
 0x10c   :  { %v2547_v17 = vpop.f32.mrf.mxu0  ;;  %v2583_v22 = vpop.f32.mrf.mxu1  ;;  %vm3560_vm12 = vcmp.lt.s32.totalorder %v167_v63, 8  ;;  %vm3592_vm1 = vcmp.lt.s32.totalorder %v168_v37, 8 }
 0x10d   :  { %v957_v21 = vadd.f32 %v919_v14, %v792_v25  ;;  %v160_v22 = vadd.s32 9, %v3508_v43  ;;  %v3590_v7 = vsel %vm3560_vm12, 1.0, %v2855_v0  ;;  %v3619_v63 = vsel %vm3592_vm1, 1.0, %v2855_v0 }
 0x10e   :  { %v757_v27 = vpop.f32.mrf.mxu0  ;;  %v922_v35 = vpop.f32.mrf.mxu1 }
 0x10f   :  { %967 = vst.msk [vmem:[#allocation2] sm:$0xff] %vm966_vm0, %v957_v21  ;;  %v976_v29 = vmul.f32 %v3475_v16, %v957_v21  ;;  %v793_v30 = vadd.f32 %v757_v27, %v542_v58  ;;  %v169_v56 = vsel %vm3575_vm13, %v160_v22, %v3508_v43  ;;  %v566_v22 = vadd.f32 %v3420_v19, %v3414_v15 }
 0x110   :  { %v2548_v40 = vpop.f32.mrf.mxu0  ;;  %v2584_v47 = vpop.f32.mrf.mxu1  ;;  %vm3621_vm5 = vcmp.lt.s32.totalorder %v169_v56, 8  ;;  %v571_v19 = vadd.f32 %v3436_v38, %v3427_v33 }
 0x111   :  { %v958_v46 = vadd.f32 %v922_v35, %v793_v30  ;;  %v1009_v53 = vmul.f32 %v976_v29, %v957_v21  ;;  %v985_v2 = vsel %vm966_vm0, %v976_v29, 0.0 }
 0x112   :  { %v762_v13 = vpop.f32.mrf.mxu0  ;;  %v927_v55 = vpop.f32.mrf.mxu1 }
 0x113   :  { %968 = vst.msk [vmem:[#allocation2 + $0x8] sm:$0xff] %vm966_vm0, %v958_v46  ;;  %v977_v54 = vmul.f32 %v3500_v39, %v958_v46  ;;  %v794_v48 = vadd.f32 %v762_v13, %v547_v44  ;;  %v1018_v24 = vsel %vm966_vm0, %v1009_v53, 0.0  ;;  %v161_v13 = vadd.s32 9, %v3554_v11 }
 0x114   :  { %v2551_v62 = vpop.f32.mrf.mxu0  ;;  %v2587_v9 = vpop.f32.mrf.mxu1 }
 0x115   :  { %v986_v3 = vsel %vm966_vm0, %v977_v54, 0.0  ;;  %v1010_v4 = vmul.f32 %v977_v54, %v958_v46  ;;  %v959_v6 = vadd.f32 %v927_v55, %v794_v48  ;;  %v162_v9 = vadd.s32 9, %v3582_v51 }
 0x116   :  { %v987_v45 = vadd.f32 %v986_v3, %v985_v2  ;;  %v765_v10 = vpop.f32.mrf.mxu0  ;;  %v930_v18 = vpop.f32.mrf.mxu1 }
 0x117   :  { %v1019_v25 = vsel %vm966_vm0, %v1010_v4, 0.0  ;;  %969 = vst.msk [vmem:[#allocation2 + $0x10] sm:$0xff] %vm966_vm0, %v959_v6  ;;  %v978_v14 = vmul.f32 %v3515_v49, %v959_v6  ;;  %v795_v17 = vadd.f32 %v765_v10, %v550_v60  ;;  %v171_v37 = vsel %vm3636_vm6, %v162_v9, %v3582_v51 }
 0x118   :  { %v1020_v20 = vadd.f32 %v1019_v25, %v1018_v24  ;;  %v2552_v58 = vpop.f32.mrf.mxu0  ;;  %v2588_v29 = vpop.f32.mrf.mxu1  ;;  %vm180_vm8 = vcmp.lt.s32.totalorder %v171_v37, 8 }
 0x119   :  { %v988_v26 = vsel %vm966_vm0, %v978_v14, 0.0  ;;  %v1011_v27 = vmul.f32 %v978_v14, %v959_v6  ;;  %v960_v32 = vadd.f32 %v930_v18, %v795_v17  ;;  %v170_v6 = vsel %vm3607_vm2, %v161_v13, %v3554_v11 }
 0x11a   :  { %v989_v35 = vadd.f32 %v988_v26, %v987_v45  ;;  %v770_v28 = vpop.f32.mrf.mxu0  ;;  %v935_v44 = vpop.f32.mrf.mxu1  ;;  %v3646_v58 = vsel %vm3621_vm5, 1.0, %v2855_v0  ;;  %vm179_vm7 = vcmp.lt.s32.totalorder %v170_v6, 8  ;;  %v3667_v55 = vsel %vm180_vm8, 1.0, %v2855_v0 }
 0x11b   :  { %v1021_v52 = vsel %vm966_vm0, %v1011_v27, 0.0  ;;  %970 = vst.msk [vmem:[#allocation2 + $0x18] sm:$0xff] %vm966_vm0, %v960_v32  ;;  %v979_v40 = vmul.f32 %v3533_v57, %v960_v32  ;;  %v796_v41 = vadd.f32 %v770_v28, %v555_v23  ;;  %v3658_v51 = vsel %vm179_vm7, 1.0, %v2855_v0 }
 0x11c   :  { %v1022_v46 = vadd.f32 %v1021_v52, %v1020_v20  ;;  %v2555_v47 = vpop.f32.mrf.mxu0  ;;  %v2591_v48 = vpop.f32.mrf.mxu1 }
 0x11d   :  { %v990_v36 = vsel %vm966_vm0, %v979_v40, 0.0  ;;  %v1012_v53 = vmul.f32 %v979_v40, %v960_v32  ;;  %v961_v54 = vadd.f32 %v935_v44, %v796_v41 }
 0x11e   :  { %v991_v60 = vadd.f32 %v990_v36, %v989_v35  ;;  %v773_v43 = vpop.f32.mrf.mxu0  ;;  %v938_v1 = vpop.f32.mrf.mxu1 }
 0x11f   :  { %v1023_v59 = vsel %vm966_vm0, %v1012_v53, 0.0  ;;  %971 = vst.msk [vmem:[#allocation2 + $0x20] sm:$0xff] %vm966_vm0, %v961_v54  ;;  %v980_v61 = vmul.f32 %v3590_v7, %v961_v54  ;;  %v797_v62 = vadd.f32 %v773_v43, %v558_v34 }
 0x120   :  { %v1024_v2 = vadd.f32 %v1023_v59, %v1022_v46  ;;  %v2556_v3 = vpop.f32.mrf.mxu0  ;;  %v2592_v24 = vpop.f32.mrf.mxu1 }
 0x121   :  { %v992_v45 = vsel %vm966_vm0, %v980_v61, 0.0  ;;  %v1013_v10 = vmul.f32 %v980_v61, %v961_v54  ;;  %v962_v12 = vadd.f32 %v938_v1, %v797_v62 }
 0x122   :  { %v993_v14 = vadd.f32 %v992_v45, %v991_v60  ;;  %v778_v11 = vpop.f32.mrf.mxu0  ;;  %v943_v18 = vpop.f32.mrf.mxu1 }
 0x123   :  { %v1025_v17 = vsel %vm966_vm0, %v1013_v10, 0.0  ;;  %972 = vst.msk [vmem:[#allocation2 + $0x28] sm:$0xff] %vm966_vm0, %v962_v12  ;;  %v981_v5 = vmul.f32 %v3619_v63, %v962_v12  ;;  %v798_v8 = vadd.f32 %v778_v11, %v563_v42 }
 0x124   :  { %v1026_v20 = vadd.f32 %v1025_v17, %v1024_v2  ;;  %v2559_v21 = vpop.f32.mrf.mxu0  ;;  %v2595_v32 = vpop.f32.mrf.mxu1 }
 0x125   :  { %v994_v23 = vsel %vm966_vm0, %v981_v5, 0.0  ;;  %v1014_v26 = vmul.f32 %v981_v5, %v962_v12  ;;  %v963_v27 = vadd.f32 %v943_v18, %v798_v8 }
 0x126   :  { %v995_v29 = vadd.f32 %v994_v23, %v993_v14  ;;  %v781_v30 = vpop.f32.mrf.mxu0  ;;  %v946_v40 = vpop.f32.mrf.mxu1 }
 0x127   :  { %v1027_v35 = vsel %vm966_vm0, %v1014_v26, 0.0  ;;  %973 = vst.msk [vmem:[#allocation2 + $0x30] sm:$0xff] %vm966_vm0, %v963_v27  ;;  %v982_v28 = vmul.f32 %v3646_v58, %v963_v27  ;;  %v799_v52 = vadd.f32 %v781_v30, %v566_v22 }
 0x128   :  { %v1028_v41 = vadd.f32 %v1027_v35, %v1026_v20  ;;  %v2560_v15 = vpop.f32.mrf.mxu0  ;;  %v2596_v50 = vpop.f32.mrf.mxu1 }
 0x129   :  { %v996_v44 = vsel %vm966_vm0, %v982_v28, 0.0  ;;  %v1015_v46 = vmul.f32 %v982_v28, %v963_v27  ;;  %v964_v47 = vadd.f32 %v946_v40, %v799_v52 }
 0x12a   :  { %v997_v56 = vadd.f32 %v996_v44, %v995_v29  ;;  %v786_v13 = vpop.f32.mrf.mxu0  ;;  %v951_v54 = vpop.f32.mrf.mxu1 }
 0x12b   :  { %v1029_v34 = vsel %vm966_vm0, %v1015_v46, 0.0  ;;  %974 = vst.msk [vmem:[#allocation2 + $0x38] sm:$0xff] %vm966_vm0, %v964_v47  ;;  %v983_v36 = vmul.f32 %v3658_v51, %v964_v47  ;;  %v800_v53 = vadd.f32 %v786_v13, %v571_v19 }
 0x12c   :  { %v1030_v48 = vadd.f32 %v1029_v34, %v1028_v41  ;;  %v2563_v33 = vpop.f32.mrf.mxu0  ;;  %v2599_v59 = vpop.f32.mrf.mxu1 }
 0x12d   :  { %v998_v38 = vsel %vm966_vm0, %v983_v36, 0.0  ;;  %v1016_v60 = vmul.f32 %v983_v36, %v964_v47  ;;  %v965_v43 = vadd.f32 %v951_v54, %v800_v53 }
 0x12e   :  { %v999_v61 = vadd.f32 %v998_v38, %v997_v56  ;;  %v789_v62 = vpop.f32.mrf.mxu0  ;;  %v954_v3 = vpop.f32.mrf.mxu1 }
 0x12f   :  { %v1031_v1 = vsel %vm966_vm0, %v1016_v60, 0.0  ;;  %975 = vst.msk [vmem:[#allocation2 + $0x40] sm:$0xff] %vm966_vm0, %v965_v43  ;;  %v984_v2 = vmul.f32 %v3667_v55, %v965_v43 }
 0x130   :  { %v1032_v4 = vadd.f32 %v1031_v1, %v1030_v48  ;;  %v2564_v6 = vpop.f32.mrf.mxu0  ;;  %v2600_v42 = vpop.f32.mrf.mxu1 }
 0x131   :  { %v1000_v0 = vsel %vm966_vm0, %v984_v2, 0.0  ;;  %v1017_v9 = vmul.f32 %v984_v2, %v965_v43 }
 0x132   :  { %v3674_v45 = vadd.f32 %v1000_v0, %v999_v61  ;;  %v1236_v10 = vpop.f32.mrf.mxu0  ;;  %v1362_v24 = vpop.f32.mrf.mxu1 }
 0x133   :  { %v1033_v12 = vsel %vm966_vm0, %v1017_v9, 0.0  ;;  %v1363_v43 = vadd.f32 %v1362_v24, %v1236_v10 }
 0x134   :  { %v3677_v25 = vadd.f32 %v1033_v12, %v1032_v4  ;;  %v2619_v14 = vpop.f32.mrf.mxu0  ;;  %v2655_v11 = vpop.f32.mrf.mxu1 }
 0x136   :  { %v1239_v17 = vpop.f32.mrf.mxu0  ;;  %v1365_v5 = vpop.f32.mrf.mxu1 }
 0x137   :  { %v1366_v3 = vadd.f32 %v1365_v5, %v1239_v17 }
 0x138   :  { %v2620_v8 = vpop.f32.mrf.mxu0  ;;  %v2656_v18 = vpop.f32.mrf.mxu1 }
 0x13a   :  { %v1244_v20 = vpop.f32.mrf.mxu0  ;;  %v1370_v21 = vpop.f32.mrf.mxu1 }
 0x13b   :  { %v1371_v14 = vadd.f32 %v1370_v21, %v1244_v20 }
 0x13c   :  { %v2623_v37 = vpop.f32.mrf.mxu0  ;;  %v2659_v22 = vpop.f32.mrf.mxu1 }
 0x13e   :  { %v1247_v23 = vpop.f32.mrf.mxu0  ;;  %v1373_v26 = vpop.f32.mrf.mxu1 }
 0x13f   :  { %v1374_v22 = vadd.f32 %v1373_v26, %v1247_v23 }
 0x140   :  { %v2624_v27 = vpop.f32.mrf.mxu0  ;;  %v2660_v32 = vpop.f32.mrf.mxu1 }
 0x142   :  { %v1252_v29 = vpop.f32.mrf.mxu0  ;;  %v1378_v30 = vpop.f32.mrf.mxu1 }
 0x144   :  { %v2627_v35 = vpop.f32.mrf.mxu0  ;;  %v2663_v28 = vpop.f32.mrf.mxu1 }
 0x146   :  { %v1255_v52 = vpop.f32.mrf.mxu0  ;;  %v1381_v40 = vpop.f32.mrf.mxu1 }
 0x148   :  { %v2628_v41 = vpop.f32.mrf.mxu0  ;;  %v2664_v15 = vpop.f32.mrf.mxu1 }
 0x149   :  { %v1379_v41 = vadd.f32 %v1378_v30, %v1252_v29 }
 0x14a   :  { %v3679_v19 = vpop.f32.mrf.mxu0  ;;  %v3681_v44 = vpop.f32.mrf.mxu1 }
 0x14c   :  { %v2631_v46 = vpop.f32.mrf.mxu0  ;;  %v2667_v47 = vpop.f32.mrf.mxu1 }
 0x14e   :  { %v3683_v50 = vpop.f32.mrf.mxu0  ;;  %v3685_v56 = vpop.f32.mrf.mxu1 }
 0x150   :  { %v2632_v13 = vpop.f32.mrf.mxu0  ;;  %v2668_v34 = vpop.f32.mrf.mxu1 }
 0x151   :  { %v1382_v34 = vadd.f32 %v1381_v40, %v1255_v52 }
 0x152   :  { %v3687_v36 = vpop.f32.mrf.mxu0  ;;  %v3689_v53 = vpop.f32.mrf.mxu1 }
 0x154   :  { %v2635_v54 = vpop.f32.mrf.mxu0  ;;  %v2671_v48 = vpop.f32.mrf.mxu1 }
 0x156   :  { %v1271_v33 = vpop.f32.mrf.mxu0  ;;  %v1397_v38 = vpop.f32.mrf.mxu1 }
 0x158   :  { %v2636_v60 = vpop.f32.mrf.mxu0  ;;  %v2672_v59 = vpop.f32.mrf.mxu1 }
 0x15a   :  { %v1577_v61 = vpop.f32.mrf.mxu0  ;;  %v1740_v1 = vpop.f32.mrf.mxu1 }
 0x15b   :  { %v1615_v62 = vadd.f32 %v1577_v61, %v1363_v43  ;;  %v1387_v43 = vadd.f32 %v3681_v44, %v3679_v19 }
 0x15c   :  { %v2691_v2 = vpop.f32.mrf.mxu0  ;;  %v2727_v6 = vpop.f32.mrf.mxu1 }
 0x15d   :  { %v1778_v4 = vadd.f32 %v1740_v1, %v1615_v62 }
 0x15e   :  { %v1580_v0 = vpop.f32.mrf.mxu0  ;;  %v1743_v42 = vpop.f32.mrf.mxu1 }
 0x15f   :  { %1788 = vst.msk [vmem:[#allocation2 + $0x48] sm:$0xff] %vm966_vm0, %v1778_v4  ;;  %v1616_v9 = vadd.f32 %v1580_v0, %v1366_v3  ;;  %v1797_v23 = vmul.f32 %v3475_v16, %v1778_v4  ;;  %v1390_v0 = vadd.f32 %v3685_v56, %v3683_v50 }
 0x160   :  { %v2692_v12 = vpop.f32.mrf.mxu0  ;;  %v2728_v8 = vpop.f32.mrf.mxu1 }
 0x161   :  { %v1779_v11 = vadd.f32 %v1743_v42, %v1616_v9  ;;  %v1830_v59 = vmul.f32 %v1797_v23, %v1778_v4 }
 0x162   :  { %v1585_v18 = vpop.f32.mrf.mxu0  ;;  %v1748_v24 = vpop.f32.mrf.mxu1 }
 0x163   :  { %1789 = vst.msk [vmem:[#allocation2 + $0x50] sm:$0xff] %vm966_vm0, %v1779_v11  ;;  %v1617_v10 = vadd.f32 %v1585_v18, %v1371_v14  ;;  %v1798_v46 = vmul.f32 %v3500_v39, %v1779_v11 }
 0x164   :  { %v2695_v37 = vpop.f32.mrf.mxu0  ;;  %v2731_v17 = vpop.f32.mrf.mxu1 }
 0x165   :  { %v1780_v27 = vadd.f32 %v1748_v24, %v1617_v10  ;;  %v1831_v30 = vmul.f32 %v1798_v46, %v1779_v11  ;;  %v1807_v16 = vsel %vm966_vm0, %v1798_v46, 0.0 }
 0x166   :  { %v1588_v5 = vpop.f32.mrf.mxu0  ;;  %v1751_v35 = vpop.f32.mrf.mxu1 }
 0x167   :  { %1790 = vst.msk [vmem:[#allocation2 + $0x58] sm:$0xff] %vm966_vm0, %v1780_v27  ;;  %v1618_v32 = vadd.f32 %v1588_v5, %v1374_v22  ;;  %v1799_v54 = vmul.f32 %v3515_v49, %v1780_v27  ;;  %v1840_v3 = vsel %vm966_vm0, %v1831_v30, 0.0  ;;  %v1395_v5 = vadd.f32 %v3689_v53, %v3687_v36 }
 0x168   :  { %v2696_v28 = vpop.f32.mrf.mxu0  ;;  %v2732_v20 = vpop.f32.mrf.mxu1 }
 0x169   :  { %v1781_v15 = vadd.f32 %v1751_v35, %v1618_v32  ;;  %v1832_v52 = vmul.f32 %v1799_v54, %v1780_v27  ;;  %v1809_v6 = vsel %vm966_vm0, %v1799_v54, 0.0 }
 0x16a   :  { %v1593_v21 = vpop.f32.mrf.mxu0  ;;  %v1756_v13 = vpop.f32.mrf.mxu1 }
 0x16b   :  { %1791 = vst.msk [vmem:[#allocation2 + $0x60] sm:$0xff] %vm966_vm0, %v1781_v15  ;;  %v1619_v47 = vadd.f32 %v1593_v21, %v1379_v41  ;;  %v1800_v38 = vmul.f32 %v3533_v57, %v1781_v15  ;;  %v1806_v57 = vsel %vm966_vm0, %v1797_v23, 0.0  ;;  %v1842_v12 = vsel %vm966_vm0, %v1832_v52, 0.0 }
 0x16c   :  { %v2699_v26 = vpop.f32.mrf.mxu0  ;;  %v2735_v33 = vpop.f32.mrf.mxu1  ;;  %v1808_v9 = vadd.f32 %v1807_v16, %v1806_v57 }
 0x16d   :  { %v1782_v48 = vadd.f32 %v1756_v13, %v1619_v47  ;;  %v1833_v1 = vmul.f32 %v1800_v38, %v1781_v15  ;;  %v1811_v14 = vsel %vm966_vm0, %v1800_v38, 0.0  ;;  %v1002_v47 = vrot.slane %v3674_v45, 4 }
 0x16e   :  { %v1596_v29 = vpop.f32.mrf.mxu0  ;;  %v1759_v39 = vpop.f32.mrf.mxu1  ;;  %v1810_v24 = vadd.f32 %v1809_v6, %v1808_v9 }
 0x16f   :  { %1792 = vst.msk [vmem:[#allocation2 + $0x68] sm:$0xff] %vm966_vm0, %v1782_v48  ;;  %v1620_v60 = vadd.f32 %v1596_v29, %v1382_v34  ;;  %v1801_v49 = vmul.f32 %v3590_v7, %v1782_v48  ;;  %v1839_v7 = vsel %vm966_vm0, %v1830_v59, 0.0 }
 0x170   :  { %v2700_v61 = vpop.f32.mrf.mxu0  ;;  %v2736_v62 = vpop.f32.mrf.mxu1  ;;  %v1841_v10 = vadd.f32 %v1840_v3, %v1839_v7  ;;  %v1812_v35 = vadd.f32 %v1811_v14, %v1810_v24 }
 0x171   :  { %v1783_v40 = vadd.f32 %v1759_v39, %v1620_v60  ;;  %v1834_v11 = vmul.f32 %v1801_v49, %v1782_v48  ;;  %v1813_v22 = vsel %vm966_vm0, %v1801_v49, 0.0  ;;  %v1035_v48 = vrot.slane %v3677_v25, 4 }
 0x172   :  { %v1601_v2 = vpop.f32.mrf.mxu0  ;;  %v1764_v4 = vpop.f32.mrf.mxu1  ;;  %v1843_v32 = vadd.f32 %v1842_v12, %v1841_v10  ;;  %v1814_v23 = vadd.f32 %v1813_v22, %v1812_v35  ;;  %v1003_v61 = vadd.f32 %v1002_v47, %v3674_v45 }
 0x173   :  { %1793 = vst.msk [vmem:[#allocation2 + $0x70] sm:$0xff] %vm966_vm0, %v1783_v40  ;;  %v1802_v19 = vmul.f32 %v3619_v63, %v1783_v40  ;;  %v1621_v44 = vadd.f32 %v1601_v2, %v1387_v43  ;;  %v1844_v63 = vsel %vm966_vm0, %v1833_v1, 0.0  ;;  %v1846_v41 = vsel %vm966_vm0, %v1834_v11, 0.0 }
 0x174   :  { %v2703_v42 = vpop.f32.mrf.mxu0  ;;  %v2739_v18 = vpop.f32.mrf.mxu1  ;;  %v1845_v13 = vadd.f32 %v1844_v63, %v1843_v32  ;;  %v1036_v57 = vadd.f32 %v1035_v48, %v3677_v25  ;;  %v1004_v45 = vrot.slane %v1003_v61, 2 }
 0x175   :  { %v1784_v8 = vadd.f32 %v1764_v4, %v1621_v44  ;;  %v1835_v27 = vmul.f32 %v1802_v19, %v1783_v40  ;;  %v1815_v15 = vsel %vm966_vm0, %v1802_v19, 0.0 }
 0x176   :  { %v1604_v37 = vpop.f32.mrf.mxu0  ;;  %v1767_v17 = vpop.f32.mrf.mxu1  ;;  %v1847_v33 = vadd.f32 %v1846_v41, %v1845_v13  ;;  %v1816_v38 = vadd.f32 %v1815_v15, %v1814_v23  ;;  %v1037_v9 = vrot.slane %v1036_v57, 2  ;;  %v1005_v14 = vadd.f32 %v1004_v45, %v1003_v61  ;;  %v1869_v13 = vld [vmem:[%s3891_s2] sm:$0x1] }
 0x177   :  { %1794 = vst.msk [vmem:[#allocation2 + $0x78] sm:$0xff] %vm966_vm0, %v1784_v8  ;;  %v1803_v50 = vmul.f32 %v3646_v58, %v1784_v8  ;;  %v1622_v56 = vadd.f32 %v1604_v37, %v1390_v0  ;;  %v1848_v26 = vsel %vm966_vm0, %v1835_v27, 0.0  ;;  %v1888_v23 = vsub.s32 0, %v3358_v31 }
 0x178   :  { %v2704_v28 = vpop.f32.mrf.mxu0  ;;  %v2740_v46 = vpop.f32.mrf.mxu1  ;;  %v1849_v16 = vadd.f32 %v1848_v26, %v1847_v33  ;;  %v1006_v10 = vrot.slane %v1005_v14, 1  ;;  %v1878_v33 = vld [vmem:[#allocation2 + $0x10] sm:$0xff] }
 0x179   :  { %v1836_v20 = vmul.f32 %v1803_v50, %v1784_v8  ;;  %v1785_v21 = vadd.f32 %v1767_v17, %v1622_v56  ;;  %v1817_v34 = vsel %vm966_vm0, %v1803_v50, 0.0  ;;  %v1038_v8 = vadd.f32 %v1037_v9, %v1036_v57 }
 0x17a   :  { %v1609_v58 = vpop.f32.mrf.mxu0  ;;  %v1772_v54 = vpop.f32.mrf.mxu1  ;;  %v1818_v52 = vadd.f32 %v1817_v34, %v1816_v38  ;;  %v1007_v50 = vadd.f32 %v1006_v10, %v1005_v14  ;;  %v1873_v34 = vld [vmem:[%s3892_s3] sm:$0x1]  ;;  %v1879_v38 = vld [vmem:[#allocation2 + $0x18] sm:$0xff] }
 0x17b   :  { %1795 = vst.msk [vmem:[#allocation2 + $0x80] sm:$0xff] %vm966_vm0, %v1785_v21  ;;  %v1804_v36 = vmul.f32 %v3658_v51, %v1785_v21  ;;  %v1623_v53 = vadd.f32 %v1609_v58, %v1395_v5  ;;  %v1850_v30 = vsel %vm966_vm0, %v1836_v20, 0.0  ;;  %v1039_v37 = vrot.slane %v1038_v8, 1 }
 0x17c   :  { %v2707_v29 = vpop.f32.mrf.mxu0  ;;  %v2743_v59 = vpop.f32.mrf.mxu1  ;;  %v1851_v1 = vadd.f32 %v1850_v30, %v1849_v16  ;;  %v1881_v30 = vld [vmem:[#allocation2 + $0x28] sm:$0xff]  ;;  %v1884_v16 = vld [vmem:[#allocation2 + $0x40] sm:$0xff] }
 0x17d   :  { %v1819_v60 = vsel %vm966_vm0, %v1804_v36, 0.0  ;;  %v1837_v39 = vmul.f32 %v1804_v36, %v1785_v21  ;;  %v1786_v43 = vadd.f32 %v1772_v54, %v1623_v53  ;;  %v1040_v5 = vadd.f32 %v1039_v37, %v1038_v8  ;;  %v1876_v36 = vld [vmem:[#allocation2] sm:$0xff]  ;;  %v1877_v53 = vld [vmem:[#allocation2 + $0x8] sm:$0xff] }
 0x17e   :  { %v1612_v49 = vpop.f32.mrf.mxu0  ;;  %v1775_v62 = vpop.f32.mrf.mxu1  ;;  %v1820_v2 = vadd.f32 %v1819_v60, %v1818_v52  ;;  %v1880_v29 = vld [vmem:[#allocation2 + $0x20] sm:$0xff]  ;;  %v1882_v60 = vld [vmem:[#allocation2 + $0x30] sm:$0xff]  ;;  %v1989_v52 = vld [vmem:[#allocation2 + $0x48] sm:$0xff] }
 0x17f   :  { %v1852_v51 = vsel %vm966_vm0, %v1837_v39, 0.0  ;;  %1796 = vst.msk [vmem:[#allocation2 + $0x88] sm:$0xff] %vm966_vm0, %v1786_v43  ;;  %v1805_v40 = vmul.f32 %v3667_v55, %v1786_v43  ;;  %v1883_v39 = vld [vmem:[#allocation2 + $0x38] sm:$0xff]  ;;  %v1990_v49 = vld [vmem:[#allocation2 + $0x50] sm:$0xff] }
 0x180   :  { %v2708_v3 = vpop.f32.mrf.mxu0  ;;  %v2744_v44 = vpop.f32.mrf.mxu1  ;;  %v1853_v4 = vadd.f32 %v1852_v51, %v1851_v1  ;;  %v1991_v1 = vld [vmem:[#allocation2 + $0x58] sm:$0xff] }
 0x181   :  { %v1821_v6 = vsel %vm966_vm0, %v1805_v40, 0.0  ;;  %v1838_v19 = vmul.f32 %v1805_v40, %v1786_v43  ;;  %v1993_v3 = vld [vmem:[#allocation2 + $0x68] sm:$0xff] }
 0x182   :  { %v1822_v0 = vadd.f32 %v1821_v6, %v1820_v2  ;;  %v1992_v2 = vld [vmem:[#allocation2 + $0x60] sm:$0xff] }
 0x183   :  { %v1854_v7 = vsel %vm966_vm0, %v1838_v19, 0.0  ;;  %vm1979_vm0 = vcmask 519168  }
 0x184   :  { %v1823_v42 = vrot.slane %v1822_v0, 4  ;;  %v1855_v12 = vadd.f32 %v1854_v7, %v1853_v4 }
 0x186   :  { %v1824_v55 = vadd.f32 %v1823_v42, %v1822_v0  ;;  %v1856_v11 = vrot.slane %v1855_v12, 4 }
 0x188   :  { %v1825_v25 = vrot.slane %v1824_v55, 2  ;;  %v1857_v18 = vadd.f32 %v1856_v11, %v1855_v12 }
 0x18a   :  { %v1826_v24 = vadd.f32 %v1825_v25, %v1824_v55  ;;  %v1858_v63 = vrot.slane %v1857_v18, 2 }
 0x18c   :  { %v1827_v22 = vrot.slane %v1826_v24, 1  ;;  %v1859_v27 = vadd.f32 %v1858_v63, %v1857_v18 }
 0x18e   :  { %v1828_v56 = vadd.f32 %v1827_v22, %v1826_v24  ;;  %v1860_v17 = vrot.slane %v1859_v27, 1  ;;  %v1994_v24 = vld [vmem:[#allocation2 + $0x70] sm:$0xff] }
 0x190   :  { %v1829_v32 = vadd.f32 %v1828_v56, %v1007_v50  ;;  %v1861_v35 = vadd.f32 %v1860_v17, %v1859_v27 }
 0x192   :  { %v1862_v28 = vadd.f32 %v1861_v35, %v1040_v5  ;;  %v1864_v41 = vmul.f32 0.0078125, %v1829_v32 }
 0x194   :  { %v1865_v15 = vmul.f32 0.0078125, %v1862_v28  ;;  %v1866_v20 = vmul.f32 %v1864_v41, %v1864_v41 }
 0x196   :  { %v1867_v21 = vsub.f32 %v1865_v15, %v1866_v20 }
 0x198   :  { %v1868_v46 = vmax.f32 %v1867_v21, 0.0 }
 0x19a   :  { %v1870_v47 = vadd.f32 1e-05, %v1868_v46 }
 0x19c   :  { %2853 = vrsqrt.f32 %v1870_v47 }
 0x1a9   :  { %v2854_v58 = vpop.eup %2853 }
 0x1aa   :  { %v1872_v26 = vmul.f32 %v2854_v58, %v1869_v13 }
 0x1ac   :  { %v1874_v54 = vmul.f32 %v1872_v26, %v1864_v41  ;;  %v3744_v48 = vrot.slane %v1872_v26, %v1888_v23 }
 0x1ae   :  { %v1875_v43 = vsub.f32 %v1873_v34, %v1874_v54  ;;  %v1891_v31 = vmul.f32 %v3744_v48, %v1876_v36  ;;  %v1892_v59 = vmul.f32 %v3744_v48, %v1877_v53  ;;  %v1893_v61 = vmul.f32 %v3744_v48, %v1878_v33  ;;  %v1995_v36 = vld [vmem:[#allocation2 + $0x78] sm:$0xff]  ;;  %v1996_v53 = vld [vmem:[#allocation2 + $0x80] sm:$0xff] }
 0x1af   :  { %v1894_v51 = vmul.f32 %v3744_v48, %v1879_v38  ;;  %v1895_v40 = vmul.f32 %v3744_v48, %v1880_v29  ;;  %v1896_v62 = vmul.f32 %v3744_v48, %v1881_v30  ;;  %v1897_v57 = vmul.f32 %v3744_v48, %v1882_v60 }
 0x1b0   :  { %v1898_v6 = vmul.f32 %v3744_v48, %v1883_v39  ;;  %v1899_v19 = vmul.f32 %v3744_v48, %v1884_v16  ;;  %v3755_v44 = vrot.slane %v1875_v43, %v1888_v23  ;;  %v3758_v45 = vmul.f32 %v1989_v52, %v3744_v48  ;;  %v1997_v39 = vld [vmem:[#allocation2 + $0x88] sm:$0xff] }
 0x1b1   :  { %v3761_v4 = vmul.f32 %v1990_v49, %v3744_v48  ;;  %v3764_v0 = vmul.f32 %v1991_v1, %v3744_v48  ;;  %v3767_v7 = vmul.f32 %v1992_v2, %v3744_v48  ;;  %v3770_v9 = vmul.f32 %v1993_v3, %v3744_v48 }
 0x1b2   :  { %v1906_v42 = vadd.f32 %v3755_v44, %v1891_v31  ;;  %v1907_v12 = vadd.f32 %v3755_v44, %v1892_v59  ;;  %v1908_v14 = vadd.f32 %v3755_v44, %v1893_v61  ;;  %v1909_v55 = vadd.f32 %v3755_v44, %v1894_v51 }
 0x1b3   :  { %v1910_v11 = vadd.f32 %v3755_v44, %v1895_v40  ;;  %v1911_v8 = vadd.f32 %v3755_v44, %v1896_v62  ;;  %v1912_v25 = vadd.f32 %v3755_v44, %v1897_v57  ;;  %v1913_v18 = vadd.f32 %v3755_v44, %v1898_v6 }
 0x1b4   :  { %v1914_v10 = vadd.f32 %v3755_v44, %v1899_v19  ;;  %vm1915_vm9 = vcmp.ge.f32.partialorder %v1906_v42, 0.0  ;;  %vm1916_vm10 = vcmp.ge.f32.partialorder %v1907_v12, 0.0  ;;  %vm1917_vm11 = vcmp.ge.f32.partialorder %v1908_v14, 0.0 }
 0x1b5   :  { %vm1918_vm12 = vcmp.ge.f32.partialorder %v1909_v55, 0.0  ;;  %vm1919_vm13 = vcmp.ge.f32.partialorder %v1910_v11, 0.0  ;;  %vm1920_vm14 = vcmp.ge.f32.partialorder %v1911_v8, 0.0  ;;  %vm1921_vm15 = vcmp.ge.f32.partialorder %v1912_v25, 0.0 }
 0x1b6   :  { %vm1922_vm1 = vcmp.ge.f32.partialorder %v1913_v18, 0.0  ;;  %vm1923_vm2 = vcmp.ge.f32.partialorder %v1914_v10, 0.0  ;;  %v1924_v63 = vmul.f32 0.2, %v1906_v42  ;;  %v1925_v37 = vmul.f32 0.2, %v1907_v12 }
 0x1b7   :  { %v1926_v22 = vmul.f32 0.2, %v1908_v14  ;;  %v1927_v27 = vmul.f32 0.2, %v1909_v55  ;;  %v1928_v50 = vmul.f32 0.2, %v1910_v11  ;;  %v2003_v56 = vmul.f32 %v1994_v24, %v3744_v48 }
 0x1b8   :  { %v1929_v17 = vmul.f32 0.2, %v1911_v8  ;;  %v1930_v5 = vmul.f32 0.2, %v1912_v25  ;;  %v1931_v32 = vmul.f32 0.2, %v1913_v18  ;;  %v1933_v35 = vsel %vm1915_vm9, %v1906_v42, %v1924_v63 }
 0x1b9   :  { %v1932_v28 = vmul.f32 0.2, %v1914_v10  ;;  %v1934_v41 = vsel %vm1916_vm10, %v1907_v12, %v1925_v37  ;;  %v1935_v15 = vsel %vm1917_vm11, %v1908_v14, %v1926_v22  ;;  %v1936_v20 = vsel %vm1918_vm12, %v1909_v55, %v1927_v27 }
 0x1ba   :  { %v1937_v21 = vsel %vm1919_vm13, %v1910_v11, %v1928_v50  ;;  %v1938_v46 = vsel %vm1920_vm14, %v1911_v8, %v1929_v17  ;;  %v1939_v47 = vsel %vm1921_vm15, %v1912_v25, %v1930_v5  ;;  %v1940_v13 = vsel %vm1922_vm1, %v1913_v18, %v1931_v32 }
 0x1bb   :  { %v1941_v23 = vsel %vm1923_vm2, %v1914_v10, %v1932_v28  ;;  %v2335_v58 = vpack.c.bf16 %v1933_v35, %v1933_v35  ;;  %v2336_v26 = vpack.c.bf16 %v1934_v41, %v1934_v41  ;;  %v2337_v34 = vpack.c.bf16 %v1935_v15, %v1935_v15 }
 0x1bc   :  { %v2338_v54 = vpack.c.bf16 %v1936_v20, %v1936_v20  ;;  %v2339_v33 = vpack.c.bf16 %v1937_v21, %v1937_v21  ;;  %v2340_v38 = vpack.c.bf16 %v1938_v46, %v1938_v46  ;;  %v2341_v29 = vpack.c.bf16 %v1939_v47, %v1939_v47 }
 0x1bd   :  { %v2342_v30 = vpack.c.bf16 %v1940_v13, %v1940_v13  ;;  %v2343_v60 = vpack.c.bf16 %v1941_v23, %v1941_v23  ;;  %1980 = vst.msk [vmem:[%s3893_s4] sm:$0xf] %vm1979_vm0, %v2335_v58  ;;  %1981 = vst.msk [vmem:[%s3893_s4 + $0x4] sm:$0xf] %vm1979_vm0, %v2336_v26  ;;  %v2004_v43 = vmul.f32 %v1995_v36, %v3744_v48 }
 0x1be   :  { %1982 = vst.msk [vmem:[%s3893_s4 + $0x8] sm:$0xf] %vm1979_vm0, %v2337_v34  ;;  %v2005_v31 = vmul.f32 %v1996_v53, %v3744_v48  ;;  %1983 = vst.msk [vmem:[%s3893_s4 + $0xc] sm:$0xf] %vm1979_vm0, %v2338_v54  ;;  %v2006_v59 = vmul.f32 %v1997_v39, %v3744_v48  ;;  %v2007_v61 = vadd.f32 %v3758_v45, %v3755_v44 }
 0x1bf   :  { %1984 = vst.msk [vmem:[%s3893_s4 + $0x10] sm:$0xf] %vm1979_vm0, %v2339_v33  ;;  %1985 = vst.msk [vmem:[%s3893_s4 + $0x14] sm:$0xf] %vm1979_vm0, %v2340_v38  ;;  %v2008_v16 = vadd.f32 %v3761_v4, %v3755_v44  ;;  %v2009_v52 = vadd.f32 %v3764_v0, %v3755_v44  ;;  %v2010_v48 = vadd.f32 %v3767_v7, %v3755_v44 }
 0x1c0   :  { %1986 = vst.msk [vmem:[%s3893_s4 + $0x18] sm:$0xf] %vm1979_vm0, %v2341_v29  ;;  %1987 = vst.msk [vmem:[%s3893_s4 + $0x1c] sm:$0xf] %vm1979_vm0, %v2342_v30  ;;  %v2011_v49 = vadd.f32 %v3770_v9, %v3755_v44  ;;  %v2012_v51 = vadd.f32 %v2003_v56, %v3755_v44  ;;  %v2013_v40 = vadd.f32 %v2004_v43, %v3755_v44  ;;  %vm2016_vm3 = vcmp.ge.f32.partialorder %v2007_v61, 0.0 }
 0x1c1   :  { %1988 = vst.msk [vmem:[%s3893_s4 + $0x20] sm:$0xf] %vm1979_vm0, %v2343_v60  ;;  %v2014_v62 = vadd.f32 %v2005_v31, %v3755_v44  ;;  %v2015_v57 = vadd.f32 %v2006_v59, %v3755_v44  ;;  %vm2017_vm4 = vcmp.ge.f32.partialorder %v2008_v16, 0.0  ;;  %vm2018_vm5 = vcmp.ge.f32.partialorder %v2009_v52, 0.0 }
 0x1c2   :  { %vm2019_vm6 = vcmp.ge.f32.partialorder %v2010_v48, 0.0  ;;  %vm2020_vm7 = vcmp.ge.f32.partialorder %v2011_v49, 0.0  ;;  %vm2021_vm8 = vcmp.ge.f32.partialorder %v2012_v51, 0.0  ;;  %vm2022_vm9 = vcmp.ge.f32.partialorder %v2013_v40, 0.0 }
 0x1c3   :  { %vm2023_vm10 = vcmp.ge.f32.partialorder %v2014_v62, 0.0  ;;  %vm2024_vm11 = vcmp.ge.f32.partialorder %v2015_v57, 0.0  ;;  %v2025_v1 = vmul.f32 0.2, %v2007_v61  ;;  %v2026_v2 = vmul.f32 0.2, %v2008_v16 }
 0x1c4   :  { %v2027_v3 = vmul.f32 0.2, %v2009_v52  ;;  %v2028_v6 = vmul.f32 0.2, %v2010_v48  ;;  %v2029_v19 = vmul.f32 0.2, %v2011_v49 }
 0x1c5   :  { %v2030_v45 = vmul.f32 0.2, %v2012_v51  ;;  %v2031_v4 = vmul.f32 0.2, %v2013_v40  ;;  %v2034_v0 = vsel %vm2016_vm3, %v2007_v61, %v2025_v1  ;;  %v2032_v7 = vmul.f32 0.2, %v2014_v62 }
 0x1c6   :  { %v2033_v44 = vmul.f32 0.2, %v2015_v57  ;;  %v2035_v9 = vsel %vm2017_vm4, %v2008_v16, %v2026_v2  ;;  %v2036_v42 = vsel %vm2018_vm5, %v2009_v52, %v2027_v3  ;;  %v2037_v12 = vsel %vm2019_vm6, %v2010_v48, %v2028_v6 }
 0x1c7   :  { %v2038_v14 = vsel %vm2020_vm7, %v2011_v49, %v2029_v19  ;;  %v2039_v55 = vsel %vm2021_vm8, %v2012_v51, %v2030_v45  ;;  %v2040_v11 = vsel %vm2022_vm9, %v2013_v40, %v2031_v4  ;;  %v2041_v8 = vsel %vm2023_vm10, %v2014_v62, %v2032_v7 }
 0x1c8   :  { %v2042_v25 = vsel %vm2024_vm11, %v2015_v57, %v2033_v44  ;;  %v2344_v18 = vpack.c.bf16 %v2034_v0, %v2034_v0  ;;  %v2345_v10 = vpack.c.bf16 %v2035_v9, %v2035_v9  ;;  %v2346_v24 = vpack.c.bf16 %v2036_v42, %v2036_v42 }
 0x1c9   :  { %v2347_v63 = vpack.c.bf16 %v2037_v12, %v2037_v12  ;;  %v2348_v37 = vpack.c.bf16 %v2038_v14, %v2038_v14  ;;  %v2349_v22 = vpack.c.bf16 %v2039_v55, %v2039_v55  ;;  %v2350_v27 = vpack.c.bf16 %v2040_v11, %v2040_v11 }
 0x1ca   :  { %v2351_v50 = vpack.c.bf16 %v2041_v8, %v2041_v8  ;;  %v2352_v56 = vpack.c.bf16 %v2042_v25, %v2042_v25  ;;  %2326 = vst.msk [vmem:[%s3893_s4 + $0x24] sm:$0xf] %vm1979_vm0, %v2344_v18  ;;  %2327 = vst.msk [vmem:[%s3893_s4 + $0x28] sm:$0xf] %vm1979_vm0, %v2345_v10 }
 0x1cb   :  { %2328 = vst.msk [vmem:[%s3893_s4 + $0x2c] sm:$0xf] %vm1979_vm0, %v2346_v24  ;;  %2329 = vst.msk [vmem:[%s3893_s4 + $0x30] sm:$0xf] %vm1979_vm0, %v2347_v63 }
 0x1cc   :  { %2330 = vst.msk [vmem:[%s3893_s4 + $0x34] sm:$0xf] %vm1979_vm0, %v2348_v37  ;;  %2331 = vst.msk [vmem:[%s3893_s4 + $0x38] sm:$0xf] %vm1979_vm0, %v2349_v22 }
 0x1cd   :  { %2332 = vst.msk [vmem:[%s3893_s4 + $0x3c] sm:$0xf] %vm1979_vm0, %v2350_v27  ;;  %2333 = vst.msk [vmem:[%s3893_s4 + $0x40] sm:$0xf] %vm1979_vm0, %v2351_v50 }
 0x1ce   :  { %2334 = vst.msk [vmem:[%s3893_s4 + $0x44] sm:$0xf] %vm1979_vm0, %v2352_v56 }

// kernel: encoder_svhn_forward.6
= control target key start
LH: loop header
LB: loop body
LE: loop exit
PB: predicated region body
PF: predicated region fallthrough
CT: control target
= control target key end

     0   :  { %vm170_vm0 = vsmask.f32 7424  ;;  %vm544_vm1 = vsmask.f32 5376  ;;  %vm769_vm2 = vcmask 1044480   ;;  %s3285_s1 = inlined_call_operand.vmem [shape: bf16[4,256,128], index: 1, kind: input, shape index: {}]   ;;  %s3286_s0 = inlined_call_operand.vmem [shape: bf16[2,32,256], index: 0, kind: input, shape index: {}]   ;;  %s3287_s2 = inlined_call_operand.vmem [shape: f32[1,128], index: 2, kind: input, shape index: {}]   ;;  %s3288_s3 = inlined_call_operand.vmem [shape: f32[1,128], index: 3, kind: input, shape index: {}]   ;;  %s3289_s4 = inlined_call_operand.vmem [shape: bf16[2,24,128], index: 4, kind: output, shape index: {}]  }
   0x1   :  { %v2528_v0 = vld [vmem:[%s3285_s1 + $0xf8] sm:$0xff]   ;;  %v2532_v4 = vld [vmem:[%s3285_s1 + $0xf0] sm:$0xff]   ;;  %v2536_v8 = vld [vmem:[%s3285_s1 + $0xe8] sm:$0xff]  }
   0x2   :  { %v2529_v1 = vld [vmem:[%s3285_s1 + $0x78] sm:$0xff]   ;;  %2297 = vmatprep.subr.bf16.mxu0 %v2528_v0  ;;  %v2533_v5 = vld [vmem:[%s3285_s1 + $0x70] sm:$0xff]   ;;  %v2537_v9 = vld [vmem:[%s3285_s1 + $0x68] sm:$0xff]  }
   0x3   :  { %v2530_v2 = vld [vmem:[%s3285_s1 + $0xb8] sm:$0xff]   ;;  %2325 = vmatprep.subr.bf16.mxu1 %v2529_v1  ;;  %v2534_v6 = vld [vmem:[%s3285_s1 + $0xb0] sm:$0xff]   ;;  %v2538_v10 = vld [vmem:[%s3285_s1 + $0xa8] sm:$0xff]  }
   0x4   :  { %v2531_v3 = vld [vmem:[%s3285_s1 + $0x38] sm:$0xff]   ;;  %2298 = vmatpush3.bf16.msra.mxu0 %v2530_v2  ;;  %v2535_v7 = vld [vmem:[%s3285_s1 + $0x30] sm:$0xff]   ;;  %v2539_v11 = vld [vmem:[%s3285_s1 + $0x28] sm:$0xff]  }
   0x5   :  { %2326 = vmatpush3.bf16.msra.mxu1 %v2531_v3  ;;  %2299 = vmatprep.subr.bf16.mxu0 %v2532_v4  ;;  %v2540_v12 = vld [vmem:[%s3285_s1 + $0xe0] sm:$0xff]   ;;  %v2544_v16 = vld [vmem:[%s3285_s1 + $0xd8] sm:$0xff]   ;;  %v2548_v20 = vld [vmem:[%s3285_s1 + $0xd0] sm:$0xff]  }
   0x6   :  { %2327 = vmatprep.subr.bf16.mxu1 %v2533_v5  ;;  %v2541_v13 = vld [vmem:[%s3285_s1 + $0x60] sm:$0xff]   ;;  %v2545_v17 = vld [vmem:[%s3285_s1 + $0x58] sm:$0xff]   ;;  %v2549_v21 = vld [vmem:[%s3285_s1 + $0x50] sm:$0xff]  }
   0x7   :  { %v2542_v14 = vld [vmem:[%s3285_s1 + $0xa0] sm:$0xff]   ;;  %v2546_v18 = vld [vmem:[%s3285_s1 + $0x98] sm:$0xff]   ;;  %v2550_v22 = vld [vmem:[%s3285_s1 + $0x90] sm:$0xff]  }
   0x8   :  { %2300 = vmatpush3.bf16.msra.mxu0 %v2534_v6  ;;  %v2543_v15 = vld [vmem:[%s3285_s1 + $0x20] sm:$0xff]   ;;  %v2547_v19 = vld [vmem:[%s3285_s1 + $0x18] sm:$0xff]   ;;  %v2551_v23 = vld [vmem:[%s3285_s1 + $0x10] sm:$0xff]  }
   0x9   :  { %2328 = vmatpush3.bf16.msra.mxu1 %v2535_v7  ;;  %2301 = vmatprep.subr.bf16.mxu0 %v2536_v8  ;;  %v2552_v24 = vld [vmem:[%s3285_s1 + $0xc8] sm:$0xff]   ;;  %v2556_v28 = vld [vmem:[%s3285_s1 + $0xc0] sm:$0xff]   ;;  %v2815_v34 = vld [vmem:[%s3286_s0 + $0x10] sm:$0xff] }
   0xa   :  { %2329 = vmatprep.subr.bf16.mxu1 %v2537_v9  ;;  %v2553_v25 = vld [vmem:[%s3285_s1 + $0x48] sm:$0xff]   ;;  %v2557_v29 = vld [vmem:[%s3285_s1 + $0x40] sm:$0xff]   ;;  %v120_v35 = vld [vmem:[%s3286_s0 + $0x18] sm:$0x11]  ;;  %v1973_v38 = vcombine.high %v2815_v34, %v2815_v34  ;;  %v1972_v0 = vcombine.low %v2815_v34, %v2815_v34 }
   0xb   :  { %v2554_v26 = vld [vmem:[%s3285_s1 + $0x88] sm:$0xff]   ;;  %v2558_v30 = vld [vmem:[%s3285_s1 + $0x80] sm:$0xff]   ;;  %v1955_v39 = vcombine.high %v2815_v34, %v120_v35  ;;  %v1954_v40 = vcombine.low %v2815_v34, %v120_v35  ;;  %v2564_v41 = vld [vmem:[%s3285_s1 + $0x178] sm:$0xff]  }
   0xc   :  { %2302 = vmatpush3.bf16.msra.mxu0 %v2538_v10  ;;  %v2555_v27 = vld [vmem:[%s3285_s1 + $0x8] sm:$0xff]   ;;  %v2559_v31 = vld [vmem:[%s3285_s1] sm:$0xff]   ;;  %v2565_v46 = vld [vmem:[%s3285_s1 + $0x1f8] sm:$0xff]  }
   0xd   :  { %2330 = vmatpush3.bf16.msra.mxu1 %v2539_v11  ;;  %2303 = vmatprep.subr.bf16.mxu0 %v2540_v12  ;;  %v85_v32 = vld [vmem:[%s3286_s0] sm:$0xff]  ;;  %v2810_v33 = vld [vmem:[%s3286_s0 + $0x8] sm:$0xff]  ;;  %v191_v47 = vshll.u32 %v1955_v39, 16  ;;  %v179_v48 = vshll.u32 %v1954_v40, 16  ;;  %v2566_v53 = vld [vmem:[%s3285_s1 + $0x138] sm:$0xff]   ;;  %v198_v58 = vshrl.u32 %v1955_v39, 16 }
   0xe   :  { %2331 = vmatprep.subr.bf16.mxu1 %v2541_v13  ;;  %v1953_v36 = vcombine.high %v85_v32, %v2810_v33  ;;  %v1952_v37 = vcombine.low %v85_v32, %v2810_v33  ;;  %v2567_v54 = vld [vmem:[%s3285_s1 + $0x1b8] sm:$0xff]   ;;  %v2569_v57 = vld [vmem:[%s3285_s1 + $0x1f0] sm:$0xff]   ;;  %v195_v2 = vshrl.u32 %v1954_v40, 16  ;;  %v2573_v3 = vld [vmem:[%s3285_s1 + $0x1e8] sm:$0xff]  }
   0xf   :  { %v193_v51 = vrot.slane %v191_v47, 1  ;;  %v181_v52 = vrot.slane %v179_v48, 1  ;;  %v2568_v61 = vld [vmem:[%s3285_s1 + $0x170] sm:$0xff]   ;;  %v2572_v4 = vld [vmem:[%s3285_s1 + $0x168] sm:$0xff]   ;;  %v2577_v8 = vld [vmem:[%s3285_s1 + $0x1e0] sm:$0xff]  }
  0x10   :  { %2304 = vmatpush3.bf16.msra.mxu0 %v2542_v14  ;;  %v184_v42 = vshrl.u32 %v1953_v36, 16  ;;  %v186_v43 = vshll.u32 %v1953_v36, 16  ;;  %483 = vmatprep.mubr.bf16.mxu1 %v1953_v36  ;;  %v172_v44 = vshrl.u32 %v1952_v37, 16  ;;  %v174_v45 = vshll.u32 %v1952_v37, 16  ;;  %v2571_v62 = vld [vmem:[%s3285_s1 + $0x1b0] sm:$0xff]   ;;  %v2575_v5 = vld [vmem:[%s3285_s1 + $0x1a8] sm:$0xff]  }
  0x11   :  { %2332 = vmatpush3.bf16.msra.mxu1 %v2543_v15  ;;  %2305 = vmatprep.subr.bf16.mxu0 %v2544_v16  ;;  %v200_v63 = vor.u32 %v198_v58, %v193_v51  ;;  %v2570_v1 = vld [vmem:[%s3285_s1 + $0x130] sm:$0xff]   ;;  %v2574_v6 = vld [vmem:[%s3285_s1 + $0x128] sm:$0xff]   ;;  %v197_v7 = vor.u32 %v195_v2, %v181_v52  ;;  %v2576_v9 = vld [vmem:[%s3285_s1 + $0x160] sm:$0xff]  }
  0x12   :  { %2333 = vmatprep.subr.bf16.mxu1 %v2545_v17  ;;  %v188_v49 = vrot.slane %v186_v43, 1  ;;  %v176_v50 = vrot.slane %v174_v45, 1  ;;  %v2579_v10 = vld [vmem:[%s3285_s1 + $0x1a0] sm:$0xff]   ;;  %v2581_v12 = vld [vmem:[%s3285_s1 + $0x1d8] sm:$0xff]   ;;  %v2586_v16 = vld [vmem:[%s3285_s1 + $0x1d0] sm:$0xff]  }
  0x13   :  { %v2578_v11 = vld [vmem:[%s3285_s1 + $0x120] sm:$0xff]   ;;  %v2580_v13 = vld [vmem:[%s3285_s1 + $0x158] sm:$0xff]   ;;  %v2585_v17 = vld [vmem:[%s3285_s1 + $0x150] sm:$0xff]  }
  0x14   :  { %2306 = vmatpush3.bf16.msra.mxu0 %v2546_v18  ;;  %v189_v55 = vor.u32 %v188_v49, %v184_v42  ;;  %v177_v56 = vor.u32 %v176_v50, %v172_v44  ;;  %v2583_v14 = vld [vmem:[%s3285_s1 + $0x198] sm:$0xff]   ;;  %v2589_v18 = vld [vmem:[%s3285_s1 + $0x190] sm:$0xff]   ;;  %v730_v32 = vld [vmem:[%s3286_s0] sm:$0x88] }
  0x15   :  { %2334 = vmatpush3.bf16.msra.mxu1 %v2547_v19  ;;  %2307 = vmatprep.subr.bf16.mxu0 %v2548_v20  ;;  %v2582_v15 = vld [vmem:[%s3285_s1 + $0x118] sm:$0xff]   ;;  %v2588_v19 = vld [vmem:[%s3285_s1 + $0x110] sm:$0xff]   ;;  %v2591_v20 = vld [vmem:[%s3285_s1 + $0x1c8] sm:$0xff]  }
  0x16   :  { %2335 = vmatprep.subr.bf16.mxu1 %v2549_v21  ;;  %v194_v59 = vsel %vm170_vm0, %v189_v55, %v193_v51  ;;  %v182_v60 = vsel %vm170_vm0, %v177_v56, %v181_v52  ;;  %v2590_v21 = vld [vmem:[%s3285_s1 + $0x148] sm:$0xff]   ;;  %v2596_v35 = vld [vmem:[%s3285_s1 + $0x100] sm:$0xff]   ;;  %v2604_v43 = vld [vmem:[%s3285_s1 + $0xf8] sm:$0xff]  }
  0x17   :  { %333 = vmatprep.mubr.bf16.mxu0 %v194_v59  ;;  %v2605_v44 = vld [vmem:[%s3285_s1 + $0x78] sm:$0xff]  }
  0x18   :  { %2308 = vmatpush3.bf16.msra.mxu0 %v2550_v22  ;;  %v2593_v22 = vld [vmem:[%s3285_s1 + $0x188] sm:$0xff]   ;;  %v2607_v55 = vld [vmem:[%s3285_s1 + $0x38] sm:$0xff]  }
  0x19   :  { %2336 = vmatpush3.bf16.msra.mxu1 %v2551_v23  ;;  %2309 = vmatprep.subr.bf16.mxu0 %v2552_v24  ;;  %v2592_v23 = vld [vmem:[%s3285_s1 + $0x108] sm:$0xff]   ;;  %v2595_v24 = vld [vmem:[%s3285_s1 + $0x1c0] sm:$0xff]   ;;  %v2606_v2 = vld [vmem:[%s3285_s1 + $0xb8] sm:$0xff]  }
  0x1a   :  { %2337 = vmatprep.subr.bf16.mxu1 %v2553_v25  ;;  %v2594_v25 = vld [vmem:[%s3285_s1 + $0x140] sm:$0xff]  }
  0x1c   :  { %2310 = vmatpush3.bf16.msra.mxu0 %v2554_v26  ;;  %v2597_v26 = vld [vmem:[%s3285_s1 + $0x180] sm:$0xff]  }
  0x1d   :  { %2338 = vmatpush3.bf16.msra.mxu1 %v2555_v27  ;;  %2311 = vmatprep.subr.bf16.mxu0 %v2556_v28  ;;  %v499_v27 = vld [vmem:[%s3286_s0] sm:$0xcc]  ;;  %v500_v28 = vld [vmem:[%s3286_s0 + $0x18] sm:$0x77] }
  0x1e   :  { %2339 = vmatprep.subr.bf16.mxu1 %v2557_v29  ;;  %v2022_v29 = vcombine.low %v499_v27, %v2810_v33  ;;  %v2024_v36 = vcombine.low %v2815_v34, %v500_v28 }
  0x20   :  { %2312 = vmatpush3.bf16.msra.mxu0 %v2558_v30  ;;  %v2023_v30 = vcombine.high %v499_v27, %v2810_v33  ;;  %v546_v47 = vshrl.u32 %v2022_v29, 16  ;;  %v557_v58 = vshll.u32 %v2024_v36, 16  ;;  %v771_v59 = vrot.slane %v2024_v36, 3  ;;  %v2628_v27 = vld [vmem:[%s3285_s1 + $0xc8] sm:$0xff]  }
  0x21   :  { %2340 = vmatpush3.bf16.msra.mxu1 %v2559_v31  ;;  %2353 = vmatprep.subr.bf16.mxu0 %v2564_v41  ;;  %v2025_v31 = vcombine.high %v2815_v34, %v500_v28  ;;  %v2630_v28 = vld [vmem:[%s3285_s1 + $0x88] sm:$0xff]  }
  0x22   :  { %2381 = vmatprep.subr.bf16.mxu1 %v2565_v46  ;;  %v563_v39 = vshrl.u32 %v2023_v30, 16  ;;  %v566_v40 = vshll.u32 %v2023_v30, 16  ;;  %v548_v52 = vrot.slane %v546_v47, 2  ;;  %v2632_v30 = vld [vmem:[%s3285_s1 + $0xc0] sm:$0xff]  }
  0x23   :  { %334 = vmatmul.mubr.bf16.vlgmr.msra.gmra.mxu0 %v182_v60  ;;  %v571_v41 = vshrl.u32 %v2025_v31, 16  ;;  %v574_v42 = vshll.u32 %v2025_v31, 16  ;;  %v774_v46 = vrot.slane %v2025_v31, 3  ;;  %v2635_v31 = vld [vmem:[%s3285_s1] sm:$0xff]  }
  0x24   :  { %484 = vmatmul.mubr.bf16.vlgmr.msra.gmra.mxu1 %v1952_v37  ;;  %2354 = vmatpush3.bf16.msra.mxu0 %v2566_v53  ;;  %v2074_v37 = vcombine.low %v730_v32, %v2810_v33  ;;  %v565_v48 = vrot.slane %v563_v39, 2  ;;  %v549_v53 = vshll.u32 %v2022_v29, 16  ;;  %v2633_v29 = vld [vmem:[%s3285_s1 + $0x40] sm:$0xff]  }
  0x25   :  { %491 = vmatprep.mubr.bf16.mxu1 %v1973_v38  ;;  %2382 = vmatpush3.bf16.msra.mxu1 %v2567_v54  ;;  %v2075_v38 = vcombine.high %v730_v32, %v2810_v33  ;;  %v568_v33 = vrot.slane %v566_v40, 3  ;;  %v573_v49 = vrot.slane %v571_v41, 2  ;;  %v576_v50 = vrot.slane %v574_v42, 3  ;;  %v2092_v32 = vld [vmem:[%s3286_s0 + $0x20] sm:$0xff] }
  0x26   :  { %2383 = vmatprep.subr.bf16.mxu1 %v2569_v57  ;;  %2355 = vmatprep.subr.bf16.mxu0 %v2568_v61  ;;  %v770_v45 = vrot.slane %v2074_v37, 3  ;;  %v554_v54 = vshrl.u32 %v2024_v36, 16  ;;  %v551_v60 = vrot.slane %v549_v53, 3  ;;  %v3049_v36 = vld [vmem:[%s3286_s0 + $0x30] sm:$0xff]  ;;  %v2095_v37 = vld [vmem:[%s3286_s0 + $0x38] sm:$0x11] }
  0x27   :  { %341 = vmatprep.mubr.bf16.mxu0 %v200_v63  ;;  %v773_v34 = vrot.slane %v2075_v38, 3  ;;  %v569_v56 = vor.u32 %v568_v33, %v565_v48  ;;  %v577_v57 = vor.u32 %v576_v50, %v573_v49  ;;  %v2634_v38 = vld [vmem:[%s3285_s1 + $0x80] sm:$0xff]   ;;  %v2130_v41 = vcombine.low %v3049_v36, %v2095_v37  ;;  %v2643_v49 = vld [vmem:[%s3285_s1 + $0x1b8] sm:$0xff]  }
  0x28   :  { %2356 = vmatpush3.bf16.msra.mxu0 %v2570_v1  ;;  %v556_v61 = vrot.slane %v554_v54, 2  ;;  %v772_v1 = vsel %vm769_vm2, %v770_v45, %v771_v59  ;;  %v2131_v42 = vcombine.high %v3049_v36, %v2095_v37  ;;  %v2149_v50 = vcombine.high %v3049_v36, %v3049_v36  ;;  %v2220_v37 = vld [vmem:[%s3286_s0 + $0x20] sm:$0x88] }
  0x29   :  { %2384 = vmatpush3.bf16.msra.mxu1 %v2571_v62  ;;  %2357 = vmatprep.subr.bf16.mxu0 %v2572_v4  ;;  %v775_v51 = vsel %vm769_vm2, %v773_v34, %v774_v46  ;;  %v2609_v62 = vld [vmem:[%s3285_s1 + $0x70] sm:$0xff]   ;;  %v578_v63 = vsel %vm544_vm1, %v569_v56, %v577_v57  ;;  %v1047_v33 = vshll.u32 %v2130_v41, 16  ;;  %v2642_v56 = vld [vmem:[%s3285_s1 + $0x138] sm:$0xff]  }
  0x2a   :  { %2385 = vmatprep.subr.bf16.mxu1 %v2573_v3  ;;  %v552_v3 = vor.u32 %v551_v60, %v548_v52  ;;  %v1059_v34 = vshll.u32 %v2131_v42, 16 }
  0x2b   :  { %342 = vmatmul.mubr.bf16.gmra.mxu0 %v197_v7  ;;  %v1049_v54 = vrot.slane %v1047_v33, 1 }
  0x2c   :  { %492 = vmatmul.mubr.bf16.gmra.mxu1 %v1972_v0  ;;  %2358 = vmatpush3.bf16.msra.mxu0 %v2574_v6  ;;  %v559_v0 = vrot.slane %v557_v58, 3  ;;  %v2608_v6 = vld [vmem:[%s3285_s1 + $0xf0] sm:$0xff]   ;;  %v1061_v52 = vrot.slane %v1059_v34, 1 }
  0x2d   :  { %2386 = vmatpush3.bf16.msra.mxu1 %v2575_v5  ;;  %2359 = vmatprep.subr.bf16.mxu0 %v2576_v9  ;;  %v2611_v5 = vld [vmem:[%s3285_s1 + $0x30] sm:$0xff]  }
  0x2e   :  { %2387 = vmatprep.subr.bf16.mxu1 %v2577_v8  ;;  %908 = vmatprep.mubr.bf16.mxu1 %v775_v51  ;;  %v560_v4 = vor.u32 %v559_v0, %v556_v61  ;;  %v2613_v8 = vld [vmem:[%s3285_s1 + $0x68] sm:$0xff]   ;;  %v2610_v9 = vld [vmem:[%s3285_s1 + $0xb0] sm:$0xff]  }
  0x2f   :  { %711 = vmatprep.mubr.bf16.mxu0 %v578_v63  ;;  %v2644_v61 = vld [vmem:[%s3285_s1 + $0x170] sm:$0xff]  }
  0x30   :  { %2360 = vmatpush3.bf16.msra.mxu0 %v2578_v11  ;;  %v561_v7 = vsel %vm544_vm1, %v552_v3, %v560_v4  ;;  %v2612_v11 = vld [vmem:[%s3285_s1 + $0xe8] sm:$0xff]   ;;  %v2647_v0 = vld [vmem:[%s3285_s1 + $0x1b0] sm:$0xff]   ;;  %v1063_v3 = vshrl.u32 %v2130_v41, 16 }
  0x31   :  { %2388 = vmatpush3.bf16.msra.mxu1 %v2579_v10  ;;  %2361 = vmatprep.subr.bf16.mxu0 %v2580_v13  ;;  %v2615_v10 = vld [vmem:[%s3285_s1 + $0x28] sm:$0xff]  }
  0x32   :  { %2389 = vmatprep.subr.bf16.mxu1 %v2581_v12  ;;  %v2617_v12 = vld [vmem:[%s3285_s1 + $0x60] sm:$0xff]   ;;  %v2614_v13 = vld [vmem:[%s3285_s1 + $0xa8] sm:$0xff]  }
  0x34   :  { %2362 = vmatpush3.bf16.msra.mxu0 %v2582_v15  ;;  %v2616_v15 = vld [vmem:[%s3285_s1 + $0xe0] sm:$0xff]  }
  0x35   :  { %2390 = vmatpush3.bf16.msra.mxu1 %v2583_v14  ;;  %2363 = vmatprep.subr.bf16.mxu0 %v2585_v17  ;;  %v2619_v14 = vld [vmem:[%s3285_s1 + $0x20] sm:$0xff]  }
  0x36   :  { %2391 = vmatprep.subr.bf16.mxu1 %v2586_v16  ;;  %v2621_v16 = vld [vmem:[%s3285_s1 + $0x58] sm:$0xff]   ;;  %v2618_v17 = vld [vmem:[%s3285_s1 + $0xa0] sm:$0xff]  }
  0x38   :  { %2364 = vmatpush3.bf16.msra.mxu0 %v2588_v19  ;;  %v2620_v19 = vld [vmem:[%s3285_s1 + $0xd8] sm:$0xff]  }
  0x39   :  { %2392 = vmatpush3.bf16.msra.mxu1 %v2589_v18  ;;  %2365 = vmatprep.subr.bf16.mxu0 %v2590_v21  ;;  %v2623_v18 = vld [vmem:[%s3285_s1 + $0x18] sm:$0xff]  }
  0x3a   :  { %2393 = vmatprep.subr.bf16.mxu1 %v2591_v20  ;;  %v2625_v20 = vld [vmem:[%s3285_s1 + $0x50] sm:$0xff]   ;;  %v2622_v21 = vld [vmem:[%s3285_s1 + $0x98] sm:$0xff]  }
  0x3c   :  { %2366 = vmatpush3.bf16.msra.mxu0 %v2592_v23  ;;  %v2624_v23 = vld [vmem:[%s3285_s1 + $0xd0] sm:$0xff]  }
  0x3d   :  { %2394 = vmatpush3.bf16.msra.mxu1 %v2593_v22  ;;  %2367 = vmatprep.subr.bf16.mxu0 %v2594_v25  ;;  %v2627_v22 = vld [vmem:[%s3285_s1 + $0x10] sm:$0xff]  }
  0x3e   :  { %2395 = vmatprep.subr.bf16.mxu1 %v2595_v24  ;;  %v2629_v24 = vld [vmem:[%s3285_s1 + $0x48] sm:$0xff]   ;;  %v2626_v25 = vld [vmem:[%s3285_s1 + $0x90] sm:$0xff]  }
  0x40   :  { %2368 = vmatpush3.bf16.msra.mxu0 %v2596_v35  ;;  %v3044_v35 = vld [vmem:[%s3286_s0 + $0x28] sm:$0xff] }
  0x41   :  { %2396 = vmatpush3.bf16.msra.mxu1 %v2597_v26  ;;  %2409 = vmatprep.subr.bf16.mxu0 %v2604_v43  ;;  %v2631_v26 = vld [vmem:[%s3285_s1 + $0x8] sm:$0xff]   ;;  %v2128_v39 = vcombine.low %v2092_v32, %v3044_v35  ;;  %v2129_v40 = vcombine.high %v2092_v32, %v3044_v35  ;;  %v2641_v43 = vld [vmem:[%s3285_s1 + $0x1f8] sm:$0xff]   ;;  %v2254_v41 = vcombine.high %v2220_v37, %v3044_v35 }
  0x42   :  { %2437 = vmatprep.subr.bf16.mxu1 %v2605_v44 }
  0x43   :  { %712 = vmatmul.mubr.bf16.vlgmr.msra.gmra.mxu0 %v561_v7  ;;  %v1052_v44 = vshrl.u32 %v2129_v40, 16  ;;  %v1054_v45 = vshll.u32 %v2129_v40, 16  ;;  %v1040_v47 = vshrl.u32 %v2128_v39, 16  ;;  %v1042_v48 = vshll.u32 %v2128_v39, 16  ;;  %v2650_v7 = vld [vmem:[%s3285_s1 + $0x128] sm:$0xff]  }
  0x44   :  { %909 = vmatmul.mubr.bf16.vlgmr.msra.gmra.mxu1 %v772_v1  ;;  %2410 = vmatpush3.bf16.msra.mxu0 %v2606_v2  ;;  %v2148_v1 = vcombine.low %v3049_v36, %v3049_v36  ;;  %v2646_v2 = vld [vmem:[%s3285_s1 + $0x130] sm:$0xff]  }
  0x45   :  { %2438 = vmatpush3.bf16.msra.mxu1 %v2607_v55  ;;  %916 = vmatprep.mubr.bf16.mxu1 %v774_v46  ;;  %v2640_v46 = vld [vmem:[%s3285_s1 + $0x178] sm:$0xff]   ;;  %v1056_v51 = vrot.slane %v1054_v45, 1  ;;  %v1044_v53 = vrot.slane %v1042_v48, 1 }
  0x46   :  { %2439 = vmatprep.subr.bf16.mxu1 %v2609_v62  ;;  %2411 = vmatprep.subr.bf16.mxu0 %v2608_v6  ;;  %v2651_v6 = vld [vmem:[%s3285_s1 + $0x1a8] sm:$0xff]  }
  0x47   :  { %719 = vmatprep.mubr.bf16.mxu0 %v577_v57  ;;  %v1057_v55 = vor.u32 %v1056_v51, %v1052_v44  ;;  %v1066_v57 = vshrl.u32 %v2131_v42, 16  ;;  %v1045_v58 = vor.u32 %v1044_v53, %v1040_v47 }
  0x48   :  { %2412 = vmatpush3.bf16.msra.mxu0 %v2610_v9  ;;  %v2653_v9 = vld [vmem:[%s3285_s1 + $0x1e0] sm:$0xff]  }
  0x49   :  { %2440 = vmatpush3.bf16.msra.mxu1 %v2611_v5  ;;  %2413 = vmatprep.subr.bf16.mxu0 %v2612_v11  ;;  %v1062_v60 = vsel %vm170_vm0, %v1057_v55, %v1061_v52  ;;  %v1068_v62 = vor.u32 %v1066_v57, %v1061_v52  ;;  %v1050_v63 = vsel %vm170_vm0, %v1045_v58, %v1049_v54  ;;  %v2648_v5 = vld [vmem:[%s3285_s1 + $0x168] sm:$0xff]   ;;  %v2655_v11 = vld [vmem:[%s3285_s1 + $0x1a0] sm:$0xff]  }
  0x4a   :  { %2441 = vmatprep.subr.bf16.mxu1 %v2613_v8  ;;  %v1065_v8 = vor.u32 %v1063_v3, %v1049_v54 }
  0x4b   :  { %720 = vmatmul.mubr.bf16.gmra.mxu0 %v560_v4  ;;  %v2649_v4 = vld [vmem:[%s3285_s1 + $0x1e8] sm:$0xff]  }
  0x4c   :  { %917 = vmatmul.mubr.bf16.gmra.mxu1 %v771_v59  ;;  %2414 = vmatpush3.bf16.msra.mxu0 %v2614_v13  ;;  %v2645_v59 = vld [vmem:[%s3285_s1 + $0x1f0] sm:$0xff]   ;;  %v2657_v13 = vld [vmem:[%s3285_s1 + $0x1d8] sm:$0xff]  }
  0x4d   :  { %2442 = vmatpush3.bf16.msra.mxu1 %v2615_v10  ;;  %2415 = vmatprep.subr.bf16.mxu0 %v2616_v15  ;;  %v2652_v10 = vld [vmem:[%s3285_s1 + $0x160] sm:$0xff]   ;;  %v2659_v15 = vld [vmem:[%s3285_s1 + $0x198] sm:$0xff]  }
  0x4e   :  { %2443 = vmatprep.subr.bf16.mxu1 %v2617_v12  ;;  %1351 = vmatprep.mubr.bf16.mxu1 %v2129_v40  ;;  %v2654_v12 = vld [vmem:[%s3285_s1 + $0x120] sm:$0xff]   ;;  %v2253_v40 = vcombine.low %v2220_v37, %v3044_v35 }
  0x4f   :  { %1201 = vmatprep.mubr.bf16.mxu0 %v1062_v60 }
  0x50   :  { %2416 = vmatpush3.bf16.msra.mxu0 %v2618_v17  ;;  %v2663_v17 = vld [vmem:[%s3285_s1 + $0x1d0] sm:$0xff]   ;;  %v1634_v34 = vrot.slane %v2253_v40, 3 }
  0x51   :  { %2444 = vmatpush3.bf16.msra.mxu1 %v2619_v14  ;;  %2417 = vmatprep.subr.bf16.mxu0 %v2620_v19  ;;  %v2656_v14 = vld [vmem:[%s3285_s1 + $0x158] sm:$0xff]   ;;  %v2665_v19 = vld [vmem:[%s3285_s1 + $0x190] sm:$0xff]  }
  0x52   :  { %2445 = vmatprep.subr.bf16.mxu1 %v2621_v16  ;;  %v2658_v16 = vld [vmem:[%s3285_s1 + $0x118] sm:$0xff]  }
  0x54   :  { %2418 = vmatpush3.bf16.msra.mxu0 %v2622_v21  ;;  %v2667_v21 = vld [vmem:[%s3285_s1 + $0x1c8] sm:$0xff]  }
  0x55   :  { %2446 = vmatpush3.bf16.msra.mxu1 %v2623_v18  ;;  %2419 = vmatprep.subr.bf16.mxu0 %v2624_v23  ;;  %v2662_v18 = vld [vmem:[%s3285_s1 + $0x150] sm:$0xff]   ;;  %v2669_v23 = vld [vmem:[%s3285_s1 + $0x188] sm:$0xff]  }
  0x56   :  { %2447 = vmatprep.subr.bf16.mxu1 %v2625_v20  ;;  %v2664_v20 = vld [vmem:[%s3285_s1 + $0x110] sm:$0xff]  }
  0x58   :  { %2420 = vmatpush3.bf16.msra.mxu0 %v2626_v25  ;;  %v2671_v25 = vld [vmem:[%s3285_s1 + $0x1c0] sm:$0xff]  }
  0x59   :  { %2448 = vmatpush3.bf16.msra.mxu1 %v2627_v22  ;;  %2421 = vmatprep.subr.bf16.mxu0 %v2628_v27  ;;  %v2666_v22 = vld [vmem:[%s3285_s1 + $0x148] sm:$0xff]   ;;  %v2673_v27 = vld [vmem:[%s3285_s1 + $0x180] sm:$0xff]  }
  0x5a   :  { %2449 = vmatprep.subr.bf16.mxu1 %v2629_v24  ;;  %v2668_v24 = vld [vmem:[%s3285_s1 + $0x108] sm:$0xff]  }
  0x5c   :  { %2422 = vmatpush3.bf16.msra.mxu0 %v2630_v28  ;;  %v2166_v28 = vld [vmem:[%s3286_s0 + $0x20] sm:$0xcc] }
  0x5d   :  { %2450 = vmatpush3.bf16.msra.mxu1 %v2631_v26  ;;  %2423 = vmatprep.subr.bf16.mxu0 %v2632_v30  ;;  %v2670_v26 = vld [vmem:[%s3285_s1 + $0x140] sm:$0xff]   ;;  %v2200_v30 = vcombine.low %v2166_v28, %v3044_v35 }
  0x5e   :  { %2451 = vmatprep.subr.bf16.mxu1 %v2633_v29  ;;  %v2167_v29 = vld [vmem:[%s3286_s0 + $0x38] sm:$0x77] }
  0x5f   :  { %v2203_v32 = vcombine.high %v3049_v36, %v2167_v29  ;;  %v1412_v48 = vshrl.u32 %v2200_v30, 16  ;;  %v1415_v53 = vshll.u32 %v2200_v30, 16 }
  0x60   :  { %2424 = vmatpush3.bf16.msra.mxu0 %v2634_v38  ;;  %v2672_v38 = vld [vmem:[%s3285_s1 + $0x100] sm:$0xff]  }
  0x61   :  { %2452 = vmatpush3.bf16.msra.mxu1 %v2635_v31  ;;  %2465 = vmatprep.subr.bf16.mxu0 %v2640_v46  ;;  %v2201_v31 = vcombine.high %v2166_v28, %v3044_v35  ;;  %v1437_v44 = vshrl.u32 %v2203_v32, 16  ;;  %v1440_v45 = vshll.u32 %v2203_v32, 16  ;;  %v1637_v46 = vrot.slane %v2254_v41, 3 }
  0x62   :  { %2493 = vmatprep.subr.bf16.mxu1 %v2641_v43  ;;  %v1638_v47 = vrot.slane %v2203_v32, 3  ;;  %v1414_v52 = vrot.slane %v1412_v48, 2  ;;  %v1417_v58 = vrot.slane %v1415_v53, 3 }
  0x63   :  { %1202 = vmatmul.mubr.bf16.vlgmr.msra.gmra.mxu0 %v1050_v63  ;;  %v1429_v42 = vshrl.u32 %v2201_v31, 16  ;;  %v1432_v43 = vshll.u32 %v2201_v31, 16  ;;  %v1442_v51 = vrot.slane %v1440_v45, 3 }
  0x64   :  { %1352 = vmatmul.mubr.bf16.vlgmr.msra.gmra.mxu1 %v2128_v39  ;;  %2466 = vmatpush3.bf16.msra.mxu0 %v2642_v56  ;;  %v2202_v39 = vcombine.low %v3049_v36, %v2167_v29  ;;  %v1639_v36 = vsel %vm769_vm2, %v1637_v46, %v1638_v47  ;;  %v1418_v63 = vor.u32 %v1417_v58, %v1414_v52 }
  0x65   :  { %2494 = vmatpush3.bf16.msra.mxu1 %v2643_v49  ;;  %1359 = vmatprep.mubr.bf16.mxu1 %v2149_v50  ;;  %v1431_v33 = vrot.slane %v1429_v42, 2  ;;  %v1434_v49 = vrot.slane %v1432_v43, 3  ;;  %v1439_v50 = vrot.slane %v1437_v44, 2 }
  0x66   :  { %2495 = vmatprep.subr.bf16.mxu1 %v2645_v59  ;;  %2467 = vmatprep.subr.bf16.mxu0 %v2644_v61  ;;  %v1420_v54 = vshrl.u32 %v2202_v39, 16  ;;  %v1423_v56 = vshll.u32 %v2202_v39, 16  ;;  %v1635_v57 = vrot.slane %v2202_v39, 3 }
  0x67   :  { %1209 = vmatprep.mubr.bf16.mxu0 %v1068_v62  ;;  %v1435_v35 = vor.u32 %v1434_v49, %v1431_v33  ;;  %v1443_v55 = vor.u32 %v1442_v51, %v1439_v50 }
  0x68   :  { %2468 = vmatpush3.bf16.msra.mxu0 %v2646_v2  ;;  %v1422_v59 = vrot.slane %v1420_v54, 2  ;;  %v1425_v61 = vrot.slane %v1423_v56, 3  ;;  %v1636_v62 = vsel %vm769_vm2, %v1634_v34, %v1635_v57 }
  0x69   :  { %2496 = vmatpush3.bf16.msra.mxu1 %v2647_v0  ;;  %2469 = vmatprep.subr.bf16.mxu0 %v2648_v5  ;;  %v1444_v60 = vsel %vm544_vm1, %v1435_v35, %v1443_v55 }
  0x6a   :  { %2497 = vmatprep.subr.bf16.mxu1 %v2649_v4  ;;  %v1426_v0 = vor.u32 %v1425_v61, %v1422_v59 }
  0x6b   :  { %1210 = vmatmul.mubr.bf16.gmra.mxu0 %v1065_v8 }
  0x6c   :  { %1360 = vmatmul.mubr.bf16.gmra.mxu1 %v2148_v1  ;;  %2470 = vmatpush3.bf16.msra.mxu0 %v2650_v7  ;;  %v1427_v1 = vsel %vm544_vm1, %v1418_v63, %v1426_v0 }
  0x6d   :  { %2498 = vmatpush3.bf16.msra.mxu1 %v2651_v6  ;;  %2471 = vmatprep.subr.bf16.mxu0 %v2652_v10 }
  0x6e   :  { %2499 = vmatprep.subr.bf16.mxu1 %v2653_v9  ;;  %1772 = vmatprep.mubr.bf16.mxu1 %v1639_v36 }
  0x6f   :  { %1577 = vmatprep.mubr.bf16.mxu0 %v1444_v60 }
  0x70   :  { %2472 = vmatpush3.bf16.msra.mxu0 %v2654_v12 }
  0x71   :  { %2500 = vmatpush3.bf16.msra.mxu1 %v2655_v11  ;;  %2473 = vmatprep.subr.bf16.mxu0 %v2656_v14 }
  0x72   :  { %2501 = vmatprep.subr.bf16.mxu1 %v2657_v13 }
  0x74   :  { %2474 = vmatpush3.bf16.msra.mxu0 %v2658_v16 }
  0x75   :  { %2502 = vmatpush3.bf16.msra.mxu1 %v2659_v15  ;;  %2475 = vmatprep.subr.bf16.mxu0 %v2662_v18  ;;  %v18_v15 = vlaneseq }
  0x76   :  { %2503 = vmatprep.subr.bf16.mxu1 %v2663_v17 }
  0x78   :  { %2476 = vmatpush3.bf16.msra.mxu0 %v2664_v20 }
  0x79   :  { %2504 = vmatpush3.bf16.msra.mxu1 %v2665_v19  ;;  %2477 = vmatprep.subr.bf16.mxu0 %v2666_v22 }
  0x7a   :  { %2505 = vmatprep.subr.bf16.mxu1 %v2667_v21 }
  0x7c   :  { %2478 = vmatpush3.bf16.msra.mxu0 %v2668_v24 }
  0x7d   :  { %2506 = vmatpush3.bf16.msra.mxu1 %v2669_v23  ;;  %2479 = vmatprep.subr.bf16.mxu0 %v2670_v26  ;;  %v3184_v23 = vshrl.u32 %v18_v15, 7 }
  0x7e   :  { %2507 = vmatprep.subr.bf16.mxu1 %v2671_v25 }
  0x7f   :  { %v20_v26 = vadd.s32 8, %v3184_v23  ;;  %v3188_v28 = vadd.s32 16, %v3184_v23  ;;  %v3193_v30 = vmul.u32.u64.low 3435973837, %v3184_v23  ;;  %v3194_v31 = vmul.u32.u64.high 3435973837, %v3184_v23, %v3193_v30 }
  0x80   :  { %2480 = vmatpush3.bf16.msra.mxu0 %v2672_v38 }
  0x81   :  { %2508 = vmatpush3.bf16.msra.mxu1 %v2673_v27  ;;  %v3196_v37 = vmul.u32.u64.low 3435973837, %v20_v26  ;;  %v3197_v38 = vmul.u32.u64.high 3435973837, %v20_v26, %v3196_v37  ;;  %v3200_v39 = vmul.u32.u64.low 3435973837, %v3188_v28  ;;  %v3201_v40 = vmul.u32.u64.high 3435973837, %v3188_v28, %v3200_v39 }
  0x82   :  { %v28_v41 = vshrl.u32 %v3194_v31, 2  ;;  %vm75_vm15 = vcmp.lt.s32.totalorder %v3188_v28, 20 }
  0x83   :  { %1578 = vmatmul.mubr.bf16.vlgmr.msra.gmra.mxu0 %v1427_v1  ;;  %v39_v42 = vshrl.u32 %v3197_v38, 2  ;;  %v50_v43 = vshrl.u32 %v3201_v40, 2 }
  0x84   :  { %1773 = vmatmul.mubr.bf16.vlgmr.msra.gmra.mxu1 %v1636_v62  ;;  %1585 = vmatprep.mubr.bf16.mxu0 %v1443_v55  ;;  %v29_v44 = vmul.u32 5, %v28_v41 }
  0x85   :  { %1780 = vmatprep.mubr.bf16.mxu1 %v1638_v47  ;;  %v40_v45 = vmul.u32 5, %v39_v42  ;;  %v51_v34 = vmul.u32 5, %v50_v43 }
  0x86   :  { %v30_v46 = vsub.s32 %v3184_v23, %v29_v44 }
  0x87   :  { %v41_v47 = vsub.s32 %v20_v26, %v40_v45  ;;  %v52_v48 = vsub.s32 %v3188_v28, %v51_v34 }
  0x88   :  { %vm55_vm3 = vcmp.ne.s32.totalorder %v30_v46, 0  ;;  %vm58_vm4 = vcmp.lt.s32.totalorder %v30_v46, 0  ;;  %v64_v49 = vadd.s32 5, %v30_v46 }
  0x89   :  { %vm56_vm5 = vcmp.ne.s32.totalorder %v41_v47, 0  ;;  %vm59_vm6 = vcmp.lt.s32.totalorder %v41_v47, 0  ;;  %vm3208_vm7 = vmand %vm58_vm4, %vm55_vm3  ;;  %vm57_vm8 = vcmp.ne.s32.totalorder %v52_v48, 0  ;;  %vm60_vm9 = vcmp.lt.s32.totalorder %v52_v48, 0 }
  0x8a   :  { %v65_v54 = vadd.s32 5, %v41_v47  ;;  %vm3212_vm10 = vmand %vm59_vm6, %vm56_vm5  ;;  %v66_v55 = vadd.s32 5, %v52_v48 }
  0x8b   :  { %1586 = vmatmul.mubr.bf16.gmra.mxu0 %v1426_v0  ;;  %vm3218_vm11 = vmand %vm60_vm9, %vm57_vm8 }
  0x8c   :  { %1781 = vmatmul.mubr.bf16.gmra.mxu1 %v1635_v57  ;;  %v67_v57 = vsel %vm3208_vm7, %v64_v49, %v30_v46  ;;  %v68_v63 = vsel %vm3212_vm10, %v65_v54, %v41_v47 }
  0x8d   :  { %vm70_vm12 = vcmp.lt.s32.totalorder %v67_v57, 4  ;;  %vm71_vm13 = vcmp.lt.s32.totalorder %v68_v63, 4 }
  0xe3   :  { %v2313_v7 = vpop.f32.mrf.mxu0 }
  0xe4   :  { %v2341_v2 = vpop.f32.mrf.mxu1 }
  0xe5   :  { %v2314_v9 = vpop.f32.mrf.mxu0 }
  0xe6   :  { %v2342_v3 = vpop.f32.mrf.mxu1  ;;  %v2315_v10 = vadd.f32 %v2314_v9, %v2313_v7 }
  0xe7   :  { %v2343_v4 = vadd.f32 %v2342_v3, %v2341_v2  ;;  %v2316_v12 = vpop.f32.mrf.mxu0  ;;  %v69_v2 = vsel %vm3218_vm11, %v66_v55, %v52_v48 }
  0xe8   :  { %v2344_v5 = vpop.f32.mrf.mxu1  ;;  %vm72_vm14 = vcmp.lt.s32.totalorder %v69_v2, 4 }
  0xe9   :  { %v486_v13 = vadd.f32 %v2343_v4, %v2315_v10  ;;  %v2317_v16 = vpop.f32.mrf.mxu0  ;;  %vm78_vm0 = vmand %vm72_vm14, %vm75_vm15 }
  0xea   :  { %v2345_v6 = vpop.f32.mrf.mxu1  ;;  %v2318_v18 = vadd.f32 %v2317_v16, %v2316_v12 }
  0xeb   :  { %v2346_v8 = vadd.f32 %v2345_v6, %v2344_v5  ;;  %v2319_v20 = vpop.f32.mrf.mxu0 }
  0xec   :  { %v2347_v11 = vpop.f32.mrf.mxu1 }
  0xed   :  { %v3182_v21 = vadd.f32 %v2346_v8, %v2318_v18  ;;  %v2320_v24 = vpop.f32.mrf.mxu0  ;;  %v2682_v8 = vmov 0.0  }
  0xee   :  { %v2348_v14 = vpop.f32.mrf.mxu1  ;;  %v2321_v25 = vadd.f32 %v2320_v24, %v2319_v20  ;;  %v3228_v9 = vsel %vm70_vm12, 1.0, %v2682_v8  ;;  %v3241_v24 = vsel %vm78_vm0, 1.0, %v2682_v8 }
  0xef   :  { %v2349_v17 = vadd.f32 %v2348_v14, %v2347_v11  ;;  %v2322_v27 = vpop.f32.mrf.mxu0 }
  0xf0   :  { %v2350_v19 = vpop.f32.mrf.mxu1 }
  0xf1   :  { %v3190_v29 = vadd.f32 %v2349_v17, %v2321_v25  ;;  %v2323_v32 = vpop.f32.mrf.mxu0 }
  0xf2   :  { %v2351_v22 = vpop.f32.mrf.mxu1 }
 0x103   :  { %v2369_v52 = vpop.f32.mrf.mxu0 }
 0x104   :  { %v2397_v33 = vpop.f32.mrf.mxu1 }
 0x105   :  { %v2370_v56 = vpop.f32.mrf.mxu0 }
 0x106   :  { %v2398_v50 = vpop.f32.mrf.mxu1  ;;  %v2371_v60 = vadd.f32 %v2370_v56, %v2369_v52 }
 0x107   :  { %v2399_v36 = vadd.f32 %v2398_v50, %v2397_v33  ;;  %v2372_v62 = vpop.f32.mrf.mxu0 }
 0x108   :  { %v2400_v53 = vpop.f32.mrf.mxu1  ;;  %v727_v1 = vadd.f32 %v2371_v60, %v486_v13  ;;  %v3232_v13 = vsel %vm71_vm13, 1.0, %v2682_v8 }
 0x109   :  { %v2373_v3 = vpop.f32.mrf.mxu0 }
 0x10a   :  { %v2401_v58 = vpop.f32.mrf.mxu1  ;;  %v3226_v5 = vadd.f32 %v2399_v36, %v727_v1  ;;  %v2374_v6 = vadd.f32 %v2373_v3, %v2372_v62 }
 0x10b   :  { %v2402_v61 = vadd.f32 %v2401_v58, %v2400_v53  ;;  %v2375_v10 = vpop.f32.mrf.mxu0 }
 0x10c   :  { %v2403_v0 = vpop.f32.mrf.mxu1  ;;  %v728_v12 = vadd.f32 %v2374_v6, %v3182_v21  ;;  %v930_v16 = vmul.f32 %v3228_v9, %v3226_v5 }
 0x10d   :  { %v2376_v14 = vpop.f32.mrf.mxu0 }
 0x10e   :  { %v2404_v4 = vpop.f32.mrf.mxu1  ;;  %v3236_v17 = vadd.f32 %v2402_v61, %v728_v12  ;;  %v2377_v18 = vadd.f32 %v2376_v14, %v2375_v10  ;;  %v942_v25 = vmul.f32 %v930_v16, %v3226_v5 }
 0x10f   :  { %v2405_v7 = vadd.f32 %v2404_v4, %v2403_v0  ;;  %v2378_v19 = vpop.f32.mrf.mxu0 }
 0x110   :  { %v2406_v11 = vpop.f32.mrf.mxu1  ;;  %v931_v20 = vmul.f32 %v3232_v13, %v3236_v17  ;;  %v729_v22 = vadd.f32 %v2377_v18, %v3190_v29 }
 0x111   :  { %v2379_v21 = vpop.f32.mrf.mxu0 }
 0x112   :  { %v2407_v15 = vpop.f32.mrf.mxu1  ;;  %v933_v26 = vadd.f32 %v931_v20, %v930_v16  ;;  %v943_v27 = vmul.f32 %v931_v20, %v3236_v17  ;;  %v3245_v28 = vadd.f32 %v2405_v7, %v729_v22 }
 0x114   :  { %v945_v30 = vadd.f32 %v943_v27, %v942_v25  ;;  %v932_v31 = vmul.f32 %v3241_v24, %v3245_v28 }
 0x116   :  { %v934_v32 = vadd.f32 %v933_v26, %v932_v31  ;;  %v944_v37 = vmul.f32 %v932_v31, %v3245_v28 }
 0x118   :  { %v946_v38 = vadd.f32 %v945_v30, %v944_v37  ;;  %v935_v19 = vrot.slane %v934_v32, 4 }
 0x11a   :  { %v947_v25 = vrot.slane %v946_v38, 4 }
 0x123   :  { %v2425_v41 = vpop.f32.mrf.mxu0 }
 0x124   :  { %v2453_v39 = vpop.f32.mrf.mxu1 }
 0x125   :  { %v2426_v43 = vpop.f32.mrf.mxu0 }
 0x126   :  { %v2454_v29 = vpop.f32.mrf.mxu1  ;;  %v2427_v53 = vadd.f32 %v2426_v43, %v2425_v41 }
 0x127   :  { %v2428_v45 = vpop.f32.mrf.mxu0  ;;  %v2455_v54 = vadd.f32 %v2454_v29, %v2453_v39  ;;  %v936_v29 = vadd.f32 %v935_v19, %v934_v32 }
 0x128   :  { %v2456_v40 = vpop.f32.mrf.mxu1 }
 0x129   :  { %v2429_v46 = vpop.f32.mrf.mxu0  ;;  %v1354_v58 = vadd.f32 %v2455_v54, %v2427_v53 }
 0x12a   :  { %v2457_v42 = vpop.f32.mrf.mxu1  ;;  %v2430_v59 = vadd.f32 %v2429_v46, %v2428_v45 }
 0x12b   :  { %v2431_v48 = vpop.f32.mrf.mxu0  ;;  %v2458_v60 = vadd.f32 %v2457_v42, %v2456_v40  ;;  %v948_v42 = vadd.f32 %v947_v25, %v946_v38 }
 0x12c   :  { %v2459_v44 = vpop.f32.mrf.mxu1 }
 0x12d   :  { %v2432_v49 = vpop.f32.mrf.mxu0  ;;  %v1357_v4 = vadd.f32 %v2458_v60, %v2430_v59 }
 0x12e   :  { %v2460_v34 = vpop.f32.mrf.mxu1  ;;  %v2433_v6 = vadd.f32 %v2432_v49, %v2431_v48  ;;  %v949_v48 = vrot.slane %v948_v42, 2 }
 0x12f   :  { %v2434_v50 = vpop.f32.mrf.mxu0  ;;  %v2461_v1 = vadd.f32 %v2460_v34, %v2459_v44  ;;  %v937_v34 = vrot.slane %v936_v29, 2 }
 0x130   :  { %v2462_v47 = vpop.f32.mrf.mxu1  ;;  %v950_v32 = vadd.f32 %v949_v48, %v948_v42 }
 0x131   :  { %v2435_v51 = vpop.f32.mrf.mxu0  ;;  %v1362_v20 = vadd.f32 %v2461_v1, %v2433_v6  ;;  %v938_v49 = vadd.f32 %v937_v34, %v936_v29  ;;  %v1825_v6 = vld [vmem:[%s3287_s2] sm:$0x1] }
 0x132   :  { %v2463_v33 = vpop.f32.mrf.mxu1 }
 0x133   :  { %v939_v53 = vrot.slane %v938_v49, 1 }
 0x143   :  { %v2481_v35 = vpop.f32.mrf.mxu0 }
 0x144   :  { %v2509_v36 = vpop.f32.mrf.mxu1 }
 0x145   :  { %v2482_v56 = vpop.f32.mrf.mxu0 }
 0x146   :  { %v2510_v52 = vpop.f32.mrf.mxu1  ;;  %v2483_v61 = vadd.f32 %v2482_v56, %v2481_v35  ;;  %v951_v35 = vrot.slane %v950_v32, 1 }
 0x147   :  { %v2484_v62 = vpop.f32.mrf.mxu0  ;;  %v2511_v7 = vadd.f32 %v2510_v52, %v2509_v36 }
 0x148   :  { %v2512_v55 = vpop.f32.mrf.mxu1  ;;  %v1593_v0 = vadd.f32 %v2483_v61, %v1354_v58  ;;  %v952_v59 = vadd.f32 %v951_v35, %v950_v32 }
 0x149   :  { %v2485_v2 = vpop.f32.mrf.mxu0 }
 0x14a   :  { %v2513_v57 = vpop.f32.mrf.mxu1  ;;  %v2486_v8 = vadd.f32 %v2485_v2, %v2484_v62  ;;  %v3250_v12 = vadd.f32 %v2511_v7, %v1593_v0  ;;  %v1838_v7 = vsub.s32 0, %v3184_v23 }
 0x14b   :  { %v2487_v10 = vpop.f32.mrf.mxu0  ;;  %v2514_v15 = vadd.f32 %v2513_v57, %v2512_v55 }
 0x14c   :  { %v2515_v63 = vpop.f32.mrf.mxu1  ;;  %v1594_v14 = vadd.f32 %v2486_v8, %v1357_v4  ;;  %v1795_v27 = vmul.f32 %v3228_v9, %v3250_v12 }
 0x14d   :  { %v2488_v16 = vpop.f32.mrf.mxu0 }
 0x14e   :  { %v2516_v3 = vpop.f32.mrf.mxu1  ;;  %v3252_v22 = vadd.f32 %v2514_v15, %v1594_v14  ;;  %v2489_v21 = vadd.f32 %v2488_v16, %v2487_v10  ;;  %v1807_v43 = vmul.f32 %v1795_v27, %v3250_v12 }
 0x14f   :  { %v2490_v26 = vpop.f32.mrf.mxu0  ;;  %v2517_v37 = vadd.f32 %v2516_v3, %v2515_v63 }
 0x150   :  { %v2518_v11 = vpop.f32.mrf.mxu1  ;;  %v1796_v30 = vmul.f32 %v3232_v13, %v3252_v22  ;;  %v1595_v31 = vadd.f32 %v2489_v21, %v1362_v20 }
 0x151   :  { %v2491_v39 = vpop.f32.mrf.mxu0  ;;  %v1829_v11 = vld [vmem:[%s3288_s3] sm:$0x1] }
 0x152   :  { %v2519_v18 = vpop.f32.mrf.mxu1  ;;  %v1808_v40 = vmul.f32 %v1796_v30, %v3252_v22  ;;  %v1790_v41 = vadd.f32 %v2517_v37, %v1595_v31  ;;  %v1798_v44 = vadd.f32 %v1796_v30, %v1795_v27 }
 0x154   :  { %v1797_v45 = vmul.f32 %v3241_v24, %v1790_v41  ;;  %v1810_v46 = vadd.f32 %v1808_v40, %v1807_v43  ;;  %v940_v24 = vadd.f32 %v939_v53, %v938_v49 }
 0x156   :  { %v1799_v47 = vadd.f32 %v1798_v44, %v1797_v45  ;;  %v1809_v9 = vmul.f32 %v1797_v45, %v1790_v41 }
 0x158   :  { %v1800_v33 = vrot.slane %v1799_v47, 4  ;;  %v1811_v13 = vadd.f32 %v1810_v46, %v1809_v9 }
 0x15a   :  { %v1801_v50 = vadd.f32 %v1800_v33, %v1799_v47  ;;  %v1812_v51 = vrot.slane %v1811_v13, 4 }
 0x15c   :  { %v1802_v36 = vrot.slane %v1801_v50, 2  ;;  %v1813_v52 = vadd.f32 %v1812_v51, %v1811_v13 }
 0x15e   :  { %v1803_v38 = vadd.f32 %v1802_v36, %v1801_v50  ;;  %v1814_v54 = vrot.slane %v1813_v52, 2 }
 0x160   :  { %v1804_v55 = vrot.slane %v1803_v38, 1  ;;  %v1815_v56 = vadd.f32 %v1814_v54, %v1813_v52 }
 0x162   :  { %v1805_v57 = vadd.f32 %v1804_v55, %v1803_v38  ;;  %v1816_v58 = vrot.slane %v1815_v56, 1 }
 0x164   :  { %v1806_v60 = vadd.f32 %v1805_v57, %v940_v24  ;;  %v1817_v61 = vadd.f32 %v1816_v58, %v1815_v56 }
 0x166   :  { %v1818_v62 = vadd.f32 %v1817_v61, %v952_v59  ;;  %v1820_v63 = vmul.f32 0.03125, %v1806_v60 }
 0x168   :  { %v1821_v0 = vmul.f32 0.03125, %v1818_v62  ;;  %v1822_v1 = vmul.f32 %v1820_v63, %v1820_v63 }
 0x16a   :  { %v1823_v2 = vsub.f32 %v1821_v0, %v1822_v1 }
 0x16c   :  { %v1824_v3 = vmax.f32 %v1823_v2, 0.0 }
 0x16e   :  { %v1826_v4 = vadd.f32 1e-05, %v1824_v3 }
 0x170   :  { %2680 = vrsqrt.f32 %v1826_v4 }
 0x17d   :  { %v2681_v8 = vpop.eup %2680 }
 0x17e   :  { %v1828_v10 = vmul.f32 %v2681_v8, %v1825_v6 }
 0x180   :  { %v1830_v14 = vmul.f32 %v1828_v10, %v1820_v63  ;;  %v1839_v15 = vrot.slane %v1828_v10, %v1838_v7 }
 0x182   :  { %v1831_v16 = vsub.f32 %v1829_v11, %v1830_v14  ;;  %v1841_v18 = vmul.f32 %v1839_v15, %v3226_v5  ;;  %v1842_v19 = vmul.f32 %v1839_v15, %v3236_v17  ;;  %v1843_v20 = vmul.f32 %v1839_v15, %v3245_v28 }
 0x183   :  { %v1881_v25 = vmul.f32 %v1839_v15, %v3250_v12  ;;  %v1882_v23 = vmul.f32 %v1839_v15, %v3252_v22  ;;  %v1883_v26 = vmul.f32 %v1839_v15, %v1790_v41 }
 0x184   :  { %v1848_v21 = vrot.slane %v1831_v16, %v1838_v7 }
 0x186   :  { %v1850_v27 = vadd.f32 %v1848_v21, %v1841_v18  ;;  %v1851_v30 = vadd.f32 %v1848_v21, %v1842_v19  ;;  %v1852_v31 = vadd.f32 %v1848_v21, %v1843_v20  ;;  %v1884_v37 = vadd.f32 %v1881_v25, %v1848_v21 }
 0x187   :  { %v1885_v39 = vadd.f32 %v1882_v23, %v1848_v21  ;;  %v1886_v29 = vadd.f32 %v1883_v26, %v1848_v21 }
 0x188   :  { %vm1853_vm1 = vcmp.ge.f32.partialorder %v1850_v27, 0.0  ;;  %vm1854_vm2 = vcmp.ge.f32.partialorder %v1851_v30, 0.0  ;;  %vm1855_vm3 = vcmp.ge.f32.partialorder %v1852_v31, 0.0  ;;  %v1856_v5 = vmul.f32 0.2, %v1850_v27 }
 0x189   :  { %v1857_v40 = vmul.f32 0.2, %v1851_v30  ;;  %v1858_v17 = vmul.f32 0.2, %v1852_v31  ;;  %vm1887_vm4 = vcmp.ge.f32.partialorder %v1884_v37, 0.0  ;;  %vm1888_vm5 = vcmp.ge.f32.partialorder %v1885_v39, 0.0 }
 0x18a   :  { %v1859_v28 = vsel %vm1853_vm1, %v1850_v27, %v1856_v5  ;;  %vm1889_vm6 = vcmp.ge.f32.partialorder %v1886_v29, 0.0  ;;  %v1890_v12 = vmul.f32 0.2, %v1884_v37  ;;  %v1891_v42 = vmul.f32 0.2, %v1885_v39 }
 0x18b   :  { %v1860_v22 = vsel %vm1854_vm2, %v1851_v30, %v1857_v40  ;;  %v1861_v41 = vsel %vm1855_vm3, %v1852_v31, %v1858_v17  ;;  %v1892_v43 = vmul.f32 0.2, %v1886_v29 }
 0x18c   :  { %v2282_v44 = vpack.c.bf16 %v1861_v41, %v1861_v41  ;;  %v2289_v45 = vpack.c.bf16 %v1860_v22, %v1859_v28  ;;  %v1893_v34 = vsel %vm1887_vm4, %v1884_v37, %v1890_v12  ;;  %v1894_v46 = vsel %vm1888_vm5, %v1885_v39, %v1891_v42 }
 0x18d   :  { %v1895_v47 = vsel %vm1889_vm6, %v1886_v29, %v1892_v43  ;;  %v2283_v9 = vpack.c.bf16 %v1893_v34, %v1893_v34 }
 0x18e   :  { %2290 = vst [vmem:[%s3289_s4] sm:$0xff] %v2289_v45   ;;  %1877 = vst [vmem:[%s3289_s4 + $0x8] sm:$0xf] %v2282_v44  ;;  %v2294_v48 = vpack.c.bf16 %v1895_v47, %v1894_v46 }
 0x18f   :  { %2277 = vst [vmem:[%s3289_s4 + $0xc] sm:$0xf] %v2283_v9 }
 0x190   :  { %2296 = vst [vmem:[%s3289_s4 + $0x10] sm:$0xff] %v2294_v48  }

// kernel: encoder_svhn_forward.7
= control target key start
LH: loop header
LB: loop body
LE: loop exit
PB: predicated region body
PF: predicated region fallthrough
CT: control target
= control target key end

     0   :  { %v287_v28 = vlaneseq  ;;  %v1959_v36 = vmov 1966171168   ;;  %s2401_s0 = inlined_call_operand.vmem [shape: bf16[2,2048], index: 0, kind: input, shape index: {}]   ;;  %s2402_s1 = inlined_call_operand.vmem [shape: bf16[2048,128], index: 1, kind: input, shape index: {}]   ;;  %s2403_s2 = inlined_call_operand.vmem [shape: f32[1,128], index: 2, kind: input, shape index: {}]   ;;  %s2404_s3 = inlined_call_operand.hbm [shape: f32[2,128], index: 3, kind: output, shape index: {}]  }
   0x1   :  { %v1807_v0 = vld [vmem:[%s2402_s1 + $0x78] sm:$0xff]   ;;  %v1811_v4 = vld [vmem:[%s2402_s1 + $0x70] sm:$0xff]   ;;  %v1815_v8 = vld [vmem:[%s2402_s1 + $0x68] sm:$0xff]   ;;  %v285_v37 = vunpack.c.l.s4 %v1959_v36 }
   0x2   :  { %v1808_v1 = vld [vmem:[%s2402_s1 + $0xf8] sm:$0xff]   ;;  %1629 = vmatprep.subr.bf16.mxu0 %v1807_v0  ;;  %v1812_v5 = vld [vmem:[%s2402_s1 + $0xf0] sm:$0xff]   ;;  %v1816_v9 = vld [vmem:[%s2402_s1 + $0xe8] sm:$0xff]   ;;  %v288_v33 = vshrl.u32 %v287_v28, 7 }
   0x3   :  { %v1809_v2 = vld [vmem:[%s2402_s1 + $0x38] sm:$0xff]   ;;  %1651 = vmatprep.subr.bf16.mxu1 %v1808_v1  ;;  %v1813_v6 = vld [vmem:[%s2402_s1 + $0x30] sm:$0xff]   ;;  %v1817_v10 = vld [vmem:[%s2402_s1 + $0x28] sm:$0xff]   ;;  %v286_v40 = vunpack.c.0.s8 %v285_v37 }
   0x4   :  { %v1810_v3 = vld [vmem:[%s2402_s1 + $0xb8] sm:$0xff]   ;;  %1630 = vmatpush3.bf16.msra.mxu0 %v1809_v2  ;;  %v1814_v7 = vld [vmem:[%s2402_s1 + $0xb0] sm:$0xff]   ;;  %v1818_v11 = vld [vmem:[%s2402_s1 + $0xa8] sm:$0xff]  }
   0x5   :  { %1652 = vmatpush3.bf16.msra.mxu1 %v1810_v3  ;;  %1631 = vmatprep.subr.bf16.mxu0 %v1811_v4  ;;  %v1819_v12 = vld [vmem:[%s2402_s1 + $0x60] sm:$0xff]   ;;  %v1823_v16 = vld [vmem:[%s2402_s1 + $0x58] sm:$0xff]   ;;  %v1827_v20 = vld [vmem:[%s2402_s1 + $0x50] sm:$0xff]   ;;  %v2086_v41 = vsub.s32 %v286_v40, %v288_v33 }
   0x6   :  { %1653 = vmatprep.subr.bf16.mxu1 %v1812_v5  ;;  %v1820_v13 = vld [vmem:[%s2402_s1 + $0xe0] sm:$0xff]   ;;  %v1824_v17 = vld [vmem:[%s2402_s1 + $0xd8] sm:$0xff]   ;;  %v1828_v21 = vld [vmem:[%s2402_s1 + $0xd0] sm:$0xff]  }
   0x7   :  { %v1821_v14 = vld [vmem:[%s2402_s1 + $0x20] sm:$0xff]   ;;  %v1825_v18 = vld [vmem:[%s2402_s1 + $0x18] sm:$0xff]   ;;  %v1829_v22 = vld [vmem:[%s2402_s1 + $0x10] sm:$0xff]  }
   0x8   :  { %1632 = vmatpush3.bf16.msra.mxu0 %v1813_v6  ;;  %v1822_v15 = vld [vmem:[%s2402_s1 + $0xa0] sm:$0xff]   ;;  %v1826_v19 = vld [vmem:[%s2402_s1 + $0x98] sm:$0xff]   ;;  %v1830_v23 = vld [vmem:[%s2402_s1 + $0x90] sm:$0xff]  }
   0x9   :  { %1654 = vmatpush3.bf16.msra.mxu1 %v1814_v7  ;;  %1633 = vmatprep.subr.bf16.mxu0 %v1815_v8  ;;  %v1831_v24 = vld [vmem:[%s2402_s1 + $0x48] sm:$0xff]   ;;  %v1835_v29 = vld [vmem:[%s2402_s1 + $0x40] sm:$0xff]   ;;  %v1840_v35 = vld [vmem:[%s2402_s1 + $0x178] sm:$0xff]  }
   0xa   :  { %1655 = vmatprep.subr.bf16.mxu1 %v1816_v9  ;;  %v1832_v25 = vld [vmem:[%s2402_s1 + $0xc8] sm:$0xff]   ;;  %v1836_v30 = vld [vmem:[%s2402_s1 + $0xc0] sm:$0xff]   ;;  %v1841_v38 = vld [vmem:[%s2402_s1 + $0x1f8] sm:$0xff]  }
   0xb   :  { %v1833_v26 = vld [vmem:[%s2402_s1 + $0x8] sm:$0xff]   ;;  %v1837_v31 = vld [vmem:[%s2402_s1] sm:$0xff]   ;;  %v1842_v48 = vld [vmem:[%s2402_s1 + $0x138] sm:$0xff]  }
   0xc   :  { %1634 = vmatpush3.bf16.msra.mxu0 %v1817_v10  ;;  %v1834_v27 = vld [vmem:[%s2402_s1 + $0x88] sm:$0xff]   ;;  %v1838_v32 = vld [vmem:[%s2402_s1 + $0x80] sm:$0xff]   ;;  %v1844_v51 = vld [vmem:[%s2402_s1 + $0x170] sm:$0xff]  }
   0xd   :  { %1656 = vmatpush3.bf16.msra.mxu1 %v1818_v11  ;;  %1635 = vmatprep.subr.bf16.mxu0 %v1819_v12  ;;  %v16_v34 = vld [vmem:[%s2401_s0] sm:$0xff]  ;;  %v1843_v53 = vld [vmem:[%s2402_s1 + $0x1b8] sm:$0xff]   ;;  %v1845_v54 = vld [vmem:[%s2402_s1 + $0x1f0] sm:$0xff]  }
   0xe   :  { %1657 = vmatprep.subr.bf16.mxu1 %v1820_v13  ;;  %v283_v39 = vcombine.high %v16_v34, %v16_v34  ;;  %v290_v42 = vrot.slane %v16_v34, %v2086_v41  ;;  %v1846_v56 = vld [vmem:[%s2402_s1 + $0x130] sm:$0xff]   ;;  %v1848_v57 = vld [vmem:[%s2402_s1 + $0x168] sm:$0xff]   ;;  %v1852_v61 = vld [vmem:[%s2402_s1 + $0x160] sm:$0xff]  }
   0xf   :  { %v1847_v58 = vld [vmem:[%s2402_s1 + $0x1b0] sm:$0xff]   ;;  %v1849_v59 = vld [vmem:[%s2402_s1 + $0x1e8] sm:$0xff]   ;;  %v1853_v63 = vld [vmem:[%s2402_s1 + $0x1e0] sm:$0xff]  }
  0x10   :  { %1636 = vmatpush3.bf16.msra.mxu0 %v1821_v14  ;;  %v2090_v43 = vrot.slane %v283_v39, %v2086_v41  ;;  %v298_v44 = vcombine.high %v290_v42, %v290_v42  ;;  %v306_v45 = vrot.slane %v290_v42, %v2086_v41  ;;  %v1850_v60 = vld [vmem:[%s2402_s1 + $0x128] sm:$0xff]   ;;  %v1854_v0 = vld [vmem:[%s2402_s1 + $0x120] sm:$0xff]   ;;  %v1856_v1 = vld [vmem:[%s2402_s1 + $0x158] sm:$0xff]  }
  0x11   :  { %1658 = vmatpush3.bf16.msra.mxu1 %v1822_v15  ;;  %1637 = vmatprep.subr.bf16.mxu0 %v1823_v16  ;;  %v1851_v62 = vld [vmem:[%s2402_s1 + $0x1a8] sm:$0xff]   ;;  %v1855_v2 = vld [vmem:[%s2402_s1 + $0x1a0] sm:$0xff]   ;;  %v1857_v3 = vld [vmem:[%s2402_s1 + $0x1d8] sm:$0xff]  }
  0x12   :  { %1659 = vmatprep.subr.bf16.mxu1 %v1824_v17  ;;  %v299_v46 = vcombine.high %v2090_v43, %v2090_v43  ;;  %v320_v47 = vrot.slane %v298_v44, %v2086_v41  ;;  %v328_v50 = vcombine.high %v306_v45, %v306_v45  ;;  %v1858_v4 = vld [vmem:[%s2402_s1 + $0x118] sm:$0xff]   ;;  %v1860_v5 = vld [vmem:[%s2402_s1 + $0x150] sm:$0xff]   ;;  %v1864_v9 = vld [vmem:[%s2402_s1 + $0x148] sm:$0xff]   ;;  %v313_v17 = vrot.slane %v2090_v43, %v2086_v41 }
  0x13   :  { %v1859_v6 = vld [vmem:[%s2402_s1 + $0x198] sm:$0xff]   ;;  %v1861_v7 = vld [vmem:[%s2402_s1 + $0x1d0] sm:$0xff]   ;;  %v1865_v11 = vld [vmem:[%s2402_s1 + $0x1c8] sm:$0xff]  }
  0x14   :  { %1638 = vmatpush3.bf16.msra.mxu0 %v1825_v18  ;;  %v327_v49 = vrot.slane %v299_v46, %v2086_v41  ;;  %1197 = vmatprep.mubr.bf16.mxu0 %v320_v47  ;;  %v330_v52 = vcombine.high %v320_v47, %v320_v47  ;;  %v1862_v8 = vld [vmem:[%s2402_s1 + $0x110] sm:$0xff]   ;;  %v1866_v12 = vld [vmem:[%s2402_s1 + $0x108] sm:$0xff]   ;;  %v1868_v13 = vld [vmem:[%s2402_s1 + $0x140] sm:$0xff]  }
  0x15   :  { %1660 = vmatpush3.bf16.msra.mxu1 %v1826_v19  ;;  %1639 = vmatprep.subr.bf16.mxu0 %v1827_v20  ;;  %v1863_v10 = vld [vmem:[%s2402_s1 + $0x190] sm:$0xff]   ;;  %v1867_v14 = vld [vmem:[%s2402_s1 + $0x188] sm:$0xff]   ;;  %v1869_v15 = vld [vmem:[%s2402_s1 + $0x1c0] sm:$0xff]  }
  0x16   :  { %1661 = vmatprep.subr.bf16.mxu1 %v1828_v21  ;;  %v331_v55 = vcombine.high %v327_v49, %v327_v49  ;;  %1237 = vmatprep.mubr.bf16.mxu1 %v330_v52  ;;  %v1870_v16 = vld [vmem:[%s2402_s1 + $0x100] sm:$0xff]   ;;  %v1872_v18 = vld [vmem:[%s2402_s1 + $0x278] sm:$0xff]   ;;  %v1879_v28 = vld [vmem:[%s2402_s1 + $0x2b0] sm:$0xff]  }
  0x17   :  { %v1871_v19 = vld [vmem:[%s2402_s1 + $0x180] sm:$0xff]   ;;  %v1873_v20 = vld [vmem:[%s2402_s1 + $0x2f8] sm:$0xff]   ;;  %v1892_v39 = vld [vmem:[%s2402_s1 + $0x250] sm:$0xff]  }
  0x18   :  { %1640 = vmatpush3.bf16.msra.mxu0 %v1829_v22  ;;  %v1874_v21 = vld [vmem:[%s2402_s1 + $0x238] sm:$0xff]   ;;  %v329_v22 = vcombine.high %v313_v17, %v313_v17  ;;  %v1885_v33 = vld [vmem:[%s2402_s1 + $0x2e0] sm:$0xff]   ;;  %v1893_v42 = vld [vmem:[%s2402_s1 + $0x2d0] sm:$0xff]  }
  0x19   :  { %1662 = vmatpush3.bf16.msra.mxu1 %v1830_v23  ;;  %1641 = vmatprep.subr.bf16.mxu0 %v1831_v24  ;;  %v1876_v23 = vld [vmem:[%s2402_s1 + $0x270] sm:$0xff]   ;;  %v1875_v24 = vld [vmem:[%s2402_s1 + $0x2b8] sm:$0xff]   ;;  %v1886_v34 = vld [vmem:[%s2402_s1 + $0x220] sm:$0xff]  }
  0x1a   :  { %1663 = vmatprep.subr.bf16.mxu1 %v1832_v25  ;;  %v1877_v25 = vld [vmem:[%s2402_s1 + $0x2f0] sm:$0xff]   ;;  %v1887_v36 = vld [vmem:[%s2402_s1 + $0x2a0] sm:$0xff]   ;;  %v1889_v37 = vld [vmem:[%s2402_s1 + $0x2d8] sm:$0xff]  }
  0x1b   :  { %v1891_v40 = vld [vmem:[%s2402_s1 + $0x298] sm:$0xff]   ;;  %v1894_v43 = vld [vmem:[%s2402_s1 + $0x210] sm:$0xff]   ;;  %v1896_v44 = vld [vmem:[%s2402_s1 + $0x248] sm:$0xff]  }
  0x1c   :  { %1642 = vmatpush3.bf16.msra.mxu0 %v1833_v26  ;;  %v1878_v26 = vld [vmem:[%s2402_s1 + $0x230] sm:$0xff]  }
  0x1d   :  { %1664 = vmatpush3.bf16.msra.mxu1 %v1834_v27  ;;  %1643 = vmatprep.subr.bf16.mxu0 %v1835_v29  ;;  %v1880_v27 = vld [vmem:[%s2402_s1 + $0x268] sm:$0xff]   ;;  %v1895_v46 = vld [vmem:[%s2402_s1 + $0x290] sm:$0xff]  }
  0x1e   :  { %1665 = vmatprep.subr.bf16.mxu1 %v1836_v30  ;;  %v1881_v29 = vld [vmem:[%s2402_s1 + $0x2e8] sm:$0xff]  }
  0x1f   :  { %v1882_v30 = vld [vmem:[%s2402_s1 + $0x228] sm:$0xff]  }
  0x20   :  { %1644 = vmatpush3.bf16.msra.mxu0 %v1837_v31  ;;  %v1884_v31 = vld [vmem:[%s2402_s1 + $0x260] sm:$0xff]  }
  0x21   :  { %1666 = vmatpush3.bf16.msra.mxu1 %v1838_v32  ;;  %1673 = vmatprep.subr.bf16.mxu0 %v1840_v35  ;;  %v1883_v32 = vld [vmem:[%s2402_s1 + $0x2a8] sm:$0xff]   ;;  %v1888_v35 = vld [vmem:[%s2402_s1 + $0x258] sm:$0xff]  }
  0x22   :  { %1695 = vmatprep.subr.bf16.mxu1 %v1841_v38  ;;  %v1890_v38 = vld [vmem:[%s2402_s1 + $0x218] sm:$0xff]  }
  0x23   :  { %1198 = vmatmul.mubr.bf16.vlgmr.msra.gmra.mxu0 %v306_v45  ;;  %v17_v45 = vld [vmem:[%s2401_s0 + $0x8] sm:$0xff] }
  0x24   :  { %1674 = vmatpush3.bf16.msra.mxu0 %v1842_v48  ;;  %1238 = vmatmul.mubr.bf16.vlgmr.msra.gmra.mxu1 %v328_v50  ;;  %v339_v47 = vrot.slane %v17_v45, %v2086_v41  ;;  %v332_v48 = vcombine.high %v17_v45, %v17_v45  ;;  %v1898_v50 = vld [vmem:[%s2402_s1 + $0x208] sm:$0xff]  }
  0x25   :  { %1675 = vmatprep.subr.bf16.mxu0 %v1844_v51  ;;  %1696 = vmatpush3.bf16.msra.mxu1 %v1843_v53  ;;  %v1900_v53 = vld [vmem:[%s2402_s1 + $0x240] sm:$0xff]  }
  0x26   :  { %1277 = vmatprep.mubr.bf16.mxu0 %v327_v49  ;;  %1697 = vmatprep.subr.bf16.mxu1 %v1845_v54  ;;  %v1897_v49 = vld [vmem:[%s2402_s1 + $0x2c8] sm:$0xff]   ;;  %v347_v51 = vcombine.high %v339_v47, %v339_v47  ;;  %v2275_v52 = vrot.slane %v332_v48, %v2086_v41 }
  0x27   :  { %1317 = vmatprep.mubr.bf16.mxu1 %v331_v55  ;;  %v1899_v54 = vld [vmem:[%s2402_s1 + $0x288] sm:$0xff]  }
  0x28   :  { %1676 = vmatpush3.bf16.msra.mxu0 %v1846_v56  ;;  %v369_v55 = vrot.slane %v347_v51, %v2086_v41  ;;  %v348_v56 = vcombine.high %v2275_v52, %v2275_v52 }
  0x29   :  { %1677 = vmatprep.subr.bf16.mxu0 %v1848_v57  ;;  %1698 = vmatpush3.bf16.msra.mxu1 %v1847_v58  ;;  %v1901_v57 = vld [vmem:[%s2402_s1 + $0x2c0] sm:$0xff]  }
  0x2a   :  { %1699 = vmatprep.subr.bf16.mxu1 %v1849_v59  ;;  %v1902_v58 = vld [vmem:[%s2402_s1 + $0x200] sm:$0xff]   ;;  %v379_v59 = vcombine.high %v369_v55, %v369_v55 }
  0x2c   :  { %1678 = vmatpush3.bf16.msra.mxu0 %v1850_v60  ;;  %v355_v60 = vrot.slane %v339_v47, %v2086_v41 }
  0x2d   :  { %1679 = vmatprep.subr.bf16.mxu0 %v1852_v61  ;;  %1700 = vmatpush3.bf16.msra.mxu1 %v1851_v62  ;;  %v1904_v61 = vld [vmem:[%s2402_s1 + $0x378] sm:$0xff]   ;;  %v1903_v62 = vld [vmem:[%s2402_s1 + $0x280] sm:$0xff]  }
  0x2e   :  { %1701 = vmatprep.subr.bf16.mxu1 %v1853_v63  ;;  %v376_v63 = vrot.slane %v348_v56, %v2086_v41 }
  0x30   :  { %1680 = vmatpush3.bf16.msra.mxu0 %v1854_v0  ;;  %v1905_v0 = vld [vmem:[%s2402_s1 + $0x3f8] sm:$0xff]  }
  0x31   :  { %1681 = vmatprep.subr.bf16.mxu0 %v1856_v1  ;;  %1702 = vmatpush3.bf16.msra.mxu1 %v1855_v2  ;;  %v1906_v1 = vld [vmem:[%s2402_s1 + $0x338] sm:$0xff]   ;;  %v377_v2 = vcombine.high %v355_v60, %v355_v60 }
  0x32   :  { %1703 = vmatprep.subr.bf16.mxu1 %v1857_v3  ;;  %v1908_v3 = vld [vmem:[%s2402_s1 + $0x370] sm:$0xff]  }
  0x34   :  { %1682 = vmatpush3.bf16.msra.mxu0 %v1858_v4  ;;  %v1907_v4 = vld [vmem:[%s2402_s1 + $0x3b8] sm:$0xff]  }
  0x35   :  { %1683 = vmatprep.subr.bf16.mxu0 %v1860_v5  ;;  %1704 = vmatpush3.bf16.msra.mxu1 %v1859_v6  ;;  %v380_v5 = vcombine.high %v376_v63, %v376_v63  ;;  %v1909_v6 = vld [vmem:[%s2402_s1 + $0x3f0] sm:$0xff]  }
  0x36   :  { %1705 = vmatprep.subr.bf16.mxu1 %v1861_v7  ;;  %v1910_v7 = vld [vmem:[%s2402_s1 + $0x330] sm:$0xff]  }
  0x38   :  { %1684 = vmatpush3.bf16.msra.mxu0 %v1862_v8  ;;  %v1912_v8 = vld [vmem:[%s2402_s1 + $0x368] sm:$0xff]  }
  0x39   :  { %1685 = vmatprep.subr.bf16.mxu0 %v1864_v9  ;;  %1706 = vmatpush3.bf16.msra.mxu1 %v1863_v10  ;;  %v1911_v9 = vld [vmem:[%s2402_s1 + $0x3b0] sm:$0xff]   ;;  %v1913_v10 = vld [vmem:[%s2402_s1 + $0x3e8] sm:$0xff]  }
  0x3a   :  { %1707 = vmatprep.subr.bf16.mxu1 %v1865_v11  ;;  %v1914_v11 = vld [vmem:[%s2402_s1 + $0x328] sm:$0xff]  }
  0x3c   :  { %1686 = vmatpush3.bf16.msra.mxu0 %v1866_v12  ;;  %v1916_v12 = vld [vmem:[%s2402_s1 + $0x360] sm:$0xff]  }
  0x3d   :  { %1687 = vmatprep.subr.bf16.mxu0 %v1868_v13  ;;  %1708 = vmatpush3.bf16.msra.mxu1 %v1867_v14  ;;  %v1915_v13 = vld [vmem:[%s2402_s1 + $0x3a8] sm:$0xff]   ;;  %v1917_v14 = vld [vmem:[%s2402_s1 + $0x3e0] sm:$0xff]  }
  0x3e   :  { %1709 = vmatprep.subr.bf16.mxu1 %v1869_v15  ;;  %v1918_v15 = vld [vmem:[%s2402_s1 + $0x320] sm:$0xff]  }
  0x40   :  { %1688 = vmatpush3.bf16.msra.mxu0 %v1870_v16  ;;  %v1920_v16 = vld [vmem:[%s2402_s1 + $0x358] sm:$0xff]  }
  0x41   :  { %1717 = vmatprep.subr.bf16.mxu0 %v1872_v18  ;;  %1710 = vmatpush3.bf16.msra.mxu1 %v1871_v19  ;;  %v1921_v18 = vld [vmem:[%s2402_s1 + $0x3d8] sm:$0xff]  }
  0x42   :  { %1739 = vmatprep.subr.bf16.mxu1 %v1873_v20  ;;  %v1922_v19 = vld [vmem:[%s2402_s1 + $0x318] sm:$0xff]   ;;  %v1924_v20 = vld [vmem:[%s2402_s1 + $0x350] sm:$0xff]  }
  0x43   :  { %1278 = vmatmul.mubr.bf16.vlgmr.msra.gmra.mxu0 %v313_v17  ;;  %v1919_v17 = vld [vmem:[%s2402_s1 + $0x3a0] sm:$0xff]  }
  0x44   :  { %1718 = vmatpush3.bf16.msra.mxu0 %v1874_v21  ;;  %1318 = vmatmul.mubr.bf16.vlgmr.msra.gmra.mxu1 %v329_v22  ;;  %v1923_v21 = vld [vmem:[%s2402_s1 + $0x398] sm:$0xff]   ;;  %v1925_v22 = vld [vmem:[%s2402_s1 + $0x3d0] sm:$0xff]  }
  0x45   :  { %1719 = vmatprep.subr.bf16.mxu0 %v1876_v23  ;;  %1740 = vmatpush3.bf16.msra.mxu1 %v1875_v24  ;;  %v1926_v23 = vld [vmem:[%s2402_s1 + $0x310] sm:$0xff]   ;;  %v1928_v24 = vld [vmem:[%s2402_s1 + $0x348] sm:$0xff]  }
  0x46   :  { %1741 = vmatprep.subr.bf16.mxu1 %v1877_v25  ;;  %1357 = vmatprep.mubr.bf16.mxu0 %v369_v55  ;;  %v1927_v25 = vld [vmem:[%s2402_s1 + $0x390] sm:$0xff]  }
  0x47   :  { %1397 = vmatprep.mubr.bf16.mxu1 %v379_v59 }
  0x48   :  { %1720 = vmatpush3.bf16.msra.mxu0 %v1878_v26 }
  0x49   :  { %1721 = vmatprep.subr.bf16.mxu0 %v1880_v27  ;;  %1742 = vmatpush3.bf16.msra.mxu1 %v1879_v28 }
  0x4a   :  { %1743 = vmatprep.subr.bf16.mxu1 %v1881_v29 }
  0x4c   :  { %1722 = vmatpush3.bf16.msra.mxu0 %v1882_v30 }
  0x4d   :  { %1723 = vmatprep.subr.bf16.mxu0 %v1884_v31  ;;  %1744 = vmatpush3.bf16.msra.mxu1 %v1883_v32 }
  0x4e   :  { %1745 = vmatprep.subr.bf16.mxu1 %v1885_v33 }
  0x50   :  { %1724 = vmatpush3.bf16.msra.mxu0 %v1886_v34 }
  0x51   :  { %1725 = vmatprep.subr.bf16.mxu0 %v1888_v35  ;;  %1746 = vmatpush3.bf16.msra.mxu1 %v1887_v36 }
  0x52   :  { %1747 = vmatprep.subr.bf16.mxu1 %v1889_v37 }
  0x54   :  { %1726 = vmatpush3.bf16.msra.mxu0 %v1890_v38 }
  0x55   :  { %1727 = vmatprep.subr.bf16.mxu0 %v1892_v39  ;;  %1748 = vmatpush3.bf16.msra.mxu1 %v1891_v40 }
  0x56   :  { %1749 = vmatprep.subr.bf16.mxu1 %v1893_v42 }
  0x58   :  { %1728 = vmatpush3.bf16.msra.mxu0 %v1894_v43 }
  0x59   :  { %1729 = vmatprep.subr.bf16.mxu0 %v1896_v44  ;;  %1750 = vmatpush3.bf16.msra.mxu1 %v1895_v46 }
  0x5a   :  { %1751 = vmatprep.subr.bf16.mxu1 %v1897_v49 }
  0x5c   :  { %1730 = vmatpush3.bf16.msra.mxu0 %v1898_v50 }
  0x5d   :  { %1731 = vmatprep.subr.bf16.mxu0 %v1900_v53  ;;  %1752 = vmatpush3.bf16.msra.mxu1 %v1899_v54 }
  0x5e   :  { %1753 = vmatprep.subr.bf16.mxu1 %v1901_v57 }
  0x60   :  { %1732 = vmatpush3.bf16.msra.mxu0 %v1902_v58 }
  0x61   :  { %1761 = vmatprep.subr.bf16.mxu0 %v1904_v61  ;;  %1754 = vmatpush3.bf16.msra.mxu1 %v1903_v62 }
  0x62   :  { %1783 = vmatprep.subr.bf16.mxu1 %v1905_v0 }
  0x63   :  { %1358 = vmatmul.mubr.bf16.vlgmr.msra.gmra.mxu0 %v355_v60 }
  0x64   :  { %1762 = vmatpush3.bf16.msra.mxu0 %v1906_v1  ;;  %1437 = vmatprep.mubr.bf16.mxu0 %v376_v63 }
  0x65   :  { %1398 = vmatmul.mubr.bf16.vlgmr.msra.gmra.mxu1 %v377_v2  ;;  %1763 = vmatprep.subr.bf16.mxu0 %v1908_v3 }
  0x66   :  { %1784 = vmatpush3.bf16.msra.mxu1 %v1907_v4  ;;  %1477 = vmatprep.mubr.bf16.mxu1 %v380_v5 }
  0x67   :  { %1785 = vmatprep.subr.bf16.mxu1 %v1909_v6 }
  0x68   :  { %1764 = vmatpush3.bf16.msra.mxu0 %v1910_v7 }
  0x69   :  { %1765 = vmatprep.subr.bf16.mxu0 %v1912_v8 }
  0x6a   :  { %1786 = vmatpush3.bf16.msra.mxu1 %v1911_v9 }
  0x6b   :  { %1787 = vmatprep.subr.bf16.mxu1 %v1913_v10 }
  0x6c   :  { %1766 = vmatpush3.bf16.msra.mxu0 %v1914_v11 }
  0x6d   :  { %1767 = vmatprep.subr.bf16.mxu0 %v1916_v12 }
  0x6e   :  { %1788 = vmatpush3.bf16.msra.mxu1 %v1915_v13 }
  0x6f   :  { %1789 = vmatprep.subr.bf16.mxu1 %v1917_v14 }
  0x70   :  { %1768 = vmatpush3.bf16.msra.mxu0 %v1918_v15 }
  0x71   :  { %1769 = vmatprep.subr.bf16.mxu0 %v1920_v16 }
  0x72   :  { %1790 = vmatpush3.bf16.msra.mxu1 %v1919_v17 }
  0x73   :  { %1791 = vmatprep.subr.bf16.mxu1 %v1921_v18 }
  0x74   :  { %1770 = vmatpush3.bf16.msra.mxu0 %v1922_v19 }
  0x75   :  { %1771 = vmatprep.subr.bf16.mxu0 %v1924_v20 }
  0x76   :  { %1792 = vmatpush3.bf16.msra.mxu1 %v1923_v21 }
  0x77   :  { %8 = vsyncpa [#allocation3], 0  ;;  %1793 = vmatprep.subr.bf16.mxu1 %v1925_v22  ;;  %v1929_v26 = vld [vmem:[%s2402_s1 + $0x3c8] sm:$0xff]   ;;  %v1932_v28 = vld [vmem:[%s2402_s1 + $0x340] sm:$0xff]   ;;  %v362_v32 = vrot.slane %v2275_v52, %v2086_v41 }
  0x78   :  { %1772 = vmatpush3.bf16.msra.mxu0 %v1926_v23  ;;  %v1930_v27 = vld [vmem:[%s2402_s1 + $0x308] sm:$0xff]   ;;  %v1933_v30 = vld [vmem:[%s2402_s1 + $0x3c0] sm:$0xff]  }
  0x79   :  { %1773 = vmatprep.subr.bf16.mxu0 %v1928_v24  ;;  %v1931_v29 = vld [vmem:[%s2402_s1 + $0x388] sm:$0xff]   ;;  %v1934_v31 = vld [vmem:[%s2402_s1 + $0x300] sm:$0xff]   ;;  %v378_v34 = vcombine.high %v362_v32, %v362_v32 }
  0x7a   :  { %1794 = vmatpush3.bf16.msra.mxu1 %v1927_v25  ;;  %v1935_v33 = vld [vmem:[%s2402_s1 + $0x380] sm:$0xff]   ;;  %s1960_s1 = smov [#allocation2]  }
  0x7b   :  { %1795 = vmatprep.subr.bf16.mxu1 %v1929_v26  ;;  %v1500_v37 = vld [vmem:[%s2403_s2] ss:$0 sm:$0xff]  ;;  %s1492_s2 = sshll.u32 %s1960_s1, 4  ;;  %s1493_s2 = int_to_ptr.vmem [resolvable:$true] %s1492_s2 }
  0x7c   :  { %1774 = vmatpush3.bf16.msra.mxu0 %v1930_v27  ;;  %s1937_s28 = scalar_lea.vmem %s1493_s2, 32  ;;  %p1942_p1 = scmp.lt.s32.totalorder %s1493_s2, %s1493_s2 }
  0x7d   :  { %1775 = vmatprep.subr.bf16.mxu0 %v1932_v28  ;;  %p1938_p0 = scmp.ne.s32.totalorder %s1493_s2, %s1937_s28  ;;  %p1943_p2 = scmp.lt.s32.totalorder %s1937_s28, %s1937_s28 }
  0x7e   :  { %1796 = vmatpush3.bf16.msra.mxu1 %v1931_v29 }
  0x7f   :  { %1797 = vmatprep.subr.bf16.mxu1 %v1933_v30  ;;  %p1944_p3 = por %p1943_p2, %p1942_p1 }
  0x80   :  { %1776 = vmatpush3.bf16.msra.mxu0 %v1934_v31 }
  0x81   :  { %p1945_p4 = pnand %p1944_p3, %p1938_p0 }
  0x82   :  { %1798 = vmatpush3.bf16.msra.mxu1 %v1935_v33 }
  0x83   :  { %1438 = vmatmul.mubr.bf16.vlgmr.msra.gmra.mxu0 %v362_v32 }
  0x85   :  { %1478 = vmatmul.mubr.bf16.vlgmr.msra.gmra.mxu1 %v378_v34 }
  0xe3   :  { %v1645_v35 = vpop.f32.mrf.mxu0 }
  0xe4   :  { %v1667_v36 = vpop.f32.mrf.mxu1 }
  0xe5   :  { %v1646_v38 = vpop.f32.mrf.mxu0 }
  0xe6   :  { %v1647_v39 = vadd.f32 %v1646_v38, %v1645_v35  ;;  %v1668_v41 = vpop.f32.mrf.mxu1 }
  0xe7   :  { %v1648_v40 = vpop.f32.mrf.mxu0  ;;  %v1669_v43 = vadd.f32 %v1668_v41, %v1667_v36 }
  0xe8   :  { %v1200_v42 = vadd.f32 %v1647_v39, %v1500_v37  ;;  %v1670_v44 = vpop.f32.mrf.mxu1 }
  0xe9   :  { %v1649_v45 = vpop.f32.mrf.mxu0 }
  0xea   :  { %v1240_v46 = vadd.f32 %v1669_v43, %v1200_v42  ;;  %v1671_v47 = vpop.f32.mrf.mxu1 }
 0x103   :  { %v1689_v48 = vpop.f32.mrf.mxu0 }
 0x104   :  { %v1711_v49 = vpop.f32.mrf.mxu1 }
 0x105   :  { %v1690_v50 = vpop.f32.mrf.mxu0 }
 0x106   :  { %v1712_v51 = vpop.f32.mrf.mxu1  ;;  %v1691_v0 = vadd.f32 %v1690_v50, %v1689_v48 }
 0x107   :  { %v1692_v52 = vpop.f32.mrf.mxu0  ;;  %v1713_v2 = vadd.f32 %v1712_v51, %v1711_v49 }
 0x108   :  { %v1714_v53 = vpop.f32.mrf.mxu1  ;;  %v1280_v1 = vadd.f32 %v1691_v0, %v1240_v46 }
 0x109   :  { %v1693_v54 = vpop.f32.mrf.mxu0 }
 0x10a   :  { %v1715_v55 = vpop.f32.mrf.mxu1  ;;  %v1320_v4 = vadd.f32 %v1713_v2, %v1280_v1 }
 0x123   :  { %v1733_v56 = vpop.f32.mrf.mxu0 }
 0x125   :  { %v1755_v57 = vpop.f32.mrf.mxu1  ;;  %v1734_v58 = vpop.f32.mrf.mxu0 }
 0x126   :  { %v1735_v3 = vadd.f32 %v1734_v58, %v1733_v56 }
 0x127   :  { %v1756_v59 = vpop.f32.mrf.mxu1  ;;  %v1736_v60 = vpop.f32.mrf.mxu0 }
 0x128   :  { %v1360_v5 = vadd.f32 %v1735_v3, %v1320_v4  ;;  %v1757_v6 = vadd.f32 %v1756_v59, %v1755_v57 }
 0x129   :  { %v1758_v61 = vpop.f32.mrf.mxu1  ;;  %v1737_v62 = vpop.f32.mrf.mxu0 }
 0x12a   :  { %v1400_v10 = vadd.f32 %v1757_v6, %v1360_v5 }
 0x12b   :  { %v1759_v63 = vpop.f32.mrf.mxu1 }
 0x143   :  { %v1777_v7 = vpop.f32.mrf.mxu0 }
 0x145   :  { %v1799_v8 = vpop.f32.mrf.mxu1  ;;  %v1778_v9 = vpop.f32.mrf.mxu0 }
 0x146   :  { %v1779_v11 = vadd.f32 %v1778_v9, %v1777_v7 }
 0x147   :  { %v1800_v12 = vpop.f32.mrf.mxu1  ;;  %v1780_v13 = vpop.f32.mrf.mxu0 }
 0x148   :  { %v1440_v14 = vadd.f32 %v1779_v11, %v1400_v10  ;;  %v1801_v15 = vadd.f32 %v1800_v12, %v1799_v8 }
 0x149   :  { %v1802_v16 = vpop.f32.mrf.mxu1  ;;  %v1781_v17 = vpop.f32.mrf.mxu0 }
 0x14a   :  { %v1480_v18 = vadd.f32 %v1801_v15, %v1440_v14 }
 0x14b   :  { %v1803_v19 = vpop.f32.mrf.mxu1 }
 0x14c   :  { %1485 = vst [vmem:[#allocation2] sm:$0x3] %v1480_v18 }
 0x14d   :  { %1948 = shalt.err (!%p1945_p4)
}
 0x14e   :  { %1495 = dma.vmem_to_hbm [thread:$0]  %s1493_s2, 32, %s2404_s3, [#allocation3]  }
 0x14f   :  { %1957 = dma.done.wait [#allocation3], 32  }
 0x150   :  { %1958 = vsyncadd [#allocation3], 4294967264 }
 0x151   :  { %1499 = vsyncpa [#allocation3], 1 }

</bundles_post_ra>
